<compile_context>
chip_gen: v7x
topology: tpu7x:2x2x1
jax: 0.10.0
libtpu: 0.0.40
codegen_flags: <defaults>
</compile_context>

<pallas_src>
import jax
import jax.numpy as jnp
from jax.experimental import pallas as pl
from jax.experimental.pallas import tpu as pltpu


# ---------------------------------------------------------------------------
# Fused kernel: conv1 + bias -> (hook) -> relu -> conv2 + bias -> (hook)
# One grid step == one image.  Everything stays in VMEM between the two convs.
# ---------------------------------------------------------------------------
def _make_fused_hcnn_kernel(H, W):
    def kernel(xpad_ref, w1_ref, b1_ref, w2_ref, b2_ref,
               pre1_ref, pre2_ref, act1pad_ref):
        # xpad_ref   : (1, H+2, W+2, Cin)   zero-padded NHWC input image
        # w{1,2}_ref : (9, Cin, Cout)       3x3 HWIO weights, tap-major
        # b{1,2}_ref : (1, Cout)
        # pre{1,2}_ref : (1, Cout, H*W)     pre-activation, NCHW-ordered, lane-dense
        # act1pad_ref  : VMEM scratch (H+2, W+2, C1) for the padded relu(conv1)
        c1 = w1_ref.shape[-1]

        xpad = xpad_ref[0]                                   # (H+2, W+2, Cin)

        def conv9(src, w_ref):
            """3x3 'same' conv as 9 accumulated tap matmuls -> (H*W, Cout)."""
            cin = src.shape[-1]
            cout = w_ref.shape[-1]
            acc = jnp.zeros((H * W, cout), jnp.float32)
            for tap in range(9):
                kh, kw = tap // 3, tap % 3
                a = src[kh:kh + H, kw:kw + W, :].reshape(H * W, cin)
                acc = acc + jnp.dot(a, w_ref[tap],
                                    preferred_element_type=jnp.float32)
            return acc

        # ---- conv1 (hooked, pre-ReLU) ----
        pre1 = conv9(xpad, w1_ref) + b1_ref[...]             # (H*W, C1)
        # write transposed -> (C1, H*W): lane-dense store, NCHW flatten order
        pre1_ref[0] = pre1.T.astype(pre1_ref.dtype)

        # ---- relu + re-pad, kept entirely in VMEM ----
        act1pad_ref[...] = jnp.zeros_like(act1pad_ref)
        act1pad_ref[1:H + 1, 1:W + 1, :] = (
            jnp.maximum(pre1, 0.0).reshape(H, W, c1))

        # ---- conv2 (hooked, pre-ReLU) ----
        pre2 = conv9(act1pad_ref[...], w2_ref) + b2_ref[...]  # (H*W, C2)
        pre2_ref[0] = pre2.T.astype(pre2_ref.dtype)
        # (trailing ReLU of the synthetic model is not hooked, so not emitted)

    return kernel


@jax.jit
def _hcnn_fused_forward(x_nchw, w1, b1, w2, b2):
    """Returns (pre1, pre2) with shapes (N, C1, H*W), (N, C2, H*W),
    i.e. already in torch NCHW flatten order."""
    N, Cin, H, W = x_nchw.shape
    C1 = w1.shape[-1]
    C2 = w2.shape[-1]

    # Cheap glue: NCHW -> NHWC + 1-pixel zero pad (NOT the 9x im2col blowup).
    x_nhwc = jnp.transpose(x_nchw, (0, 2, 3, 1))
    xpad = jnp.pad(x_nhwc, ((0, 0), (1, 1), (1, 1), (0, 0)))

    w1_t = w1.reshape(9, Cin, C1)        # HWIO -> (tap, Cin, Cout)
    w2_t = w2.reshape(9, C1, C2)
    b1_r = b1.reshape(1, C1)
    b2_r = b2.reshape(1, C2)

    flops = 2 * N * H * W * 9 * (Cin * C1 + C1 * C2)
    bytes_accessed = 4 * (xpad.size + w1_t.size + b1_r.size + w2_t.size
                          + b2_r.size + N * H * W * (C1 + C2))

    pre1, pre2 = pl.pallas_call(
        _make_fused_hcnn_kernel(H, W),
        out_shape=(
            jax.ShapeDtypeStruct((N, C1, H * W), jnp.float32),
            jax.ShapeDtypeStruct((N, C2, H * W), jnp.float32),
        ),
        grid=(N,),
        in_specs=[
            pl.BlockSpec((1, H + 2, W + 2, Cin), lambda b: (b, 0, 0, 0)),
            pl.BlockSpec((9, Cin, C1), lambda b: (0, 0, 0)),
            pl.BlockSpec((1, C1), lambda b: (0, 0)),
            pl.BlockSpec((9, C1, C2), lambda b: (0, 0, 0)),
            pl.BlockSpec((1, C2), lambda b: (0, 0)),
        ],
        out_specs=(
            pl.BlockSpec((1, C1, H * W), lambda b: (b, 0, 0)),
            pl.BlockSpec((1, C2, H * W), lambda b: (b, 0, 0)),
        ),
        scratch_shapes=[pltpu.VMEM((H + 2, W + 2, C1), jnp.float32)],
        compiler_params=pltpu.CompilerParams(
            dimension_semantics=("parallel",)),
        cost_estimate=pl.CostEstimate(
            flops=flops, transcendentals=0, bytes_accessed=bytes_accessed),
    )(xpad, w1_t, b1_r, w2_t, b2_r)
    return pre1, pre2


# ---------------------------------------------------------------------------
# HCNNFeatureExtractor equivalent
# ---------------------------------------------------------------------------
class HCNNFeatureExtractorPallas:
    """JAX/Pallas port of HCNNFeatureExtractor over a small synthetic HCNN:
        conv1(Cin->8, 3x3, pad 1) -> relu -> conv2(8->16, 3x3, pad 1) -> relu
    Hooks on 'conv1'/'conv2' capture the conv (pre-ReLU) outputs, which are
    flattened and renamed (layer -> friendly name), matching the PyTorch
    hook + _flat_features() semantics."""

    def __init__(self, params, layers, layers_name):
        assert len(layers) == len(layers_name), (
            f"Mismatch of length between the number of selected layers : "
            f"{len(layers)} and their associated user-friendly name : "
            f"{len(layers_name)} given."
        )
        # TODO(synk): torch forward-hook registration on arbitrary
        # named_modules() has no kernel equivalent; capture is explicit below.
        self.renamed = {layers[i]: layers_name[i] for i in range(len(layers))}
        self.layers = list(layers)
        self.params = params

    def forward(self, x_nchw):
        p = self.params
        pre1, pre2 = _hcnn_fused_forward(
            x_nchw, p["conv1_w"], p["conv1_b"], p["conv2_w"], p["conv2_b"])
        feats = {"conv1": pre1, "conv2": pre2}   # already NCHW-ordered
        out = {}
        for layer_id in self.layers:
            # torch .flatten(): free reshape, no transpose needed.
            out[self.renamed[layer_id]] = feats[layer_id].reshape(-1)
        return out

    __call__ = forward


def init_params(key, cin=4, c1=8, c2=16):
    k1, k2, k3, k4 = jax.random.split(key, 4)
    # HWIO weight layout (equivalent to torch OIHW transposed)
    return {
        "conv1_w": 0.1 * jax.random.normal(k1, (3, 3, cin, c1), jnp.float32),
        "conv1_b": 0.1 * jax.random.normal(k2, (c1,), jnp.float32),
        "conv2_w": 0.1 * jax.random.normal(k3, (3, 3, c1, c2), jnp.float32),
        "conv2_b": 0.1 * jax.random.normal(k4, (c2,), jnp.float32),
    }


def _reference_features(x_nchw, params):
    """Pure-JAX reference (XLA conv) producing torch-ordered flat features."""
    x = jnp.transpose(x_nchw, (0, 2, 3, 1))

    def conv(h, w, b):
        y = jax.lax.conv_general_dilated(
            h, w, window_strides=(1, 1), padding="SAME",
            dimension_numbers=("NHWC", "HWIO", "NHWC"))
        return y + b

    pre1 = conv(x, params["conv1_w"], params["conv1_b"])
    pre2 = conv(jnp.maximum(pre1, 0.0), params["conv2_w"], params["conv2_b"])
    return (jnp.transpose(pre1, (0, 3, 1, 2)).reshape(-1),
            jnp.transpose(pre2, (0, 3, 1, 2)).reshape(-1))


if __name__ == "__main__":
    key = jax.random.PRNGKey(0)
    pkey, xkey = jax.random.split(key)

    params = init_params(pkey, cin=4, c1=8, c2=16)
    x = jax.random.normal(xkey, (2, 4, 16, 16), jnp.float32)   # NCHW, like torch

    extractor = HCNNFeatureExtractorPallas(
        params,
        layers=["conv1", "conv2"],
        layers_name=["V1", "V2"],
    )

    feats = extractor(x)
    jax.block_until_ready(feats)

    assert feats["V1"].shape == (2 * 8 * 16 * 16,)
    assert feats["V2"].shape == (2 * 16 * 16 * 16,)

    # Numerical check against an XLA conv reference (loose tol: MXU f32 path).
    ref1, ref2 = _reference_features(x, params)
    assert jnp.allclose(feats["V1"], ref1, atol=2e-2, rtol=2e-2)
    assert jnp.allclose(feats["V2"], ref2, atol=2e-2, rtol=2e-2)

    print("KERNEL_OK")
</pallas_src>

<mosaic_0001>
module attributes {stable_mosaic.version = 11 : i64} {
  func.func @kernel(%arg0: i32, %arg1: memref<1x18x18x4xf32, #tpu.memory_space<vmem>>, %arg2: memref<9x4x8xf32, #tpu.memory_space<vmem>>, %arg3: memref<1x8xf32, #tpu.memory_space<vmem>>, %arg4: memref<9x8x16xf32, #tpu.memory_space<vmem>>, %arg5: memref<1x16xf32, #tpu.memory_space<vmem>>, %arg6: memref<1x8x256xf32, #tpu.memory_space<vmem>>, %arg7: memref<1x16x256xf32, #tpu.memory_space<vmem>>, %arg8: memref<18x18x8xf32, #tpu.memory_space<vmem>>) attributes {dimension_semantics = [#tpu.dimension_semantics<parallel>], iteration_bounds = array<i64: 2>, scalar_prefetch = 0 : i64, scratch_operands = 1 : i64, tpu.core_type = #tpu.core_type<tc>, window_params = [{transform_indices = @transform_0, window_bounds = array<i64: 1, 18, 18, 4>}, {pipeline_mode = #tpu.pipeline_mode<synchronous>, transform_indices = @transform_1, window_bounds = array<i64: 9, 4, 8>}, {pipeline_mode = #tpu.pipeline_mode<synchronous>, transform_indices = @transform_2, window_bounds = array<i64: 1, 8>}, {pipeline_mode = #tpu.pipeline_mode<synchronous>, transform_indices = @transform_3, window_bounds = array<i64: 9, 8, 16>}, {pipeline_mode = #tpu.pipeline_mode<synchronous>, transform_indices = @transform_4, window_bounds = array<i64: 1, 16>}, {transform_indices = @transform_5, window_bounds = array<i64: 1, 8, 256>}, {transform_indices = @transform_6, window_bounds = array<i64: 1, 16, 256>}]} {
    %c0 = arith.constant 0 : index
    %c0_0 = arith.constant 0 : index
    %c0_1 = arith.constant 0 : index
    %c0_2 = arith.constant 0 : index
    %0 = vector.load %arg1[%c0, %c0_0, %c0_1, %c0_2] : memref<1x18x18x4xf32, #tpu.memory_space<vmem>>, vector<1x18x18x4xf32>
    %1 = vector.shape_cast %0 : vector<1x18x18x4xf32> to vector<18x18x4xf32>
    %cst = arith.constant 0.000000e+00 : f32
    %2 = vector.broadcast %cst : f32 to vector<256x8xf32>
    %3 = vector.extract_strided_slice %1 {offsets = [0, 0, 0], sizes = [16, 16, 4], strides = [1, 1, 1]} : vector<18x18x4xf32> to vector<16x16x4xf32>
    %4 = vector.shape_cast %3 : vector<16x16x4xf32> to vector<256x4xf32>
    %c0_3 = arith.constant 0 : index
    %c0_4 = arith.constant 0 : index
    %c0_5 = arith.constant 0 : index
    %5 = vector.load %arg2[%c0_3, %c0_4, %c0_5] : memref<9x4x8xf32, #tpu.memory_space<vmem>>, vector<1x4x8xf32>
    %6 = vector.shape_cast %5 : vector<1x4x8xf32> to vector<4x8xf32>
    %cst_6 = arith.constant dense<0.000000e+00> : vector<256x8xf32>
    %7 = tpu.matmul %4, %6, %cst_6 {dimension_numbers = #tpu.dot_dimension_numbers<[1], [0], [0], [1], [0, 0, 1, 1], [], []>} : vector<256x4xf32>, vector<4x8xf32>, vector<256x8xf32> -> vector<256x8xf32>
    %8 = arith.addf %2, %7 : vector<256x8xf32>
    %9 = vector.extract_strided_slice %1 {offsets = [0, 1, 0], sizes = [16, 16, 4], strides = [1, 1, 1]} : vector<18x18x4xf32> to vector<16x16x4xf32>
    %10 = vector.shape_cast %9 : vector<16x16x4xf32> to vector<256x4xf32>
    %c1 = arith.constant 1 : index
    %c0_7 = arith.constant 0 : index
    %c0_8 = arith.constant 0 : index
    %11 = vector.load %arg2[%c1, %c0_7, %c0_8] : memref<9x4x8xf32, #tpu.memory_space<vmem>>, vector<1x4x8xf32>
    %12 = vector.shape_cast %11 : vector<1x4x8xf32> to vector<4x8xf32>
    %cst_9 = arith.constant dense<0.000000e+00> : vector<256x8xf32>
    %13 = tpu.matmul %10, %12, %cst_9 {dimension_numbers = #tpu.dot_dimension_numbers<[1], [0], [0], [1], [0, 0, 1, 1], [], []>} : vector<256x4xf32>, vector<4x8xf32>, vector<256x8xf32> -> vector<256x8xf32>
    %14 = arith.addf %8, %13 : vector<256x8xf32>
    %15 = vector.extract_strided_slice %1 {offsets = [0, 2, 0], sizes = [16, 16, 4], strides = [1, 1, 1]} : vector<18x18x4xf32> to vector<16x16x4xf32>
    %16 = vector.shape_cast %15 : vector<16x16x4xf32> to vector<256x4xf32>
    %c2 = arith.constant 2 : index
    %c0_10 = arith.constant 0 : index
    %c0_11 = arith.constant 0 : index
    %17 = vector.load %arg2[%c2, %c0_10, %c0_11] : memref<9x4x8xf32, #tpu.memory_space<vmem>>, vector<1x4x8xf32>
    %18 = vector.shape_cast %17 : vector<1x4x8xf32> to vector<4x8xf32>
    %cst_12 = arith.constant dense<0.000000e+00> : vector<256x8xf32>
    %19 = tpu.matmul %16, %18, %cst_12 {dimension_numbers = #tpu.dot_dimension_numbers<[1], [0], [0], [1], [0, 0, 1, 1], [], []>} : vector<256x4xf32>, vector<4x8xf32>, vector<256x8xf32> -> vector<256x8xf32>
    %20 = arith.addf %14, %19 : vector<256x8xf32>
    %21 = vector.extract_strided_slice %1 {offsets = [1, 0, 0], sizes = [16, 16, 4], strides = [1, 1, 1]} : vector<18x18x4xf32> to vector<16x16x4xf32>
    %22 = vector.shape_cast %21 : vector<16x16x4xf32> to vector<256x4xf32>
    %c3 = arith.constant 3 : index
    %c0_13 = arith.constant 0 : index
    %c0_14 = arith.constant 0 : index
    %23 = vector.load %arg2[%c3, %c0_13, %c0_14] : memref<9x4x8xf32, #tpu.memory_space<vmem>>, vector<1x4x8xf32>
    %24 = vector.shape_cast %23 : vector<1x4x8xf32> to vector<4x8xf32>
    %cst_15 = arith.constant dense<0.000000e+00> : vector<256x8xf32>
    %25 = tpu.matmul %22, %24, %cst_15 {dimension_numbers = #tpu.dot_dimension_numbers<[1], [0], [0], [1], [0, 0, 1, 1], [], []>} : vector<256x4xf32>, vector<4x8xf32>, vector<256x8xf32> -> vector<256x8xf32>
    %26 = arith.addf %20, %25 : vector<256x8xf32>
    %27 = vector.extract_strided_slice %1 {offsets = [1, 1, 0], sizes = [16, 16, 4], strides = [1, 1, 1]} : vector<18x18x4xf32> to vector<16x16x4xf32>
    %28 = vector.shape_cast %27 : vector<16x16x4xf32> to vector<256x4xf32>
    %c4 = arith.constant 4 : index
    %c0_16 = arith.constant 0 : index
    %c0_17 = arith.constant 0 : index
    %29 = vector.load %arg2[%c4, %c0_16, %c0_17] : memref<9x4x8xf32, #tpu.memory_space<vmem>>, vector<1x4x8xf32>
    %30 = vector.shape_cast %29 : vector<1x4x8xf32> to vector<4x8xf32>
    %cst_18 = arith.constant dense<0.000000e+00> : vector<256x8xf32>
    %31 = tpu.matmul %28, %30, %cst_18 {dimension_numbers = #tpu.dot_dimension_numbers<[1], [0], [0], [1], [0, 0, 1, 1], [], []>} : vector<256x4xf32>, vector<4x8xf32>, vector<256x8xf32> -> vector<256x8xf32>
    %32 = arith.addf %26, %31 : vector<256x8xf32>
    %33 = vector.extract_strided_slice %1 {offsets = [1, 2, 0], sizes = [16, 16, 4], strides = [1, 1, 1]} : vector<18x18x4xf32> to vector<16x16x4xf32>
    %34 = vector.shape_cast %33 : vector<16x16x4xf32> to vector<256x4xf32>
    %c5 = arith.constant 5 : index
    %c0_19 = arith.constant 0 : index
    %c0_20 = arith.constant 0 : index
    %35 = vector.load %arg2[%c5, %c0_19, %c0_20] : memref<9x4x8xf32, #tpu.memory_space<vmem>>, vector<1x4x8xf32>
    %36 = vector.shape_cast %35 : vector<1x4x8xf32> to vector<4x8xf32>
    %cst_21 = arith.constant dense<0.000000e+00> : vector<256x8xf32>
    %37 = tpu.matmul %34, %36, %cst_21 {dimension_numbers = #tpu.dot_dimension_numbers<[1], [0], [0], [1], [0, 0, 1, 1], [], []>} : vector<256x4xf32>, vector<4x8xf32>, vector<256x8xf32> -> vector<256x8xf32>
    %38 = arith.addf %32, %37 : vector<256x8xf32>
    %39 = vector.extract_strided_slice %1 {offsets = [2, 0, 0], sizes = [16, 16, 4], strides = [1, 1, 1]} : vector<18x18x4xf32> to vector<16x16x4xf32>
    %40 = vector.shape_cast %39 : vector<16x16x4xf32> to vector<256x4xf32>
    %c6 = arith.constant 6 : index
    %c0_22 = arith.constant 0 : index
    %c0_23 = arith.constant 0 : index
    %41 = vector.load %arg2[%c6, %c0_22, %c0_23] : memref<9x4x8xf32, #tpu.memory_space<vmem>>, vector<1x4x8xf32>
    %42 = vector.shape_cast %41 : vector<1x4x8xf32> to vector<4x8xf32>
    %cst_24 = arith.constant dense<0.000000e+00> : vector<256x8xf32>
    %43 = tpu.matmul %40, %42, %cst_24 {dimension_numbers = #tpu.dot_dimension_numbers<[1], [0], [0], [1], [0, 0, 1, 1], [], []>} : vector<256x4xf32>, vector<4x8xf32>, vector<256x8xf32> -> vector<256x8xf32>
    %44 = arith.addf %38, %43 : vector<256x8xf32>
    %45 = vector.extract_strided_slice %1 {offsets = [2, 1, 0], sizes = [16, 16, 4], strides = [1, 1, 1]} : vector<18x18x4xf32> to vector<16x16x4xf32>
    %46 = vector.shape_cast %45 : vector<16x16x4xf32> to vector<256x4xf32>
    %c7 = arith.constant 7 : index
    %c0_25 = arith.constant 0 : index
    %c0_26 = arith.constant 0 : index
    %47 = vector.load %arg2[%c7, %c0_25, %c0_26] : memref<9x4x8xf32, #tpu.memory_space<vmem>>, vector<1x4x8xf32>
    %48 = vector.shape_cast %47 : vector<1x4x8xf32> to vector<4x8xf32>
    %cst_27 = arith.constant dense<0.000000e+00> : vector<256x8xf32>
    %49 = tpu.matmul %46, %48, %cst_27 {dimension_numbers = #tpu.dot_dimension_numbers<[1], [0], [0], [1], [0, 0, 1, 1], [], []>} : vector<256x4xf32>, vector<4x8xf32>, vector<256x8xf32> -> vector<256x8xf32>
    %50 = arith.addf %44, %49 : vector<256x8xf32>
    %51 = vector.extract_strided_slice %1 {offsets = [2, 2, 0], sizes = [16, 16, 4], strides = [1, 1, 1]} : vector<18x18x4xf32> to vector<16x16x4xf32>
    %52 = vector.shape_cast %51 : vector<16x16x4xf32> to vector<256x4xf32>
    %c8 = arith.constant 8 : index
    %c0_28 = arith.constant 0 : index
    %c0_29 = arith.constant 0 : index
    %53 = vector.load %arg2[%c8, %c0_28, %c0_29] : memref<9x4x8xf32, #tpu.memory_space<vmem>>, vector<1x4x8xf32>
    %54 = vector.shape_cast %53 : vector<1x4x8xf32> to vector<4x8xf32>
    %cst_30 = arith.constant dense<0.000000e+00> : vector<256x8xf32>
    %55 = tpu.matmul %52, %54, %cst_30 {dimension_numbers = #tpu.dot_dimension_numbers<[1], [0], [0], [1], [0, 0, 1, 1], [], []>} : vector<256x4xf32>, vector<4x8xf32>, vector<256x8xf32> -> vector<256x8xf32>
    %56 = arith.addf %50, %55 : vector<256x8xf32>
    %c0_31 = arith.constant 0 : index
    %c0_32 = arith.constant 0 : index
    %57 = vector.load %arg3[%c0_31, %c0_32] : memref<1x8xf32, #tpu.memory_space<vmem>>, vector<1x8xf32>
    %58 = vector.broadcast %57 : vector<1x8xf32> to vector<256x8xf32>
    %59 = arith.addf %56, %58 : vector<256x8xf32>
    %60 = tpu.transpose %59, [1, 0] : vector<256x8xf32> -> vector<8x256xf32>
    %c0_33 = arith.constant 0 : index
    %c0_34 = arith.constant 0 : index
    %c0_35 = arith.constant 0 : index
    %61 = vector.load %arg6[%c0_33, %c0_34, %c0_35] : memref<1x8x256xf32, #tpu.memory_space<vmem>>, vector<1x8x256xf32>
    %62 = vector.shape_cast %61 : vector<1x8x256xf32> to vector<8x256xf32>
    %63 = vector.shape_cast %60 : vector<8x256xf32> to vector<1x8x256xf32>
    tpu.vector_store %arg6[%c0_33, %c0_34, %c0_35], %63 {strides = array<i32>} : memref<1x8x256xf32, #tpu.memory_space<vmem>>, vector<1x8x256xf32>,
    %cst_36 = arith.constant 0.000000e+00 : f32
    %64 = vector.broadcast %cst_36 : f32 to vector<18x18x8xf32>
    %c0_37 = arith.constant 0 : index
    %c0_38 = arith.constant 0 : index
    %c0_39 = arith.constant 0 : index
    %65 = vector.load %arg8[%c0_37, %c0_38, %c0_39] : memref<18x18x8xf32, #tpu.memory_space<vmem>>, vector<18x18x8xf32>
    tpu.vector_store %arg8[%c0_37, %c0_38, %c0_39], %64 {strides = array<i32>} : memref<18x18x8xf32, #tpu.memory_space<vmem>>, vector<18x18x8xf32>,
    %cst_40 = arith.constant 0.000000e+00 : f32
    %66 = vector.broadcast %cst_40 : f32 to vector<256x8xf32>
    %67 = arith.maximumf %59, %66 : vector<256x8xf32>
    %68 = vector.shape_cast %67 : vector<256x8xf32> to vector<16x16x8xf32>
    %c1_41 = arith.constant 1 : index
    %c1_42 = arith.constant 1 : index
    %c0_43 = arith.constant 0 : index
    %69 = vector.load %arg8[%c1_41, %c1_42, %c0_43] : memref<18x18x8xf32, #tpu.memory_space<vmem>>, vector<16x16x8xf32>
    tpu.vector_store %arg8[%c1_41, %c1_42, %c0_43], %68 {strides = array<i32>} : memref<18x18x8xf32, #tpu.memory_space<vmem>>, vector<16x16x8xf32>,
    %c0_44 = arith.constant 0 : index
    %c0_45 = arith.constant 0 : index
    %c0_46 = arith.constant 0 : index
    %70 = vector.load %arg8[%c0_44, %c0_45, %c0_46] : memref<18x18x8xf32, #tpu.memory_space<vmem>>, vector<18x18x8xf32>
    %cst_47 = arith.constant 0.000000e+00 : f32
    %71 = vector.broadcast %cst_47 : f32 to vector<256x16xf32>
    %72 = vector.extract_strided_slice %70 {offsets = [0, 0, 0], sizes = [16, 16, 8], strides = [1, 1, 1]} : vector<18x18x8xf32> to vector<16x16x8xf32>
    %73 = vector.shape_cast %72 : vector<16x16x8xf32> to vector<256x8xf32>
    %c0_48 = arith.constant 0 : index
    %c0_49 = arith.constant 0 : index
    %c0_50 = arith.constant 0 : index
    %74 = vector.load %arg4[%c0_48, %c0_49, %c0_50] : memref<9x8x16xf32, #tpu.memory_space<vmem>>, vector<1x8x16xf32>
    %75 = vector.shape_cast %74 : vector<1x8x16xf32> to vector<8x16xf32>
    %cst_51 = arith.constant dense<0.000000e+00> : vector<256x16xf32>
    %76 = tpu.matmul %73, %75, %cst_51 {dimension_numbers = #tpu.dot_dimension_numbers<[1], [0], [0], [1], [0, 0, 1, 1], [], []>} : vector<256x8xf32>, vector<8x16xf32>, vector<256x16xf32> -> vector<256x16xf32>
    %77 = arith.addf %71, %76 : vector<256x16xf32>
    %78 = vector.extract_strided_slice %70 {offsets = [0, 1, 0], sizes = [16, 16, 8], strides = [1, 1, 1]} : vector<18x18x8xf32> to vector<16x16x8xf32>
    %79 = vector.shape_cast %78 : vector<16x16x8xf32> to vector<256x8xf32>
    %c1_52 = arith.constant 1 : index
    %c0_53 = arith.constant 0 : index
    %c0_54 = arith.constant 0 : index
    %80 = vector.load %arg4[%c1_52, %c0_53, %c0_54] : memref<9x8x16xf32, #tpu.memory_space<vmem>>, vector<1x8x16xf32>
    %81 = vector.shape_cast %80 : vector<1x8x16xf32> to vector<8x16xf32>
    %cst_55 = arith.constant dense<0.000000e+00> : vector<256x16xf32>
    %82 = tpu.matmul %79, %81, %cst_55 {dimension_numbers = #tpu.dot_dimension_numbers<[1], [0], [0], [1], [0, 0, 1, 1], [], []>} : vector<256x8xf32>, vector<8x16xf32>, vector<256x16xf32> -> vector<256x16xf32>
    %83 = arith.addf %77, %82 : vector<256x16xf32>
    %84 = vector.extract_strided_slice %70 {offsets = [0, 2, 0], sizes = [16, 16, 8], strides = [1, 1, 1]} : vector<18x18x8xf32> to vector<16x16x8xf32>
    %85 = vector.shape_cast %84 : vector<16x16x8xf32> to vector<256x8xf32>
    %c2_56 = arith.constant 2 : index
    %c0_57 = arith.constant 0 : index
    %c0_58 = arith.constant 0 : index
    %86 = vector.load %arg4[%c2_56, %c0_57, %c0_58] : memref<9x8x16xf32, #tpu.memory_space<vmem>>, vector<1x8x16xf32>
    %87 = vector.shape_cast %86 : vector<1x8x16xf32> to vector<8x16xf32>
    %cst_59 = arith.constant dense<0.000000e+00> : vector<256x16xf32>
    %88 = tpu.matmul %85, %87, %cst_59 {dimension_numbers = #tpu.dot_dimension_numbers<[1], [0], [0], [1], [0, 0, 1, 1], [], []>} : vector<256x8xf32>, vector<8x16xf32>, vector<256x16xf32> -> vector<256x16xf32>
    %89 = arith.addf %83, %88 : vector<256x16xf32>
    %90 = vector.extract_strided_slice %70 {offsets = [1, 0, 0], sizes = [16, 16, 8], strides = [1, 1, 1]} : vector<18x18x8xf32> to vector<16x16x8xf32>
    %91 = vector.shape_cast %90 : vector<16x16x8xf32> to vector<256x8xf32>
    %c3_60 = arith.constant 3 : index
    %c0_61 = arith.constant 0 : index
    %c0_62 = arith.constant 0 : index
    %92 = vector.load %arg4[%c3_60, %c0_61, %c0_62] : memref<9x8x16xf32, #tpu.memory_space<vmem>>, vector<1x8x16xf32>
    %93 = vector.shape_cast %92 : vector<1x8x16xf32> to vector<8x16xf32>
    %cst_63 = arith.constant dense<0.000000e+00> : vector<256x16xf32>
    %94 = tpu.matmul %91, %93, %cst_63 {dimension_numbers = #tpu.dot_dimension_numbers<[1], [0], [0], [1], [0, 0, 1, 1], [], []>} : vector<256x8xf32>, vector<8x16xf32>, vector<256x16xf32> -> vector<256x16xf32>
    %95 = arith.addf %89, %94 : vector<256x16xf32>
    %96 = vector.extract_strided_slice %70 {offsets = [1, 1, 0], sizes = [16, 16, 8], strides = [1, 1, 1]} : vector<18x18x8xf32> to vector<16x16x8xf32>
    %97 = vector.shape_cast %96 : vector<16x16x8xf32> to vector<256x8xf32>
    %c4_64 = arith.constant 4 : index
    %c0_65 = arith.constant 0 : index
    %c0_66 = arith.constant 0 : index
    %98 = vector.load %arg4[%c4_64, %c0_65, %c0_66] : memref<9x8x16xf32, #tpu.memory_space<vmem>>, vector<1x8x16xf32>
    %99 = vector.shape_cast %98 : vector<1x8x16xf32> to vector<8x16xf32>
    %cst_67 = arith.constant dense<0.000000e+00> : vector<256x16xf32>
    %100 = tpu.matmul %97, %99, %cst_67 {dimension_numbers = #tpu.dot_dimension_numbers<[1], [0], [0], [1], [0, 0, 1, 1], [], []>} : vector<256x8xf32>, vector<8x16xf32>, vector<256x16xf32> -> vector<256x16xf32>
    %101 = arith.addf %95, %100 : vector<256x16xf32>
    %102 = vector.extract_strided_slice %70 {offsets = [1, 2, 0], sizes = [16, 16, 8], strides = [1, 1, 1]} : vector<18x18x8xf32> to vector<16x16x8xf32>
    %103 = vector.shape_cast %102 : vector<16x16x8xf32> to vector<256x8xf32>
    %c5_68 = arith.constant 5 : index
    %c0_69 = arith.constant 0 : index
    %c0_70 = arith.constant 0 : index
    %104 = vector.load %arg4[%c5_68, %c0_69, %c0_70] : memref<9x8x16xf32, #tpu.memory_space<vmem>>, vector<1x8x16xf32>
    %105 = vector.shape_cast %104 : vector<1x8x16xf32> to vector<8x16xf32>
    %cst_71 = arith.constant dense<0.000000e+00> : vector<256x16xf32>
    %106 = tpu.matmul %103, %105, %cst_71 {dimension_numbers = #tpu.dot_dimension_numbers<[1], [0], [0], [1], [0, 0, 1, 1], [], []>} : vector<256x8xf32>, vector<8x16xf32>, vector<256x16xf32> -> vector<256x16xf32>
    %107 = arith.addf %101, %106 : vector<256x16xf32>
    %108 = vector.extract_strided_slice %70 {offsets = [2, 0, 0], sizes = [16, 16, 8], strides = [1, 1, 1]} : vector<18x18x8xf32> to vector<16x16x8xf32>
    %109 = vector.shape_cast %108 : vector<16x16x8xf32> to vector<256x8xf32>
    %c6_72 = arith.constant 6 : index
    %c0_73 = arith.constant 0 : index
    %c0_74 = arith.constant 0 : index
    %110 = vector.load %arg4[%c6_72, %c0_73, %c0_74] : memref<9x8x16xf32, #tpu.memory_space<vmem>>, vector<1x8x16xf32>
    %111 = vector.shape_cast %110 : vector<1x8x16xf32> to vector<8x16xf32>
    %cst_75 = arith.constant dense<0.000000e+00> : vector<256x16xf32>
    %112 = tpu.matmul %109, %111, %cst_75 {dimension_numbers = #tpu.dot_dimension_numbers<[1], [0], [0], [1], [0, 0, 1, 1], [], []>} : vector<256x8xf32>, vector<8x16xf32>, vector<256x16xf32> -> vector<256x16xf32>
    %113 = arith.addf %107, %112 : vector<256x16xf32>
    %114 = vector.extract_strided_slice %70 {offsets = [2, 1, 0], sizes = [16, 16, 8], strides = [1, 1, 1]} : vector<18x18x8xf32> to vector<16x16x8xf32>
    %115 = vector.shape_cast %114 : vector<16x16x8xf32> to vector<256x8xf32>
    %c7_76 = arith.constant 7 : index
    %c0_77 = arith.constant 0 : index
    %c0_78 = arith.constant 0 : index
    %116 = vector.load %arg4[%c7_76, %c0_77, %c0_78] : memref<9x8x16xf32, #tpu.memory_space<vmem>>, vector<1x8x16xf32>
    %117 = vector.shape_cast %116 : vector<1x8x16xf32> to vector<8x16xf32>
    %cst_79 = arith.constant dense<0.000000e+00> : vector<256x16xf32>
    %118 = tpu.matmul %115, %117, %cst_79 {dimension_numbers = #tpu.dot_dimension_numbers<[1], [0], [0], [1], [0, 0, 1, 1], [], []>} : vector<256x8xf32>, vector<8x16xf32>, vector<256x16xf32> -> vector<256x16xf32>
    %119 = arith.addf %113, %118 : vector<256x16xf32>
    %120 = vector.extract_strided_slice %70 {offsets = [2, 2, 0], sizes = [16, 16, 8], strides = [1, 1, 1]} : vector<18x18x8xf32> to vector<16x16x8xf32>
    %121 = vector.shape_cast %120 : vector<16x16x8xf32> to vector<256x8xf32>
    %c8_80 = arith.constant 8 : index
    %c0_81 = arith.constant 0 : index
    %c0_82 = arith.constant 0 : index
    %122 = vector.load %arg4[%c8_80, %c0_81, %c0_82] : memref<9x8x16xf32, #tpu.memory_space<vmem>>, vector<1x8x16xf32>
    %123 = vector.shape_cast %122 : vector<1x8x16xf32> to vector<8x16xf32>
    %cst_83 = arith.constant dense<0.000000e+00> : vector<256x16xf32>
    %124 = tpu.matmul %121, %123, %cst_83 {dimension_numbers = #tpu.dot_dimension_numbers<[1], [0], [0], [1], [0, 0, 1, 1], [], []>} : vector<256x8xf32>, vector<8x16xf32>, vector<256x16xf32> -> vector<256x16xf32>
    %125 = arith.addf %119, %124 : vector<256x16xf32>
    %c0_84 = arith.constant 0 : index
    %c0_85 = arith.constant 0 : index
    %126 = vector.load %arg5[%c0_84, %c0_85] : memref<1x16xf32, #tpu.memory_space<vmem>>, vector<1x16xf32>
    %127 = vector.broadcast %126 : vector<1x16xf32> to vector<256x16xf32>
    %128 = arith.addf %125, %127 : vector<256x16xf32>
    %129 = tpu.transpose %128, [1, 0] : vector<256x16xf32> -> vector<16x256xf32>
    %c0_86 = arith.constant 0 : index
    %c0_87 = arith.constant 0 : index
    %c0_88 = arith.constant 0 : index
    %130 = vector.load %arg7[%c0_86, %c0_87, %c0_88] : memref<1x16x256xf32, #tpu.memory_space<vmem>>, vector<1x16x256xf32>
    %131 = vector.shape_cast %130 : vector<1x16x256xf32> to vector<16x256xf32>
    %132 = vector.shape_cast %129 : vector<16x256xf32> to vector<1x16x256xf32>
    tpu.vector_store %arg7[%c0_86, %c0_87, %c0_88], %132 {strides = array<i32>} : memref<1x16x256xf32, #tpu.memory_space<vmem>>, vector<1x16x256xf32>,
    return
  }
  func.func @transform_0(%arg0: i32) -> (i32, i32, i32, i32) {
    %c0_i32 = arith.constant 0 : i32
    %c0_i32_0 = arith.constant 0 : i32
    %c0_i32_1 = arith.constant 0 : i32
    %c0_i32_2 = arith.constant 0 : i32
    return %arg0, %c0_i32, %c0_i32_0, %c0_i32_1 : i32, i32, i32, i32
  }
  func.func @transform_1(%arg0: i32) -> (i32, i32, i32) {
    %c0_i32 = arith.constant 0 : i32
    %c0_i32_0 = arith.constant 0 : i32
    %c0_i32_1 = arith.constant 0 : i32
    %c0_i32_2 = arith.constant 0 : i32
    return %c0_i32, %c0_i32_0, %c0_i32_1 : i32, i32, i32
  }
  func.func @transform_2(%arg0: i32) -> (i32, i32) {
    %c0_i32 = arith.constant 0 : i32
    %c0_i32_0 = arith.constant 0 : i32
    %c0_i32_1 = arith.constant 0 : i32
    return %c0_i32, %c0_i32_0 : i32, i32
  }
  func.func @transform_3(%arg0: i32) -> (i32, i32, i32) {
    %c0_i32 = arith.constant 0 : i32
    %c0_i32_0 = arith.constant 0 : i32
    %c0_i32_1 = arith.constant 0 : i32
    %c0_i32_2 = arith.constant 0 : i32
    return %c0_i32, %c0_i32_0, %c0_i32_1 : i32, i32, i32
  }
  func.func @transform_4(%arg0: i32) -> (i32, i32) {
    %c0_i32 = arith.constant 0 : i32
    %c0_i32_0 = arith.constant 0 : i32
    %c0_i32_1 = arith.constant 0 : i32
    return %c0_i32, %c0_i32_0 : i32, i32
  }
  func.func @transform_5(%arg0: i32) -> (i32, i32, i32) {
    %c0_i32 = arith.constant 0 : i32
    %c0_i32_0 = arith.constant 0 : i32
    %c0_i32_1 = arith.constant 0 : i32
    return %arg0, %c0_i32, %c0_i32_0 : i32, i32, i32
  }
  func.func @transform_6(%arg0: i32) -> (i32, i32, i32) {
    %c0_i32 = arith.constant 0 : i32
    %c0_i32_0 = arith.constant 0 : i32
    %c0_i32_1 = arith.constant 0 : i32
    return %arg0, %c0_i32, %c0_i32_0 : i32, i32, i32
  }
}

</mosaic_0001>

<bundles_post_ra>
// kernel: _hcnn_fused_forward.1
= control target key start
LH: loop header
LB: loop body
LE: loop exit
PB: predicated region body
PF: predicated region fallthrough
CT: control target
= control target key end

     0   :  { %12 = vsyncpa [#allocation4], 0  ;;  %s11580_s0 = inlined_call_operand.vmem [shape: f32[2,18,18,4], index: 0, kind: input, shape index: {}]   ;;  %s11581_s1 = inlined_call_operand.vmem [shape: f32[9,4,8], index: 1, kind: input, shape index: {}]   ;;  %s11582_s2 = inlined_call_operand.vmem [shape: f32[1,8], index: 2, kind: input, shape index: {}]   ;;  %s11583_s3 = inlined_call_operand.vmem [shape: f32[9,8,16], index: 3, kind: input, shape index: {}]   ;;  %s11584_s4 = inlined_call_operand.vmem [shape: f32[1,16], index: 4, kind: input, shape index: {}]   ;;  %s11585_s5 = inlined_call_operand.hbm [shape: f32[2,8,256], index: 5, kind: output, shape index: {0}]   ;;  %s11586_s6 = inlined_call_operand.hbm [shape: f32[2,16,256], index: 6, kind: output, shape index: {1}]  }
   0x1   :  { %14 = vsyncpa [#allocation4 + $0x1], 0 }
   0x2   :  { %15 = vsyncpa [#allocation6], 0 }
   0x3   :  { %17 = vsyncpa [#allocation6 + $0x1], 0  ;;  %s9106_s21 = smov 0   ;;  %s9108_s22 = smov 0  }
   0x4   :  { %s9110_s23 = smov 0   ;;  %s9112_s24 = smov 0  }
   0x5 LB: > { %s9127_s25 = sadd.s32 4294967295, %s9064_s24   ;;  %s6292_s26 = sadd.s32 4294967294, %s9064_s24   ;;  %s9064_s24 = sphi %s9112_s24, %s11947_s24   ;;  %s9060_s23 = sphi %s9110_s23, %s11946_s23   ;;  %s9056_s22 = sphi %s9108_s22, %s11945_s22   ;;  %s9052_s21 = sphi %s9106_s21, %s11944_s21  }
   0x6   : > { %s9131_s27 = sadd.s32 1, %s9064_s24   ;;  %s140_s28 = sadd.s32 1, %s9060_s23 }
   0x7   : > { %s137_s29 = ssub.s32 %s9064_s24, %s9131_s27  ;;  %p150_p0 = scmp.ne.s32.totalorder %s9060_s23, %s9056_s22 }
   0x8   : > { %p138_p1 = scmp.eq.s32.totalorder %s137_s29, 0  ;;  %p151_p2 = scmp.eq.s32.totalorder %s9127_s25, 1 }
   0x9   : > { %p156_p3 = scmp.ne.s32.totalorder %s9056_s22, %s9052_s21  ;;  %p157_p4 = scmp.eq.s32.totalorder %s6292_s26, 1 }
   0xa   : > { %s9142_s30 = scalar_select %p138_p1, %s9060_s23, %s140_s28  }
   0xb   : > { %p9144_p5 = por %p151_p2, %p150_p0  ;;  %p9148_p6 = por %p157_p4, %p156_p3 }
   0xc   : > { %p6295_p7 = scmp.ge.s32.totalorder %s9064_s24, 1  ;;  %p221_p8 = scmp.lt.s32.totalorder %s9064_s24, 3 }
   0xe   : > { %p222_p9 = pnand %p6295_p7, %p221_p8 }
  0x10   : > { %225 = sbr.rel (%p222_p9) target bundleno = 1690 (0x69a), region = 40 }
  0x17   : > { %v6299_v0 = vld [vmem:[%s11581_s1 + $0x4] sm:$0xf]  ;;  %vm512_vm0 = vcmask 1043456   ;;  %p256_p10 = scmp.lt.s32.totalorder %s9127_s25, 1  ;;  %v315_v1 = vld [vmem:[%s11581_s1] sm:$0xf] }
  0x18   : > { %7506 = vmatprep.subr.msk.mxu0 %vm512_vm0, %v6299_v0  ;;  %vm364_vm1 = vcmask 1046528   ;;  %vm447_vm2 = vcmask 31744   ;;  %v9220_v24 = vld [vmem:[%s11581_s1 + $0x8] sm:$0xf]  ;;  %vm1033_vm3 = vcmask 1045504   ;;  %vm3167_vm4 = vcmask 64512  }
  0x19   : > { %7507 = vmatpush3.msk.msra.mxu0 %vm512_vm0, %v6299_v0  ;;  %s257_s13 = scalar_select %p256_p10, %s9127_s25, 1  ;;  %vm3170_vm5 = vcmask 58368  }
  0x1a   : > { %7556 = vmatprep.subr.msk.mxu0 %vm512_vm0, %v315_v1  ;;  %s11447_s28 = sand.u32 1, %s9056_s22   ;;  %s9067_s19 = smov [#allocation3]  }
  0x1b   : > { %s8918_s14 = smul.u32 432, %s257_s13  ;;  %s6296_s29 = sshll.u32 %s11447_s28, 4 }
  0x1c   : > { %s11450_s9 = scalar_lea.vmem [#allocation3], %s6296_s29  ;;  %s6910_s13 = sshll.u32 %s9127_s25, 8 }
  0x1d   : > { %s9168_s17 = scalar_lea.vmem %s11580_s0, %s8918_s14  ;;  %s6185_s12 = sshll.u32 %s11450_s9, 4  ;;  %s11482_s12 = int_to_ptr.vmem [resolvable:$true] %s6185_s12 }
  0x1e   : > { %v9171_v2 = vld [vmem:[%s9168_s17] sm:$0xff]  ;;  %v9174_v3 = vld [vmem:[%s9168_s17 + $0x8] sm:$0xff]  ;;  %v9177_v4 = vld [vmem:[%s9168_s17 + $0x10] sm:$0x3]  ;;  %s6183_s16 = scalar_lea.hbm %s11585_s5, %s6910_s13  ;;  %s8970_s18 = scalar_lea.vmem %s11482_s12, 256 }
  0x1f   : > { %v365_v5 = vrot.slane %v9171_v2, 1  ;;  %v366_v6 = vrot.slane %v9174_v3, 1  ;;  %v368_v7 = vrot.slane %v9177_v4, 1  ;;  %v9183_v8 = vld [vmem:[%s9168_s17 + $0x18] sm:$0xff]  ;;  %v9186_v9 = vld [vmem:[%s9168_s17 + $0x20] sm:$0xff]  ;;  %v9194_v13 = vld [vmem:[%s9168_s17 + $0x30] sm:$0xff]  ;;  %p8971_p11 = scmp.ne.s32.totalorder %s11482_s12, %s8970_s18 }
  0x20   : > { %v370_v10 = vrot.slane %v9183_v8, 1  ;;  %v371_v11 = vrot.slane %v9186_v9, 1  ;;  %v9191_v12 = vld [vmem:[%s9168_s17 + $0x28] sm:$0x3]  ;;  %v9197_v14 = vld [vmem:[%s9168_s17 + $0x38] sm:$0xff]  ;;  %v375_v18 = vrot.slane %v9194_v13, 1 }
  0x21   : > { %v367_v15 = vsel %vm364_vm1, %v365_v5, %v366_v6  ;;  %v369_v16 = vsel %vm364_vm1, %v366_v6, %v368_v7  ;;  %v373_v17 = vrot.slane %v9191_v12, 1  ;;  %v9204_v19 = vld [vmem:[%s9168_s17 + $0x40] sm:$0x3]  ;;  %v376_v21 = vrot.slane %v9197_v14, 1  ;;  %v9212_v22 = vld [vmem:[%s9168_s17 + $0x48] sm:$0xff]  ;;  %v9215_v23 = vld [vmem:[%s9168_s17 + $0x50] sm:$0xff]  ;;  %p8972_p12 = pnand %p8971_p11, %p9144_p5 }
  0x22   : > { %7508 = vmatprep.mubr.msk.f32.mxu0 %vm447_vm2, %v367_v15  ;;  %v9208_v20 = vsel %vm364_vm1, %v370_v10, %v371_v11  ;;  %v378_v26 = vrot.slane %v9204_v19, 1  ;;  %v380_v28 = vrot.slane %v9212_v22, 1  ;;  %v381_v29 = vrot.slane %v9215_v23, 1  ;;  %v9236_v30 = vld [vmem:[%s9168_s17 + $0x58] sm:$0x3]  ;;  %v9241_v31 = vld [vmem:[%s9168_s17 + $0x60] sm:$0xff] }
  0x23   : > { %7509 = vmatmul.mubr.msk.f32.vlgmr.msra.gmra.mrb[0].mxu0 %vm447_vm2, %v369_v16  ;;  %v9227_v25 = vsel %vm364_vm1, %v371_v11, %v373_v17  ;;  %v9231_v27 = vsel %vm364_vm1, %v375_v18, %v376_v21  ;;  %v9244_v32 = vld [vmem:[%s9168_s17 + $0x68] sm:$0xff]  ;;  %v383_v34 = vrot.slane %v9236_v30, 1  ;;  %v385_v36 = vrot.slane %v9241_v31, 1  ;;  %v9260_v38 = vld [vmem:[%s9168_s17 + $0x70] sm:$0x3]  ;;  %v9263_v39 = vld [vmem:[%s9168_s17 + $0x78] sm:$0xff]  ;;  %p8973_p13 = pneg %p8972_p12 }
  0x24   : > { %7557 = vmatpush3.msk.msra.mxu0 %vm512_vm0, %v315_v1  ;;  %7511 = vmatprep.mubr.msk.f32.mxu0 %vm447_vm2, %v9208_v20  ;;  %v9251_v33 = vsel %vm364_vm1, %v376_v21, %v378_v26  ;;  %v9255_v35 = vsel %vm364_vm1, %v380_v28, %v381_v29  ;;  %v386_v37 = vrot.slane %v9244_v32, 1  ;;  %v9266_v40 = vld [vmem:[%s9168_s17 + $0x80] sm:$0xff]  ;;  %v388_v42 = vrot.slane %v9260_v38, 1  ;;  %v9282_v46 = vld [vmem:[%s9168_s17 + $0x88] sm:$0x3]  ;;  %v9285_v47 = vld [vmem:[%s9168_s17 + $0x90] sm:$0xff] }
  0x25   : > { %7606 = vmatprep.subr.msk.mxu0 %vm512_vm0, %v9220_v24  ;;  %11736 = vst [vmem:[#allocation9_spill] sm:$0xff] %v9255_v35  ;;  %v9273_v41 = vsel %vm364_vm1, %v381_v29, %v383_v34  ;;  %v390_v44 = vrot.slane %v9263_v39, 1  ;;  %v391_v45 = vrot.slane %v9266_v40, 1  ;;  %v9288_v48 = vld [vmem:[%s9168_s17 + $0x98] sm:$0xff]  ;;  %v393_v50 = vrot.slane %v9282_v46, 1  ;;  %v9307_v55 = vld [vmem:[%s9168_s17 + $0xa8] sm:$0xff] }
  0x26   : > { %11737 = vst [vmem:[#allocation10_spill] sm:$0xff] %v9273_v41  ;;  %v9277_v43 = vsel %vm364_vm1, %v385_v36, %v386_v37  ;;  %v9295_v49 = vsel %vm364_vm1, %v386_v37, %v388_v42  ;;  %v395_v52 = vrot.slane %v9285_v47, 1  ;;  %v396_v53 = vrot.slane %v9288_v48, 1  ;;  %v9304_v54 = vld [vmem:[%s9168_s17 + $0xa0] sm:$0x3]  ;;  %v9310_v56 = vld [vmem:[%s9168_s17 + $0xb0] sm:$0xff] }
  0x27   : > { %7512 = vmatmul.mubr.msk.f32.gmra.mrb[2].mxu0 %vm447_vm2, %v9227_v25  ;;  %11738 = vst [vmem:[#allocation11_spill] sm:$0xff] %v9277_v43  ;;  %11739 = vst [vmem:[#allocation12_spill] sm:$0xff] %v9295_v49  ;;  %v9299_v51 = vsel %vm364_vm1, %v390_v44, %v391_v45  ;;  %v9317_v57 = vsel %vm364_vm1, %v391_v45, %v393_v50  ;;  %v398_v58 = vrot.slane %v9304_v54, 1  ;;  %v400_v60 = vrot.slane %v9307_v55, 1  ;;  %v9326_v62 = vld [vmem:[%s9168_s17 + $0xb8] sm:$0x3] }
  0x28   : > { %7514 = vmatprep.mubr.msk.f32.mxu0 %vm447_vm2, %v9231_v27  ;;  %11740 = vst [vmem:[#allocation13_spill] sm:$0xff] %v9299_v51  ;;  %11741 = vst [vmem:[#allocation14_spill] sm:$0xff] %v9317_v57  ;;  %v9321_v59 = vsel %vm364_vm1, %v395_v52, %v396_v53  ;;  %v401_v61 = vrot.slane %v9310_v56, 1  ;;  %v9329_v63 = vld [vmem:[%s9168_s17 + $0xc0] sm:$0xff]  ;;  %v9332_v0 = vld [vmem:[%s9168_s17 + $0xc8] sm:$0xff]  ;;  %v403_v5 = vrot.slane %v9326_v62, 1 }
  0x29   : > { %11742 = vst [vmem:[#allocation15_spill] sm:$0xff] %v9321_v59  ;;  %v9339_v1 = vsel %vm364_vm1, %v396_v53, %v398_v58  ;;  %v405_v7 = vrot.slane %v9329_v63, 1  ;;  %v406_v10 = vrot.slane %v9332_v0, 1  ;;  %v9348_v11 = vld [vmem:[%s9168_s17 + $0xd0] sm:$0x3]  ;;  %v9351_v15 = vld [vmem:[%s9168_s17 + $0xd8] sm:$0xff] }
  0x2a   : > { %11743 = vst [vmem:[#allocation16_spill] sm:$0xff] %v9339_v1  ;;  %v9343_v6 = vsel %vm364_vm1, %v400_v60, %v401_v61  ;;  %v9354_v16 = vld [vmem:[%s9168_s17 + $0xe0] sm:$0xff]  ;;  %v9361_v17 = vsel %vm364_vm1, %v401_v61, %v403_v5  ;;  %v408_v18 = vrot.slane %v9348_v11, 1  ;;  %v410_v26 = vrot.slane %v9351_v15, 1  ;;  %v9370_v29 = vld [vmem:[%s9168_s17 + $0xe8] sm:$0x3] }
  0x2b   : > { %7515 = vmatmul.mubr.msk.f32.gmra.mrb[4].mxu0 %vm447_vm2, %v9251_v33  ;;  %11744 = vst [vmem:[#allocation17_spill] sm:$0xff] %v9343_v6  ;;  %11745 = vst [vmem:[#allocation18_spill] sm:$0xff] %v9361_v17  ;;  %v9365_v21 = vsel %vm364_vm1, %v405_v7, %v406_v10  ;;  %v411_v28 = vrot.slane %v9354_v16, 1  ;;  %v9373_v34 = vld [vmem:[%s9168_s17 + $0xf0] sm:$0xff]  ;;  %v9376_v36 = vld [vmem:[%s9168_s17 + $0xf8] sm:$0xff]  ;;  %v413_v42 = vrot.slane %v9370_v29, 1 }
  0x2c   : > { %7517 = vmatprep.mubr.msk.f32.mxu0 %vm447_vm2, %v9255_v35  ;;  %11746 = vst [vmem:[#allocation19_spill] sm:$0xff] %v9365_v21  ;;  %v9383_v37 = vsel %vm364_vm1, %v406_v10, %v408_v18  ;;  %v415_v45 = vrot.slane %v9373_v34, 1  ;;  %v416_v50 = vrot.slane %v9376_v36, 1  ;;  %v9392_v52 = vld [vmem:[%s9168_s17 + $0x100] sm:$0x3]  ;;  %v9395_v53 = vld [vmem:[%s9168_s17 + $0x108] sm:$0xff] }
  0x2d   : > { %11747 = vst [vmem:[#allocation20_spill] sm:$0xff] %v9383_v37  ;;  %v9387_v44 = vsel %vm364_vm1, %v410_v26, %v411_v28  ;;  %v9398_v58 = vld [vmem:[%s9168_s17 + $0x110] sm:$0xff]  ;;  %v9405_v60 = vsel %vm364_vm1, %v411_v28, %v413_v42  ;;  %v418_v61 = vrot.slane %v9392_v52, 1  ;;  %v420_v7 = vrot.slane %v9395_v53, 1  ;;  %v9414_v18 = vld [vmem:[%s9168_s17 + $0x118] sm:$0x3] }
  0x2e   : > { %11748 = vst [vmem:[#allocation21_spill] sm:$0xff] %v9387_v44  ;;  %11749 = vst [vmem:[#allocation22_spill] sm:$0xff] %v9405_v60  ;;  %v9409_v5 = vsel %vm364_vm1, %v415_v45, %v416_v50  ;;  %v421_v10 = vrot.slane %v9398_v58, 1  ;;  %v9417_v26 = vld [vmem:[%s9168_s17 + $0x120] sm:$0xff]  ;;  %v423_v42 = vrot.slane %v9414_v18, 1  ;;  %s8974_s20 = sshll.u32 %s9067_s19, 4  ;;  %s8975_s20 = int_to_ptr.vmem [resolvable:$false] %s8974_s20 }
  0x2f   : > { %7518 = vmatmul.mubr.msk.f32.gmra.mrb[6].mxu0 %vm447_vm2, %v9273_v41  ;;  %11750 = vst [vmem:[#allocation23_spill] sm:$0xff] %v9409_v5  ;;  %v9427_v28 = vsel %vm364_vm1, %v416_v50, %v418_v61  ;;  %v9502_v35 = vld [vmem:[%s9168_s17 + $0x178] sm:$0x3]  ;;  %s8976_s26 = scalar_lea.vmem %s8975_s20, 512  ;;  %p8977_p0 = scmp.lt.s32.totalorder %s11482_s12, %s8975_s20 }
  0x30   : > { %7520 = vmatprep.mubr.msk.f32.mxu0 %vm447_vm2, %v9277_v43  ;;  %11751 = vst [vmem:[#allocation24_spill] sm:$0xff] %v9427_v28  ;;  %v9431_v45 = vsel %vm364_vm1, %v420_v7, %v421_v10  ;;  %v9449_v50 = vsel %vm364_vm1, %v421_v10, %v423_v42  ;;  %v9483_v43 = vld [vmem:[%s9168_s17 + $0x168] sm:$0xff]  ;;  %p8978_p1 = scmp.lt.s32.totalorder %s8976_s26, %s8970_s18 }
  0x31   : > { %11752 = vst [vmem:[#allocation25_spill] sm:$0xff] %v9431_v45  ;;  %11753 = vst [vmem:[#allocation26_spill] sm:$0xff] %v9449_v50 }
  0x32   : > { %p8979_p2 = por %p8978_p1, %p8977_p0 }
  0x33   : > { %7521 = vmatmul.mubr.msk.f32.gmra.mrb[8].mxu0 %vm447_vm2, %v9295_v49  ;;  %v9480_v49 = vld [vmem:[%s9168_s17 + $0x160] sm:$0x3] }
  0x34   : > { %7523 = vmatprep.mubr.msk.f32.mxu0 %vm447_vm2, %v9299_v51  ;;  %p8980_p3 = pnand %p8979_p2, %p8973_p13 }
  0x37   : > { %7524 = vmatmul.mubr.msk.f32.gmra.mrb[10].mxu0 %vm447_vm2, %v9317_v57 }
  0x38   : > { %7526 = vmatprep.mubr.msk.f32.mxu0 %vm447_vm2, %v9321_v59  ;;  %v9458_v59 = vld [vmem:[%s9168_s17 + $0x148] sm:$0x3] }
  0x39   : > { %v433_v10 = vrot.slane %v9458_v59, 1 }
  0x3b   : > { %7527 = vmatmul.mubr.msk.f32.gmra.mrb[12].mxu0 %vm447_vm2, %v9339_v1 }
  0x3c   : > { %7529 = vmatprep.mubr.msk.f32.mxu0 %vm447_vm2, %v9343_v6 }
  0x3f   : > { %7530 = vmatmul.mubr.msk.f32.gmra.mrb[14].mxu0 %vm447_vm2, %v9361_v17  ;;  %v9436_v17 = vld [vmem:[%s9168_s17 + $0x130] sm:$0x3] }
  0x40   : > { %7532 = vmatprep.mubr.msk.f32.mxu0 %vm447_vm2, %v9365_v21  ;;  %v428_v61 = vrot.slane %v9436_v17, 1 }
  0x43   : > { %7533 = vmatmul.mubr.msk.f32.gmra.mrb[16].mxu0 %vm447_vm2, %v9383_v37  ;;  %v425_v37 = vrot.slane %v9417_v26, 1 }
  0x44   : > { %7535 = vmatprep.mubr.msk.f32.mxu0 %vm447_vm2, %v9387_v44  ;;  %v9420_v44 = vld [vmem:[%s9168_s17 + $0x128] sm:$0xff] }
  0x45   : > { %v426_v21 = vrot.slane %v9420_v44, 1 }
  0x47   : > { %7536 = vmatmul.mubr.msk.f32.gmra.mrb[18].mxu0 %vm447_vm2, %v9405_v60  ;;  %v9439_v60 = vld [vmem:[%s9168_s17 + $0x138] sm:$0xff]  ;;  %v9453_v7 = vsel %vm364_vm1, %v425_v37, %v426_v21  ;;  %v9471_v37 = vsel %vm364_vm1, %v426_v21, %v428_v61 }
  0x48   : > { %7538 = vmatprep.mubr.msk.f32.mxu0 %vm447_vm2, %v9409_v5  ;;  %v9442_v5 = vld [vmem:[%s9168_s17 + $0x140] sm:$0xff]  ;;  %11754 = vst [vmem:[#allocation27_spill] sm:$0xff] %v9453_v7  ;;  %v430_v6 = vrot.slane %v9439_v60, 1  ;;  %11755 = vst [vmem:[#allocation28_spill] sm:$0xff] %v9471_v37 }
  0x49   : > { %v431_v1 = vrot.slane %v9442_v5, 1 }
  0x4b   : > { %7539 = vmatmul.mubr.msk.f32.gmra.mrb[20].mxu0 %vm447_vm2, %v9427_v28  ;;  %v9461_v28 = vld [vmem:[%s9168_s17 + $0x150] sm:$0xff]  ;;  %v9475_v42 = vsel %vm364_vm1, %v430_v6, %v431_v1  ;;  %v9493_v21 = vsel %vm364_vm1, %v431_v1, %v433_v10  ;;  %v438_v6 = vrot.slane %v9480_v49, 1  ;;  %v443_v10 = vrot.slane %v9502_v35, 1 }
  0x4c   : > { %7541 = vmatprep.mubr.msk.f32.mxu0 %vm447_vm2, %v9431_v45  ;;  %v9464_v45 = vld [vmem:[%s9168_s17 + $0x158] sm:$0xff]  ;;  %11756 = vst [vmem:[#allocation29_spill] sm:$0xff] %v9475_v42  ;;  %v435_v57 = vrot.slane %v9461_v28, 1 }
  0x4d   : > { %v436_v51 = vrot.slane %v9464_v45, 1 }
  0x4f   : > { %7542 = vmatmul.mubr.msk.f32.gmra.mrb[22].mxu0 %vm447_vm2, %v9449_v50  ;;  %v9486_v50 = vld [vmem:[%s9168_s17 + $0x170] sm:$0xff]  ;;  %v9497_v61 = vsel %vm364_vm1, %v435_v57, %v436_v51  ;;  %v9509_v1 = vsel %vm364_vm1, %v436_v51, %v438_v6  ;;  %v6400_v51 = vld [vmem:[%s11581_s1 + $0xc] sm:$0xf] }
  0x50   : > { %7544 = vmatprep.mubr.msk.f32.mxu0 %vm447_vm2, %v9453_v7  ;;  %11757 = vst [vmem:[#allocation30_spill] sm:$0xff] %v9497_v61  ;;  %v440_v7 = vrot.slane %v9483_v43, 1  ;;  %v441_v41 = vrot.slane %v9486_v50, 1  ;;  %11758 = vst [vmem:[#allocation31_spill] sm:$0xff] %v9509_v1 }
  0x52   : > { %v9513_v57 = vsel %vm364_vm1, %v440_v7, %v441_v41  ;;  %v1037_v7 = vrot.slane %v9177_v4, 2 }
  0x53   : > { %7545 = vmatmul.mubr.msk.f32.gmra.mrb[24].mxu0 %vm447_vm2, %v9471_v37  ;;  %11759 = vst [vmem:[#allocation32_spill] sm:$0xff] %v9513_v57 }
  0x54   : > { %7547 = vmatprep.mubr.msk.f32.mxu0 %vm447_vm2, %v9475_v42  ;;  %v9520_v42 = vsel %vm364_vm1, %v441_v41, %v443_v10  ;;  %v1035_v41 = vrot.slane %v9174_v3, 2  ;;  %v1039_v10 = vrot.slane %v9183_v8, 2 }
  0x55   : > { %11760 = vst [vmem:[#allocation33_spill] sm:$0xff] %v9520_v42 }
  0x57   : > { %7548 = vmatmul.mubr.msk.f32.gmra.mrb[26].mxu0 %vm447_vm2, %v9493_v21 }
  0x58   : > { %7550 = vmatprep.mubr.msk.f32.mxu0 %vm447_vm2, %v9497_v61 }
  0x5b   : > { %7551 = vmatmul.mubr.msk.f32.gmra.mrb[28].mxu0 %vm447_vm2, %v9509_v1  ;;  %v9611_v1 = vld [vmem:[%s11581_s1 + $0x10] sm:$0xf] }
  0x5c   : > { %7553 = vmatprep.mubr.msk.f32.mxu0 %vm447_vm2, %v9513_v57  ;;  %v1044_v57 = vrot.slane %v9194_v13, 2 }
  0x5f   : > { %7554 = vmatmul.mubr.msk.f32.gmra.mrb[30].mxu0 %vm447_vm2, %v9520_v42  ;;  %v1040_v42 = vrot.slane %v9186_v9, 2 }
  0x60   : > { %7558 = vmatprep.mubr.msk.f32.mxu0 %vm447_vm2, %v9171_v2 }
  0x61   : > { %v9604_v4 = vsel %vm1033_vm3, %v1039_v10, %v1040_v42  ;;  %v1050_v10 = vrot.slane %v9215_v23, 2 }
  0x63   : > { %7559 = vmatmul.mubr.msk.f32.vlgmr.msra.gmra.mrb[0].mxu0 %vm447_vm2, %v9174_v3  ;;  %v1042_v3 = vrot.slane %v9191_v12, 2 }
  0x64   : > { %7607 = vmatpush3.msk.msra.mxu0 %vm512_vm0, %v9220_v24  ;;  %7561 = vmatprep.mubr.msk.f32.mxu0 %vm447_vm2, %v9183_v8  ;;  %v1034_v24 = vrot.slane %v9171_v2, 2  ;;  %v1038_v2 = vsel %vm1033_vm3, %v1035_v41, %v1037_v7 }
  0x65   : > { %7656 = vmatprep.subr.msk.mxu0 %vm512_vm0, %v6400_v51  ;;  %v9618_v12 = vsel %vm1033_vm3, %v1040_v42, %v1042_v3 }
  0x66   : > { %v1036_v6 = vsel %vm1033_vm3, %v1034_v24, %v1035_v41  ;;  %v1045_v24 = vrot.slane %v9197_v14, 2  ;;  %v1047_v41 = vrot.slane %v9204_v19, 2  ;;  %v1052_v19 = vrot.slane %v9236_v30, 2 }
  0x67   : > { %7562 = vmatmul.mubr.msk.f32.gmra.mrb[2].mxu0 %vm447_vm2, %v9186_v9 }
  0x68   : > { %7564 = vmatprep.mubr.msk.f32.mxu0 %vm447_vm2, %v9194_v13  ;;  %v9622_v7 = vsel %vm1033_vm3, %v1044_v57, %v1045_v24  ;;  %v9633_v42 = vsel %vm1033_vm3, %v1045_v24, %v1047_v41  ;;  %v9646_v3 = vsel %vm1033_vm3, %v1050_v10, %v1052_v19  ;;  %v1057_v24 = vrot.slane %v9260_v38, 2 }
  0x69   : > { %v1059_v41 = vrot.slane %v9263_v39, 2  ;;  %v1064_v19 = vrot.slane %v9285_v47, 2 }
  0x6b   : > { %7565 = vmatmul.mubr.msk.f32.gmra.mrb[4].mxu0 %vm447_vm2, %v9197_v14 }
  0x6c   : > { %7567 = vmatprep.mubr.msk.f32.mxu0 %vm447_vm2, %v9212_v22 }
  0x6f   : > { %7568 = vmatmul.mubr.msk.f32.gmra.mrb[6].mxu0 %vm447_vm2, %v9215_v23 }
  0x70   : > { %7570 = vmatprep.mubr.msk.f32.mxu0 %vm447_vm2, %v9241_v31 }
  0x73   : > { %7571 = vmatmul.mubr.msk.f32.gmra.mrb[8].mxu0 %vm447_vm2, %v9244_v32 }
  0x74   : > { %7573 = vmatprep.mubr.msk.f32.mxu0 %vm447_vm2, %v9263_v39 }
  0x77   : > { %7574 = vmatmul.mubr.msk.f32.gmra.mrb[10].mxu0 %vm447_vm2, %v9266_v40 }
  0x78   : > { %7576 = vmatprep.mubr.msk.f32.mxu0 %vm447_vm2, %v9285_v47 }
  0x7b   : > { %7577 = vmatmul.mubr.msk.f32.gmra.mrb[12].mxu0 %vm447_vm2, %v9288_v48 }
  0x7c   : > { %7579 = vmatprep.mubr.msk.f32.mxu0 %vm447_vm2, %v9307_v55 }
  0x7f   : > { %7580 = vmatmul.mubr.msk.f32.gmra.mrb[14].mxu0 %vm447_vm2, %v9310_v56 }
  0x80   : > { %7582 = vmatprep.mubr.msk.f32.mxu0 %vm447_vm2, %v9329_v63 }
  0x83   : > { %7583 = vmatmul.mubr.msk.f32.gmra.mrb[16].mxu0 %vm447_vm2, %v9332_v0 }
  0x84   : > { %7585 = vmatprep.mubr.msk.f32.mxu0 %vm447_vm2, %v9351_v15 }
  0x87   : > { %7586 = vmatmul.mubr.msk.f32.gmra.mrb[18].mxu0 %vm447_vm2, %v9354_v16 }
  0x88   : > { %7588 = vmatprep.mubr.msk.f32.mxu0 %vm447_vm2, %v9373_v34 }
  0x8b   : > { %7589 = vmatmul.mubr.msk.f32.gmra.mrb[20].mxu0 %vm447_vm2, %v9376_v36 }
  0x8c   : > { %7591 = vmatprep.mubr.msk.f32.mxu0 %vm447_vm2, %v9395_v53 }
  0x8f   : > { %7592 = vmatmul.mubr.msk.f32.gmra.mrb[22].mxu0 %vm447_vm2, %v9398_v58 }
  0x90   : > { %7594 = vmatprep.mubr.msk.f32.mxu0 %vm447_vm2, %v9417_v26 }
  0x93   : > { %7595 = vmatmul.mubr.msk.f32.gmra.mrb[24].mxu0 %vm447_vm2, %v9420_v44 }
  0x94   : > { %7597 = vmatprep.mubr.msk.f32.mxu0 %vm447_vm2, %v9439_v60 }
  0x97   : > { %7598 = vmatmul.mubr.msk.f32.gmra.mrb[26].mxu0 %vm447_vm2, %v9442_v5 }
  0x98   : > { %7600 = vmatprep.mubr.msk.f32.mxu0 %vm447_vm2, %v9461_v28 }
  0x9b   : > { %7601 = vmatmul.mubr.msk.f32.gmra.mrb[28].mxu0 %vm447_vm2, %v9464_v45 }
  0x9c   : > { %7603 = vmatprep.mubr.msk.f32.mxu0 %vm447_vm2, %v9483_v43 }
  0x9f   : > { %7604 = vmatmul.mubr.msk.f32.gmra.mrb[30].mxu0 %vm447_vm2, %v9486_v50 }
  0xa0   : > { %7608 = vmatprep.mubr.msk.f32.mxu0 %vm447_vm2, %v1036_v6  ;;  %v1049_v6 = vrot.slane %v9212_v22, 2 }
  0xa2   : > { %v9637_v57 = vsel %vm1033_vm3, %v1049_v6, %v1050_v10  ;;  %v1060_v6 = vrot.slane %v9266_v40, 2  ;;  %v1062_v10 = vrot.slane %v9282_v46, 2 }
  0xa3   : > { %7609 = vmatmul.mubr.msk.f32.vlgmr.msra.gmra.mrb[0].mxu0 %vm447_vm2, %v1038_v2  ;;  %11761 = vst [vmem:[#allocation34_spill] sm:$0xff] %v9637_v57  ;;  %v1055_v2 = vrot.slane %v9244_v32, 2 }
  0xa4   : > { %7657 = vmatpush3.msk.msra.mxu0 %vm512_vm0, %v6400_v51  ;;  %7611 = vmatprep.mubr.msk.f32.mxu0 %vm447_vm2, %v9604_v4  ;;  %v1054_v51 = vrot.slane %v9241_v31, 2  ;;  %v9663_v38 = vsel %vm1033_vm3, %v1059_v41, %v1060_v6  ;;  %v1070_v41 = vrot.slane %v9310_v56, 2 }
  0xa5   : > { %7706 = vmatprep.subr.msk.mxu0 %vm512_vm0, %v9611_v1  ;;  %11763 = vst [vmem:[#allocation36_spill] sm:$0xff] %v9663_v38 }
  0xa6   : > { %v9650_v30 = vsel %vm1033_vm3, %v1054_v51, %v1055_v2  ;;  %v1065_v51 = vrot.slane %v9288_v48, 2 }
  0xa7   : > { %7612 = vmatmul.mubr.msk.f32.gmra.mrb[2].mxu0 %vm447_vm2, %v9618_v12  ;;  %11762 = vst [vmem:[#allocation35_spill] sm:$0xff] %v9650_v30 }
  0xa8   : > { %7614 = vmatprep.mubr.msk.f32.mxu0 %vm447_vm2, %v9622_v7  ;;  %v9676_v46 = vsel %vm1033_vm3, %v1064_v19, %v1065_v51  ;;  %v1075_v19 = vrot.slane %v9332_v0, 2 }
  0xa9   : > { %11764 = vst [vmem:[#allocation37_spill] sm:$0xff] %v9676_v46 }
  0xab   : > { %7615 = vmatmul.mubr.msk.f32.gmra.mrb[4].mxu0 %vm447_vm2, %v9633_v42 }
  0xac   : > { %7617 = vmatprep.mubr.msk.f32.mxu0 %vm447_vm2, %v9637_v57  ;;  %v9659_v57 = vsel %vm1033_vm3, %v1055_v2, %v1057_v24  ;;  %v1067_v2 = vrot.slane %v9304_v54, 2  ;;  %v1069_v24 = vrot.slane %v9307_v55, 2 }
  0xae   : > { %v9689_v54 = vsel %vm1033_vm3, %v1069_v24, %v1070_v41  ;;  %v1080_v24 = vrot.slane %v9354_v16, 2 }
  0xaf   : > { %7618 = vmatmul.mubr.msk.f32.gmra.mrb[6].mxu0 %vm447_vm2, %v9646_v3  ;;  %11765 = vst [vmem:[#allocation38_spill] sm:$0xff] %v9689_v54 }
  0xb0   : > { %7620 = vmatprep.mubr.msk.f32.mxu0 %vm447_vm2, %v9650_v30  ;;  %v9672_v30 = vsel %vm1033_vm3, %v1060_v6, %v1062_v10  ;;  %v1072_v6 = vrot.slane %v9326_v62, 2  ;;  %v1074_v10 = vrot.slane %v9329_v63, 2 }
  0xb2   : > { %v9702_v62 = vsel %vm1033_vm3, %v1074_v10, %v1075_v19  ;;  %v1085_v10 = vrot.slane %v9376_v36, 2 }
  0xb3   : > { %7621 = vmatmul.mubr.msk.f32.gmra.mrb[8].mxu0 %vm447_vm2, %v9659_v57  ;;  %11766 = vst [vmem:[#allocation39_spill] sm:$0xff] %v9702_v62 }
  0xb4   : > { %7623 = vmatprep.mubr.msk.f32.mxu0 %vm447_vm2, %v9663_v38  ;;  %v9685_v38 = vsel %vm1033_vm3, %v1065_v51, %v1067_v2  ;;  %v1077_v51 = vrot.slane %v9348_v11, 2  ;;  %v1079_v2 = vrot.slane %v9351_v15, 2 }
  0xb6   : > { %v9715_v11 = vsel %vm1033_vm3, %v1079_v2, %v1080_v24  ;;  %v1090_v2 = vrot.slane %v9398_v58, 2 }
  0xb7   : > { %7624 = vmatmul.mubr.msk.f32.gmra.mrb[10].mxu0 %vm447_vm2, %v9672_v30  ;;  %11767 = vst [vmem:[#allocation40_spill] sm:$0xff] %v9715_v11 }
  0xb8   : > { %7626 = vmatprep.mubr.msk.f32.mxu0 %vm447_vm2, %v9676_v46  ;;  %v9698_v46 = vsel %vm1033_vm3, %v1070_v41, %v1072_v6  ;;  %v1082_v41 = vrot.slane %v9370_v29, 2  ;;  %v1084_v6 = vrot.slane %v9373_v34, 2 }
  0xba   : > { %v9728_v29 = vsel %vm1033_vm3, %v1084_v6, %v1085_v10  ;;  %v1095_v6 = vrot.slane %v9420_v44, 2 }
  0xbb   : > { %7627 = vmatmul.mubr.msk.f32.gmra.mrb[12].mxu0 %vm447_vm2, %v9685_v38  ;;  %11768 = vst [vmem:[#allocation41_spill] sm:$0xff] %v9728_v29 }
  0xbc   : > { %7629 = vmatprep.mubr.msk.f32.mxu0 %vm447_vm2, %v9689_v54  ;;  %v9711_v54 = vsel %vm1033_vm3, %v1075_v19, %v1077_v51  ;;  %v1087_v19 = vrot.slane %v9392_v52, 2  ;;  %v1089_v51 = vrot.slane %v9395_v53, 2 }
  0xbe   : > { %v9741_v52 = vsel %vm1033_vm3, %v1089_v51, %v1090_v2  ;;  %v1100_v51 = vrot.slane %v9442_v5, 2 }
  0xbf   : > { %7630 = vmatmul.mubr.msk.f32.gmra.mrb[14].mxu0 %vm447_vm2, %v9698_v46  ;;  %11770 = vst [vmem:[#allocation43_spill] sm:$0xff] %v9741_v52 }
  0xc0   : > { %7632 = vmatprep.mubr.msk.f32.mxu0 %vm447_vm2, %v9702_v62  ;;  %v9724_v62 = vsel %vm1033_vm3, %v1080_v24, %v1082_v41  ;;  %v1092_v24 = vrot.slane %v9414_v18, 2  ;;  %v1094_v41 = vrot.slane %v9417_v26, 2 }
  0xc2   : > { %v9754_v18 = vsel %vm1033_vm3, %v1094_v41, %v1095_v6  ;;  %v1105_v41 = vrot.slane %v9464_v45, 2 }
  0xc3   : > { %7633 = vmatmul.mubr.msk.f32.gmra.mrb[16].mxu0 %vm447_vm2, %v9711_v54  ;;  %11771 = vst [vmem:[#allocation44_spill] sm:$0xff] %v9754_v18 }
  0xc4   : > { %7635 = vmatprep.mubr.msk.f32.mxu0 %vm447_vm2, %v9715_v11  ;;  %v9737_v11 = vsel %vm1033_vm3, %v1085_v10, %v1087_v19  ;;  %v1097_v10 = vrot.slane %v9436_v17, 2  ;;  %v1099_v19 = vrot.slane %v9439_v60, 2 }
  0xc5   : > { %11769 = vst [vmem:[#allocation42_spill] sm:$0xff] %v9737_v11 }
  0xc6   : > { %v9767_v17 = vsel %vm1033_vm3, %v1099_v19, %v1100_v51  ;;  %v1110_v19 = vrot.slane %v9486_v50, 2 }
  0xc7   : > { %7636 = vmatmul.mubr.msk.f32.gmra.mrb[18].mxu0 %vm447_vm2, %v9724_v62  ;;  %11773 = vst [vmem:[#allocation46_spill] sm:$0xff] %v9767_v17 }
  0xc8   : > { %7638 = vmatprep.mubr.msk.f32.mxu0 %vm447_vm2, %v9728_v29  ;;  %v9750_v29 = vsel %vm1033_vm3, %v1090_v2, %v1092_v24  ;;  %v1102_v2 = vrot.slane %v9458_v59, 2  ;;  %v1104_v24 = vrot.slane %v9461_v28, 2 }
  0xca   : > { %v9780_v59 = vsel %vm1033_vm3, %v1104_v24, %v1105_v41  ;;  %v11775_v24 = vld [vmem:[#allocation9_spill] sm:$0xff] }
  0xcb   : > { %7639 = vmatmul.mubr.msk.f32.gmra.mrb[20].mxu0 %vm447_vm2, %v9737_v11  ;;  %11774 = vst [vmem:[#allocation47_spill] sm:$0xff] %v9780_v59 }
  0xcc   : > { %7641 = vmatprep.mubr.msk.f32.mxu0 %vm447_vm2, %v9741_v52  ;;  %v9763_v52 = vsel %vm1033_vm3, %v1095_v6, %v1097_v10  ;;  %v1107_v6 = vrot.slane %v9480_v49, 2  ;;  %v1109_v10 = vrot.slane %v9483_v43, 2 }
  0xcd   : > { %11772 = vst [vmem:[#allocation45_spill] sm:$0xff] %v9763_v52 }
  0xce   : > { %v9793_v49 = vsel %vm1033_vm3, %v1109_v10, %v1110_v19  ;;  %v11780_v10 = vld [vmem:[#allocation14_spill] sm:$0xff] }
  0xcf   : > { %7642 = vmatmul.mubr.msk.f32.gmra.mrb[22].mxu0 %vm447_vm2, %v9750_v29 }
  0xd0   : > { %7644 = vmatprep.mubr.msk.f32.mxu0 %vm447_vm2, %v9754_v18  ;;  %v9776_v18 = vsel %vm1033_vm3, %v1100_v51, %v1102_v2  ;;  %v1112_v51 = vrot.slane %v9502_v35, 2  ;;  %v6468_v35 = vld [vmem:[%s11581_s1 + $0x14] sm:$0xf] }
  0xd2   : > { %v9800_v2 = vsel %vm1033_vm3, %v1110_v19, %v1112_v51  ;;  %v11781_v19 = vld [vmem:[#allocation15_spill] sm:$0xff]  ;;  %v11782_v51 = vld [vmem:[#allocation16_spill] sm:$0xff] }
  0xd3   : > { %7645 = vmatmul.mubr.msk.f32.gmra.mrb[24].mxu0 %vm447_vm2, %v9763_v52 }
  0xd4   : > { %7647 = vmatprep.mubr.msk.f32.mxu0 %vm447_vm2, %v9767_v17  ;;  %v9789_v17 = vsel %vm1033_vm3, %v1105_v41, %v1107_v6  ;;  %v11777_v41 = vld [vmem:[#allocation11_spill] sm:$0xff]  ;;  %v11779_v6 = vld [vmem:[#allocation13_spill] sm:$0xff] }
  0xd7   : > { %7648 = vmatmul.mubr.msk.f32.gmra.mrb[26].mxu0 %vm447_vm2, %v9776_v18 }
  0xd8   : > { %7650 = vmatprep.mubr.msk.f32.mxu0 %vm447_vm2, %v9780_v59 }
  0xdb   : > { %7651 = vmatmul.mubr.msk.f32.gmra.mrb[28].mxu0 %vm447_vm2, %v9789_v17 }
  0xdc   : > { %7653 = vmatprep.mubr.msk.f32.mxu0 %vm447_vm2, %v9793_v49 }
  0xdf   : > { %7654 = vmatmul.mubr.msk.f32.gmra.mrb[30].mxu0 %vm447_vm2, %v9800_v2 }
  0xe0   : > { %7658 = vmatprep.mubr.msk.f32.mxu0 %vm447_vm2, %v9183_v8  ;;  %v9869_v8 = vld [vmem:[%s9168_s17 + $0x180] sm:$0xff] }
  0xe3   : > { %7659 = vmatmul.mubr.msk.f32.vlgmr.msra.gmra.mrb[0].mxu0 %vm447_vm2, %v9186_v9  ;;  %v9876_v9 = vld [vmem:[%s9168_s17 + $0x188] sm:$0xff] }
  0xe4   : > { %7707 = vmatpush3.msk.msra.mxu0 %vm512_vm0, %v9611_v1  ;;  %7661 = vmatprep.mubr.msk.f32.mxu0 %vm447_vm2, %v9194_v13  ;;  %v6502_v1 = vld [vmem:[%s11581_s1 + $0x18] sm:$0xf] }
  0xe5   : > { %7756 = vmatprep.subr.msk.mxu0 %vm512_vm0, %v6468_v35 }
  0xe7   : > { %7662 = vmatmul.mubr.msk.f32.gmra.mrb[2].mxu0 %vm447_vm2, %v9197_v14 }
  0xe8   : > { %7664 = vmatprep.mubr.msk.f32.mxu0 %vm447_vm2, %v9212_v22 }
  0xeb   : > { %7665 = vmatmul.mubr.msk.f32.gmra.mrb[4].mxu0 %vm447_vm2, %v9215_v23 }
  0xec   : > { %7667 = vmatprep.mubr.msk.f32.mxu0 %vm447_vm2, %v9241_v31 }
  0xef   : > { %7668 = vmatmul.mubr.msk.f32.gmra.mrb[6].mxu0 %vm447_vm2, %v9244_v32 }
  0xf0   : > { %7670 = vmatprep.mubr.msk.f32.mxu0 %vm447_vm2, %v9263_v39 }
  0xf3   : > { %7671 = vmatmul.mubr.msk.f32.gmra.mrb[8].mxu0 %vm447_vm2, %v9266_v40 }
  0xf4   : > { %7673 = vmatprep.mubr.msk.f32.mxu0 %vm447_vm2, %v9285_v47 }
  0xf7   : > { %7674 = vmatmul.mubr.msk.f32.gmra.mrb[10].mxu0 %vm447_vm2, %v9288_v48 }
  0xf8   : > { %7676 = vmatprep.mubr.msk.f32.mxu0 %vm447_vm2, %v9307_v55 }
  0xfb   : > { %7677 = vmatmul.mubr.msk.f32.gmra.mrb[12].mxu0 %vm447_vm2, %v9310_v56 }
  0xfc   : > { %7679 = vmatprep.mubr.msk.f32.mxu0 %vm447_vm2, %v9329_v63 }
  0xff   : > { %7680 = vmatmul.mubr.msk.f32.gmra.mrb[14].mxu0 %vm447_vm2, %v9332_v0 }
 0x100   : > { %7682 = vmatprep.mubr.msk.f32.mxu0 %vm447_vm2, %v9351_v15 }
 0x103   : > { %7683 = vmatmul.mubr.msk.f32.gmra.mrb[16].mxu0 %vm447_vm2, %v9354_v16 }
 0x104   : > { %7685 = vmatprep.mubr.msk.f32.mxu0 %vm447_vm2, %v9373_v34 }
 0x107   : > { %7686 = vmatmul.mubr.msk.f32.gmra.mrb[18].mxu0 %vm447_vm2, %v9376_v36 }
 0x108   : > { %7688 = vmatprep.mubr.msk.f32.mxu0 %vm447_vm2, %v9395_v53 }
 0x10b   : > { %7689 = vmatmul.mubr.msk.f32.gmra.mrb[20].mxu0 %vm447_vm2, %v9398_v58 }
 0x10c   : > { %7691 = vmatprep.mubr.msk.f32.mxu0 %vm447_vm2, %v9417_v26 }
 0x10f   : > { %7692 = vmatmul.mubr.msk.f32.gmra.mrb[22].mxu0 %vm447_vm2, %v9420_v44 }
 0x110   : > { %7694 = vmatprep.mubr.msk.f32.mxu0 %vm447_vm2, %v9439_v60 }
 0x113   : > { %7695 = vmatmul.mubr.msk.f32.gmra.mrb[24].mxu0 %vm447_vm2, %v9442_v5 }
 0x114   : > { %7697 = vmatprep.mubr.msk.f32.mxu0 %vm447_vm2, %v9461_v28 }
 0x117   : > { %7698 = vmatmul.mubr.msk.f32.gmra.mrb[26].mxu0 %vm447_vm2, %v9464_v45 }
 0x118   : > { %7700 = vmatprep.mubr.msk.f32.mxu0 %vm447_vm2, %v9483_v43 }
 0x11b   : > { %7701 = vmatmul.mubr.msk.f32.gmra.mrb[28].mxu0 %vm447_vm2, %v9486_v50 }
 0x11c   : > { %7703 = vmatprep.mubr.msk.f32.mxu0 %vm447_vm2, %v9869_v8 }
 0x11f   : > { %7704 = vmatmul.mubr.msk.f32.gmra.mrb[30].mxu0 %vm447_vm2, %v9876_v9 }
 0x120   : > { %7708 = vmatprep.mubr.msk.f32.mxu0 %vm447_vm2, %v9208_v20  ;;  %v11776_v20 = vld [vmem:[#allocation10_spill] sm:$0xff] }
 0x123   : > { %7709 = vmatmul.mubr.msk.f32.vlgmr.msra.gmra.mrb[0].mxu0 %vm447_vm2, %v9227_v25  ;;  %v11778_v25 = vld [vmem:[#allocation12_spill] sm:$0xff] }
 0x124   : > { %7757 = vmatpush3.msk.msra.mxu0 %vm512_vm0, %v6468_v35  ;;  %7711 = vmatprep.mubr.msk.f32.mxu0 %vm447_vm2, %v9231_v27  ;;  %v11783_v35 = vld [vmem:[#allocation17_spill] sm:$0xff] }
 0x125   : > { %7806 = vmatprep.subr.msk.mxu0 %vm512_vm0, %v6502_v1 }
 0x127   : > { %7712 = vmatmul.mubr.msk.f32.gmra.mrb[2].mxu0 %vm447_vm2, %v9251_v33 }
 0x128   : > { %7714 = vmatprep.mubr.msk.f32.mxu0 %vm447_vm2, %v11775_v24 }
 0x12b   : > { %7715 = vmatmul.mubr.msk.f32.gmra.mrb[4].mxu0 %vm447_vm2, %v11776_v20  ;;  %v11784_v20 = vld [vmem:[#allocation18_spill] sm:$0xff] }
 0x12c   : > { %7717 = vmatprep.mubr.msk.f32.mxu0 %vm447_vm2, %v11777_v41  ;;  %v11785_v41 = vld [vmem:[#allocation19_spill] sm:$0xff] }
 0x12f   : > { %7718 = vmatmul.mubr.msk.f32.gmra.mrb[6].mxu0 %vm447_vm2, %v11778_v25  ;;  %v11792_v25 = vld [vmem:[#allocation26_spill] sm:$0xff] }
 0x130   : > { %7720 = vmatprep.mubr.msk.f32.mxu0 %vm447_vm2, %v11779_v6  ;;  %v11786_v6 = vld [vmem:[#allocation20_spill] sm:$0xff] }
 0x133   : > { %7721 = vmatmul.mubr.msk.f32.gmra.mrb[8].mxu0 %vm447_vm2, %v11780_v10  ;;  %v11787_v10 = vld [vmem:[#allocation21_spill] sm:$0xff] }
 0x134   : > { %7723 = vmatprep.mubr.msk.f32.mxu0 %vm447_vm2, %v11781_v19  ;;  %v11788_v19 = vld [vmem:[#allocation22_spill] sm:$0xff] }
 0x137   : > { %7724 = vmatmul.mubr.msk.f32.gmra.mrb[10].mxu0 %vm447_vm2, %v11782_v51  ;;  %v11789_v51 = vld [vmem:[#allocation23_spill] sm:$0xff] }
 0x138   : > { %7726 = vmatprep.mubr.msk.f32.mxu0 %vm447_vm2, %v11783_v35  ;;  %v11790_v35 = vld [vmem:[#allocation24_spill] sm:$0xff] }
 0x13b   : > { %7727 = vmatmul.mubr.msk.f32.gmra.mrb[12].mxu0 %vm447_vm2, %v11784_v20  ;;  %v11791_v20 = vld [vmem:[#allocation25_spill] sm:$0xff] }
 0x13c   : > { %7729 = vmatprep.mubr.msk.f32.mxu0 %vm447_vm2, %v11785_v41  ;;  %v11793_v41 = vld [vmem:[#allocation27_spill] sm:$0xff] }
 0x13f   : > { %7730 = vmatmul.mubr.msk.f32.gmra.mrb[14].mxu0 %vm447_vm2, %v11786_v6 }
 0x140   : > { %7732 = vmatprep.mubr.msk.f32.mxu0 %vm447_vm2, %v11787_v10  ;;  %v11794_v10 = vld [vmem:[#allocation29_spill] sm:$0xff] }
 0x143   : > { %7733 = vmatmul.mubr.msk.f32.gmra.mrb[16].mxu0 %vm447_vm2, %v11788_v19  ;;  %v11797_v19 = vld [vmem:[#allocation33_spill] sm:$0xff] }
 0x144   : > { %7735 = vmatprep.mubr.msk.f32.mxu0 %vm447_vm2, %v11789_v51  ;;  %v11795_v51 = vld [vmem:[#allocation31_spill] sm:$0xff] }
 0x147   : > { %7736 = vmatmul.mubr.msk.f32.gmra.mrb[18].mxu0 %vm447_vm2, %v11790_v35  ;;  %v1710_v35 = vrot.slane %v9876_v9, 1 }
 0x148   : > { %7738 = vmatprep.mubr.msk.f32.mxu0 %vm447_vm2, %v11791_v20  ;;  %v1709_v20 = vrot.slane %v9869_v8, 1 }
 0x14b   : > { %7739 = vmatmul.mubr.msk.f32.gmra.mrb[20].mxu0 %vm447_vm2, %v11792_v25  ;;  %v311_v25 = vld [vmem:[%s9168_s17 + $0x190] sm:$0x3] }
 0x14c   : > { %7741 = vmatprep.mubr.msk.f32.mxu0 %vm447_vm2, %v11793_v41  ;;  %v11796_v41 = vld [vmem:[#allocation32_spill] sm:$0xff] }
 0x14f   : > { %7742 = vmatmul.mubr.msk.f32.gmra.mrb[22].mxu0 %vm447_vm2, %v9471_v37  ;;  %v1712_v37 = vrot.slane %v311_v25, 1 }
 0x150   : > { %7744 = vmatprep.mubr.msk.f32.mxu0 %vm447_vm2, %v11794_v10  ;;  %v9947_v10 = vsel %vm364_vm1, %v1709_v20, %v1710_v35  ;;  %v6536_v20 = vld [vmem:[%s11581_s1 + $0x1c] sm:$0xf] }
 0x153   : > { %7745 = vmatmul.mubr.msk.f32.gmra.mrb[24].mxu0 %vm447_vm2, %v9493_v21 }
 0x154   : > { %7747 = vmatprep.mubr.msk.f32.mxu0 %vm447_vm2, %v9497_v61  ;;  %v9954_v61 = vsel %vm364_vm1, %v1710_v35, %v1712_v37  ;;  %v11798_v37 = vld [vmem:[#allocation34_spill] sm:$0xff] }
 0x155   : > { %v11802_v35 = vld [vmem:[#allocation38_spill] sm:$0xff] }
 0x157   : > { %7748 = vmatmul.mubr.msk.f32.gmra.mrb[26].mxu0 %vm447_vm2, %v11795_v51 }
 0x158   : > { %7750 = vmatprep.mubr.msk.f32.mxu0 %vm447_vm2, %v11796_v41 }
 0x15b   : > { %7751 = vmatmul.mubr.msk.f32.gmra.mrb[28].mxu0 %vm447_vm2, %v11797_v19 }
 0x15c   : > { %7753 = vmatprep.mubr.msk.f32.mxu0 %vm447_vm2, %v9947_v10 }
 0x15f   : > { %7754 = vmatmul.mubr.msk.f32.gmra.mrb[30].mxu0 %vm447_vm2, %v9954_v61 }
 0x160   : > { %7758 = vmatprep.mubr.msk.f32.mxu0 %vm447_vm2, %v9604_v4  ;;  %v11799_v4 = vld [vmem:[#allocation35_spill] sm:$0xff] }
 0x163   : > { %7759 = vmatmul.mubr.msk.f32.vlgmr.msra.gmra.mrb[0].mxu0 %vm447_vm2, %v9618_v12  ;;  %v11800_v12 = vld [vmem:[#allocation36_spill] sm:$0xff] }
 0x164   : > { %7807 = vmatpush3.msk.msra.mxu0 %vm512_vm0, %v6502_v1  ;;  %7761 = vmatprep.mubr.msk.f32.mxu0 %vm447_vm2, %v9622_v7  ;;  %v11801_v1 = vld [vmem:[#allocation37_spill] sm:$0xff] }
 0x165   : > { %7856 = vmatprep.subr.msk.mxu0 %vm512_vm0, %v6536_v20 }
 0x167   : > { %7762 = vmatmul.mubr.msk.f32.gmra.mrb[2].mxu0 %vm447_vm2, %v9633_v42 }
 0x168   : > { %7764 = vmatprep.mubr.msk.f32.mxu0 %vm447_vm2, %v11798_v37 }
 0x16b   : > { %7765 = vmatmul.mubr.msk.f32.gmra.mrb[4].mxu0 %vm447_vm2, %v9646_v3 }
 0x16c   : > { %7767 = vmatprep.mubr.msk.f32.mxu0 %vm447_vm2, %v11799_v4  ;;  %v11803_v4 = vld [vmem:[#allocation39_spill] sm:$0xff] }
 0x16f   : > { %7768 = vmatmul.mubr.msk.f32.gmra.mrb[6].mxu0 %vm447_vm2, %v9659_v57 }
 0x170   : > { %7770 = vmatprep.mubr.msk.f32.mxu0 %vm447_vm2, %v11800_v12  ;;  %v11804_v12 = vld [vmem:[#allocation40_spill] sm:$0xff] }
 0x173   : > { %7771 = vmatmul.mubr.msk.f32.gmra.mrb[8].mxu0 %vm447_vm2, %v9672_v30 }
 0x174   : > { %7773 = vmatprep.mubr.msk.f32.mxu0 %vm447_vm2, %v11801_v1  ;;  %v11805_v1 = vld [vmem:[#allocation41_spill] sm:$0xff] }
 0x177   : > { %7774 = vmatmul.mubr.msk.f32.gmra.mrb[10].mxu0 %vm447_vm2, %v9685_v38 }
 0x178   : > { %7776 = vmatprep.mubr.msk.f32.mxu0 %vm447_vm2, %v11802_v35  ;;  %v11806_v35 = vld [vmem:[#allocation43_spill] sm:$0xff] }
 0x17b   : > { %7777 = vmatmul.mubr.msk.f32.gmra.mrb[12].mxu0 %vm447_vm2, %v9698_v46 }
 0x17c   : > { %7779 = vmatprep.mubr.msk.f32.mxu0 %vm447_vm2, %v11803_v4  ;;  %v11807_v4 = vld [vmem:[#allocation44_spill] sm:$0xff] }
 0x17f   : > { %7780 = vmatmul.mubr.msk.f32.gmra.mrb[14].mxu0 %vm447_vm2, %v9711_v54 }
 0x180   : > { %7782 = vmatprep.mubr.msk.f32.mxu0 %vm447_vm2, %v11804_v12  ;;  %v11808_v12 = vld [vmem:[#allocation46_spill] sm:$0xff] }
 0x183   : > { %7783 = vmatmul.mubr.msk.f32.gmra.mrb[16].mxu0 %vm447_vm2, %v9724_v62 }
 0x184   : > { %7785 = vmatprep.mubr.msk.f32.mxu0 %vm447_vm2, %v11805_v1 }
 0x187   : > { %7786 = vmatmul.mubr.msk.f32.gmra.mrb[18].mxu0 %vm447_vm2, %v9737_v11  ;;  %v1981_v11 = vrot.slane %v9876_v9, 2 }
 0x188   : > { %7788 = vmatprep.mubr.msk.f32.mxu0 %vm447_vm2, %v11806_v35  ;;  %v1980_v35 = vrot.slane %v9869_v8, 2 }
 0x18b   : > { %7789 = vmatmul.mubr.msk.f32.gmra.mrb[20].mxu0 %vm447_vm2, %v9750_v29 }
 0x18c   : > { %7791 = vmatprep.mubr.msk.f32.mxu0 %vm447_vm2, %v11807_v4  ;;  %v10024_v4 = vsel %vm1033_vm3, %v1980_v35, %v1981_v11 }
 0x18f   : > { %7792 = vmatmul.mubr.msk.f32.gmra.mrb[22].mxu0 %vm447_vm2, %v9763_v52  ;;  %v1983_v52 = vrot.slane %v311_v25, 2  ;;  %v6570_v25 = vld [vmem:[%s11581_s1 + $0x20] sm:$0xf] }
 0x190   : > { %7794 = vmatprep.mubr.msk.f32.mxu0 %vm447_vm2, %v11808_v12 }
 0x193   : > { %7795 = vmatmul.mubr.msk.f32.gmra.mrb[24].mxu0 %vm447_vm2, %v9776_v18 }
 0x194   : > { %7797 = vmatprep.mubr.msk.f32.mxu0 %vm447_vm2, %v9780_v59  ;;  %v10031_v59 = vsel %vm1033_vm3, %v1981_v11, %v1983_v52 }
 0x197   : > { %7798 = vmatmul.mubr.msk.f32.gmra.mrb[26].mxu0 %vm447_vm2, %v9789_v17 }
 0x198   : > { %7800 = vmatprep.mubr.msk.f32.mxu0 %vm447_vm2, %v9793_v49 }
 0x19b   : > { %7801 = vmatmul.mubr.msk.f32.gmra.mrb[28].mxu0 %vm447_vm2, %v9800_v2 }
 0x19c   : > { %7803 = vmatprep.mubr.msk.f32.mxu0 %vm447_vm2, %v10024_v4 }
 0x19f   : > { %7804 = vmatmul.mubr.msk.f32.gmra.mrb[30].mxu0 %vm447_vm2, %v10031_v59 }
 0x1a0   : > { %7808 = vmatprep.mubr.msk.f32.mxu0 %vm447_vm2, %v9194_v13  ;;  %v10099_v13 = vld [vmem:[%s9168_s17 + $0x198] sm:$0xff] }
 0x1a3   : > { %7809 = vmatmul.mubr.msk.f32.vlgmr.msra.gmra.mrb[0].mxu0 %vm447_vm2, %v9197_v14  ;;  %v10106_v14 = vld [vmem:[%s9168_s17 + $0x1a0] sm:$0xff] }
 0x1a4   : > { %7857 = vmatpush3.msk.msra.mxu0 %vm512_vm0, %v6536_v20  ;;  %7811 = vmatprep.mubr.msk.f32.mxu0 %vm447_vm2, %v9212_v22  ;;  %v11809_v22 = vld [vmem:[#allocation10_spill] sm:$0xff] }
 0x1a5   : > { %7906 = vmatprep.subr.msk.mxu0 %vm512_vm0, %v6570_v25 }
 0x1a7   : > { %7812 = vmatmul.mubr.msk.f32.gmra.mrb[2].mxu0 %vm447_vm2, %v9215_v23  ;;  %v11810_v23 = vld [vmem:[#allocation11_spill] sm:$0xff] }
 0x1a8   : > { %7814 = vmatprep.mubr.msk.f32.mxu0 %vm447_vm2, %v9241_v31  ;;  %v11811_v31 = vld [vmem:[#allocation12_spill] sm:$0xff] }
 0x1ab   : > { %7815 = vmatmul.mubr.msk.f32.gmra.mrb[4].mxu0 %vm447_vm2, %v9244_v32  ;;  %v11812_v32 = vld [vmem:[#allocation13_spill] sm:$0xff] }
 0x1ac   : > { %7817 = vmatprep.mubr.msk.f32.mxu0 %vm447_vm2, %v9263_v39  ;;  %v11815_v39 = vld [vmem:[#allocation16_spill] sm:$0xff] }
 0x1af   : > { %7818 = vmatmul.mubr.msk.f32.gmra.mrb[6].mxu0 %vm447_vm2, %v9266_v40  ;;  %v11816_v40 = vld [vmem:[#allocation17_spill] sm:$0xff] }
 0x1b0   : > { %7820 = vmatprep.mubr.msk.f32.mxu0 %vm447_vm2, %v9285_v47  ;;  %v11818_v47 = vld [vmem:[#allocation19_spill] sm:$0xff] }
 0x1b3   : > { %7821 = vmatmul.mubr.msk.f32.gmra.mrb[8].mxu0 %vm447_vm2, %v9288_v48  ;;  %v11819_v48 = vld [vmem:[#allocation21_spill] sm:$0xff] }
 0x1b4   : > { %7823 = vmatprep.mubr.msk.f32.mxu0 %vm447_vm2, %v9307_v55  ;;  %v11820_v55 = vld [vmem:[#allocation22_spill] sm:$0xff] }
 0x1b7   : > { %7824 = vmatmul.mubr.msk.f32.gmra.mrb[10].mxu0 %vm447_vm2, %v9310_v56  ;;  %v11821_v56 = vld [vmem:[#allocation23_spill] sm:$0xff] }
 0x1b8   : > { %7826 = vmatprep.mubr.msk.f32.mxu0 %vm447_vm2, %v9329_v63  ;;  %v11822_v63 = vld [vmem:[#allocation24_spill] sm:$0xff] }
 0x1bb   : > { %7827 = vmatmul.mubr.msk.f32.gmra.mrb[12].mxu0 %vm447_vm2, %v9332_v0  ;;  %v11823_v0 = vld [vmem:[#allocation25_spill] sm:$0xff] }
 0x1bc   : > { %7829 = vmatprep.mubr.msk.f32.mxu0 %vm447_vm2, %v9351_v15  ;;  %v11824_v15 = vld [vmem:[#allocation26_spill] sm:$0xff] }
 0x1bf   : > { %7830 = vmatmul.mubr.msk.f32.gmra.mrb[14].mxu0 %vm447_vm2, %v9354_v16  ;;  %v11825_v16 = vld [vmem:[#allocation27_spill] sm:$0xff] }
 0x1c0   : > { %7832 = vmatprep.mubr.msk.f32.mxu0 %vm447_vm2, %v9373_v34  ;;  %v11826_v34 = vld [vmem:[#allocation28_spill] sm:$0xff] }
 0x1c3   : > { %7833 = vmatmul.mubr.msk.f32.gmra.mrb[16].mxu0 %vm447_vm2, %v9376_v36  ;;  %v11827_v36 = vld [vmem:[#allocation29_spill] sm:$0xff] }
 0x1c4   : > { %7835 = vmatprep.mubr.msk.f32.mxu0 %vm447_vm2, %v9395_v53  ;;  %v2520_v53 = vrot.slane %v10099_v13, 1 }
 0x1c7   : > { %7836 = vmatmul.mubr.msk.f32.gmra.mrb[18].mxu0 %vm447_vm2, %v9398_v58  ;;  %v2521_v58 = vrot.slane %v10106_v14, 1 }
 0x1c8   : > { %7838 = vmatprep.mubr.msk.f32.mxu0 %vm447_vm2, %v9417_v26 }
 0x1c9   : > { %v2522_v26 = vsel %vm364_vm1, %v2520_v53, %v2521_v58 }
 0x1cb   : > { %7839 = vmatmul.mubr.msk.f32.gmra.mrb[20].mxu0 %vm447_vm2, %v9420_v44  ;;  %v11828_v44 = vld [vmem:[#allocation30_spill] sm:$0xff] }
 0x1cc   : > { %7841 = vmatprep.mubr.msk.f32.mxu0 %vm447_vm2, %v9439_v60  ;;  %v314_v60 = vld [vmem:[%s9168_s17 + $0x1a8] sm:$0x3]  ;;  %s6166_s17 = scalar_lea.sflag [#allocation4], %s11447_s28 }
 0x1cd   : > { %v2794_v11 = vrot.slane %v314_v60, 2 }
 0x1cf   : > { %7842 = vmatmul.mubr.msk.f32.gmra.mrb[22].mxu0 %vm447_vm2, %v9442_v5  ;;  %v2523_v5 = vrot.slane %v314_v60, 1 }
 0x1d0   : > { %7844 = vmatprep.mubr.msk.f32.mxu0 %vm447_vm2, %v9461_v28 }
 0x1d1   : > { %v2524_v28 = vsel %vm364_vm1, %v2521_v58, %v2523_v5 }
 0x1d3   : > { %7845 = vmatmul.mubr.msk.f32.gmra.mrb[24].mxu0 %vm447_vm2, %v9464_v45  ;;  %v11829_v45 = vld [vmem:[#allocation35_spill] sm:$0xff] }
 0x1d4   : > { %7847 = vmatprep.mubr.msk.f32.mxu0 %vm447_vm2, %v9483_v43  ;;  %v11817_v43 = vld [vmem:[#allocation18_spill] sm:$0xff] }
 0x1d7   : > { %7848 = vmatmul.mubr.msk.f32.gmra.mrb[26].mxu0 %vm447_vm2, %v9486_v50  ;;  %v11830_v50 = vld [vmem:[#allocation36_spill] sm:$0xff] }
 0x1d8   : > { %7850 = vmatprep.mubr.msk.f32.mxu0 %vm447_vm2, %v9869_v8 }
 0x1db   : > { %7851 = vmatmul.mubr.msk.f32.gmra.mrb[28].mxu0 %vm447_vm2, %v9876_v9  ;;  %v6605_v9 = vld [vmem:[%s11583_s3 + $0x8] sm:$0xff] }
 0x1dc   : > { %7853 = vmatprep.mubr.msk.f32.mxu0 %vm447_vm2, %v10099_v13  ;;  %7956 = vmatprep.subr.mxu1 %v6605_v9 }
 0x1dd   : > { %7957 = vmatpush3.msra.mxu1 %v6605_v9 }
 0x1df   : > { %7854 = vmatmul.mubr.msk.f32.gmra.mrb[30].mxu0 %vm447_vm2, %v10106_v14 }
 0x1e0   : > { %7858 = vmatprep.mubr.msk.f32.mxu0 %vm447_vm2, %v9231_v27  ;;  %v11813_v27 = vld [vmem:[#allocation14_spill] sm:$0xff] }
 0x1e3   : > { %7859 = vmatmul.mubr.msk.f32.vlgmr.msra.gmra.mrb[0].mxu0 %vm447_vm2, %v9251_v33  ;;  %v11814_v33 = vld [vmem:[#allocation15_spill] sm:$0xff] }
 0x1e4   : > { %7907 = vmatpush3.msk.msra.mxu0 %vm512_vm0, %v6570_v25  ;;  %7861 = vmatprep.mubr.msk.f32.mxu0 %vm447_vm2, %v11775_v24 }
 0x1e7   : > { %7862 = vmatmul.mubr.msk.f32.gmra.mrb[2].mxu0 %vm447_vm2, %v11809_v22 }
 0x1e8   : > { %7864 = vmatprep.mubr.msk.f32.mxu0 %vm447_vm2, %v11810_v23 }
 0x1eb   : > { %7865 = vmatmul.mubr.msk.f32.gmra.mrb[4].mxu0 %vm447_vm2, %v11811_v31 }
 0x1ec   : > { %7867 = vmatprep.mubr.msk.f32.mxu0 %vm447_vm2, %v11812_v32 }
 0x1ef   : > { %7868 = vmatmul.mubr.msk.f32.gmra.mrb[6].mxu0 %vm447_vm2, %v11813_v27 }
 0x1f0   : > { %7870 = vmatprep.mubr.msk.f32.mxu0 %vm447_vm2, %v11814_v33 }
 0x1f3   : > { %7871 = vmatmul.mubr.msk.f32.gmra.mrb[8].mxu0 %vm447_vm2, %v11815_v39 }
 0x1f4   : > { %7873 = vmatprep.mubr.msk.f32.mxu0 %vm447_vm2, %v11816_v40 }
 0x1f7   : > { %7874 = vmatmul.mubr.msk.f32.gmra.mrb[10].mxu0 %vm447_vm2, %v11817_v43 }
 0x1f8   : > { %7876 = vmatprep.mubr.msk.f32.mxu0 %vm447_vm2, %v11818_v47 }
 0x1fb   : > { %7877 = vmatmul.mubr.msk.f32.gmra.mrb[12].mxu0 %vm447_vm2, %v11786_v6 }
 0x1fc   : > { %7879 = vmatprep.mubr.msk.f32.mxu0 %vm447_vm2, %v11819_v48 }
 0x1ff   : > { %7880 = vmatmul.mubr.msk.f32.gmra.mrb[14].mxu0 %vm447_vm2, %v11820_v55 }
 0x200   : > { %7882 = vmatprep.mubr.msk.f32.mxu0 %vm447_vm2, %v11821_v56 }
 0x203   : > { %7883 = vmatmul.mubr.msk.f32.gmra.mrb[16].mxu0 %vm447_vm2, %v11822_v63 }
 0x204   : > { %7885 = vmatprep.mubr.msk.f32.mxu0 %vm447_vm2, %v11823_v0 }
 0x207   : > { %7886 = vmatmul.mubr.msk.f32.gmra.mrb[18].mxu0 %vm447_vm2, %v11824_v15 }
 0x208   : > { %7888 = vmatprep.mubr.msk.f32.mxu0 %vm447_vm2, %v11825_v16 }
 0x20b   : > { %7889 = vmatmul.mubr.msk.f32.gmra.mrb[20].mxu0 %vm447_vm2, %v11826_v34 }
 0x20c   : > { %7891 = vmatprep.mubr.msk.f32.mxu0 %vm447_vm2, %v11827_v36 }
 0x20f   : > { %7892 = vmatmul.mubr.msk.f32.gmra.mrb[22].mxu0 %vm447_vm2, %v9493_v21  ;;  %v11831_v21 = vld [vmem:[#allocation37_spill] sm:$0xff] }
 0x210   : > { %7894 = vmatprep.mubr.msk.f32.mxu0 %vm447_vm2, %v11828_v44 }
 0x213   : > { %7895 = vmatmul.mubr.msk.f32.gmra.mrb[24].mxu0 %vm447_vm2, %v11795_v51  ;;  %v10326_v51 = vld [vmem:[%s11582_s2] ss:$0 sm:$0xff] }
 0x214   : > { %7897 = vmatprep.mubr.msk.f32.mxu0 %vm447_vm2, %v11796_v41 }
 0x217   : > { %7898 = vmatmul.mubr.msk.f32.gmra.mrb[26].mxu0 %vm447_vm2, %v11797_v19  ;;  %v10320_v19 = vld [vmem:[%s11583_s3 + $0x10] sm:$0xff] }
 0x218   : > { %7900 = vmatprep.mubr.msk.f32.mxu0 %vm447_vm2, %v9947_v10  ;;  %v3342_v10 = vld [vmem:[%s11583_s3] sm:$0xff] }
 0x219   : > { %8006 = vmatprep.subr.mxu1 %v3342_v10 }
 0x21b   : > { %7901 = vmatmul.mubr.msk.f32.gmra.mrb[28].mxu0 %vm447_vm2, %v9954_v61  ;;  %v11832_v61 = vld [vmem:[#allocation38_spill] sm:$0xff] }
 0x21c   : > { %7903 = vmatprep.mubr.msk.f32.mxu0 %vm447_vm2, %v2522_v26 }
 0x21f   : > { %7904 = vmatmul.mubr.msk.f32.gmra.mrb[30].mxu0 %vm447_vm2, %v2524_v28 }
 0x220   : > { %7908 = vmatprep.mubr.msk.f32.mxu0 %vm447_vm2, %v9622_v7  ;;  %v11833_v7 = vld [vmem:[#allocation39_spill] sm:$0xff] }
 0x223   : > { %7909 = vmatmul.mubr.msk.f32.vlgmr.msra.gmra.mrb[0].mxu0 %vm447_vm2, %v9633_v42  ;;  %v11834_v42 = vld [vmem:[#allocation40_spill] sm:$0xff] }
 0x224   : > { %7911 = vmatprep.mubr.msk.f32.mxu0 %vm447_vm2, %v11798_v37 }
 0x227   : > { %7912 = vmatmul.mubr.msk.f32.gmra.mrb[2].mxu0 %vm447_vm2, %v9646_v3  ;;  %v11836_v3 = vld [vmem:[#allocation43_spill] sm:$0xff] }
 0x228   : > { %7914 = vmatprep.mubr.msk.f32.mxu0 %vm447_vm2, %v11829_v45 }
 0x22b   : > { %7915 = vmatmul.mubr.msk.f32.gmra.mrb[4].mxu0 %vm447_vm2, %v9659_v57  ;;  %v11835_v57 = vld [vmem:[#allocation42_spill] sm:$0xff] }
 0x22c   : > { %7917 = vmatprep.mubr.msk.f32.mxu0 %vm447_vm2, %v11830_v50 }
 0x22f   : > { %7918 = vmatmul.mubr.msk.f32.gmra.mrb[6].mxu0 %vm447_vm2, %v9672_v30  ;;  %v11837_v30 = vld [vmem:[#allocation44_spill] sm:$0xff] }
 0x230   : > { %7920 = vmatprep.mubr.msk.f32.mxu0 %vm447_vm2, %v11831_v21 }
 0x233   : > { %7921 = vmatmul.mubr.msk.f32.gmra.mrb[8].mxu0 %vm447_vm2, %v9685_v38  ;;  %v11838_v38 = vld [vmem:[#allocation45_spill] sm:$0xff] }
 0x234   : > { %7923 = vmatprep.mubr.msk.f32.mxu0 %vm447_vm2, %v11832_v61 }
 0x237   : > { %7924 = vmatmul.mubr.msk.f32.gmra.mrb[10].mxu0 %vm447_vm2, %v9698_v46  ;;  %v11839_v46 = vld [vmem:[#allocation47_spill] sm:$0xff] }
 0x238   : > { %7926 = vmatprep.mubr.msk.f32.mxu0 %vm447_vm2, %v11833_v7 }
 0x23b   : > { %7927 = vmatmul.mubr.msk.f32.gmra.mrb[12].mxu0 %vm447_vm2, %v9711_v54  ;;  %v2791_v54 = vrot.slane %v10099_v13, 2 }
 0x23c   : > { %7929 = vmatprep.mubr.msk.f32.mxu0 %vm447_vm2, %v11834_v42 }
 0x23f   : > { %7930 = vmatmul.mubr.msk.f32.gmra.mrb[14].mxu0 %vm447_vm2, %v9724_v62  ;;  %v2792_v62 = vrot.slane %v10106_v14, 2 }
 0x240   : > { %7932 = vmatprep.mubr.msk.f32.mxu0 %vm447_vm2, %v11805_v1 }
 0x241   : > { %v2795_v52 = vsel %vm1033_vm3, %v2792_v62, %v2794_v11 }
 0x243   : > { %7933 = vmatmul.mubr.msk.f32.gmra.mrb[16].mxu0 %vm447_vm2, %v11835_v57 }
 0x244   : > { %7935 = vmatprep.mubr.msk.f32.mxu0 %vm447_vm2, %v11836_v3 }
 0x247   : > { %7936 = vmatmul.mubr.msk.f32.gmra.mrb[18].mxu0 %vm447_vm2, %v9750_v29  ;;  %v2793_v29 = vsel %vm1033_vm3, %v2791_v54, %v2792_v62 }
 0x248   : > { %7938 = vmatprep.mubr.msk.f32.mxu0 %vm447_vm2, %v11837_v30 }
 0x24b   : > { %7939 = vmatmul.mubr.msk.f32.gmra.mrb[20].mxu0 %vm447_vm2, %v11838_v38 }
 0x24c   : > { %7941 = vmatprep.mubr.msk.f32.mxu0 %vm447_vm2, %v11808_v12 }
 0x24f   : > { %7942 = vmatmul.mubr.msk.f32.gmra.mrb[22].mxu0 %vm447_vm2, %v9776_v18  ;;  %v9066_v18 = vmov 0.0  }
 0x250   : > { %7944 = vmatprep.mubr.msk.f32.mxu0 %vm447_vm2, %v11839_v46  ;;  %3173 = vst.msk [vmem:[#allocation2 + $0x20] sm:$0xff] %vm3167_vm4, %v9066_v18  ;;  %3168 = vst.msk [vmem:[#allocation2] sm:$0xff] %vm3167_vm4, %v9066_v18 }
 0x251   : > { %3174 = vst.msk [vmem:[#allocation2 + $0x28] sm:$0x3] %vm3170_vm5, %v9066_v18  ;;  %3171 = vst.msk [vmem:[#allocation2 + $0x10] sm:$0x3] %vm3170_vm5, %v9066_v18 }
 0x252   : > { %3169 = vst.msk [vmem:[#allocation2 + $0x8] sm:$0xff] %vm3167_vm4, %v9066_v18  ;;  %3172 = vst.msk [vmem:[#allocation2 + $0x18] sm:$0xff] %vm3167_vm4, %v9066_v18 }
 0x253   : > { %7945 = vmatmul.mubr.msk.f32.gmra.mrb[24].mxu0 %vm447_vm2, %v9789_v17  ;;  %3175 = vst.msk [vmem:[#allocation2 + $0x30] sm:$0xff] %vm3167_vm4, %v9066_v18  ;;  %3176 = vst.msk [vmem:[#allocation2 + $0x38] sm:$0xff] %vm3167_vm4, %v9066_v18 }
 0x254   : > { %7947 = vmatprep.mubr.msk.f32.mxu0 %vm447_vm2, %v9793_v49  ;;  %3177 = vst.msk [vmem:[#allocation2 + $0x40] sm:$0x3] %vm3170_vm5, %v9066_v18  ;;  %3180 = vst.msk [vmem:[#allocation2 + $0x58] sm:$0x3] %vm3170_vm5, %v9066_v18 }
 0x255   : > { %3178 = vst.msk [vmem:[#allocation2 + $0x48] sm:$0xff] %vm3167_vm4, %v9066_v18  ;;  %3179 = vst.msk [vmem:[#allocation2 + $0x50] sm:$0xff] %vm3167_vm4, %v9066_v18 }
 0x256   : > { %3181 = vst.msk [vmem:[#allocation2 + $0x60] sm:$0xff] %vm3167_vm4, %v9066_v18  ;;  %3182 = vst.msk [vmem:[#allocation2 + $0x68] sm:$0xff] %vm3167_vm4, %v9066_v18 }
 0x257   : > { %7948 = vmatmul.mubr.msk.f32.gmra.mrb[26].mxu0 %vm447_vm2, %v9800_v2  ;;  %3183 = vst.msk [vmem:[#allocation2 + $0x70] sm:$0x3] %vm3170_vm5, %v9066_v18  ;;  %3186 = vst.msk [vmem:[#allocation2 + $0x88] sm:$0x3] %vm3170_vm5, %v9066_v18  ;;  %v10298_v17 = vld [vmem:[#allocation2] sm:$0xff] }
 0x258   : > { %7950 = vmatprep.mubr.msk.f32.mxu0 %vm447_vm2, %v10024_v4  ;;  %3184 = vst.msk [vmem:[#allocation2 + $0x78] sm:$0xff] %vm3167_vm4, %v9066_v18  ;;  %3185 = vst.msk [vmem:[#allocation2 + $0x80] sm:$0xff] %vm3167_vm4, %v9066_v18  ;;  %v3391_v49 = vrot.slane %v10298_v17, 1  ;;  %v10304_v8 = vld [vmem:[#allocation2 + $0x10] sm:$0x3] }
 0x259   : > { %3187 = vst.msk [vmem:[#allocation2 + $0x90] sm:$0xff] %vm3167_vm4, %v9066_v18  ;;  %3188 = vst.msk [vmem:[#allocation2 + $0x98] sm:$0xff] %vm3167_vm4, %v9066_v18  ;;  %v3394_v24 = vrot.slane %v10304_v8, 1 }
 0x25a   : > { %3189 = vst.msk [vmem:[#allocation2 + $0xa0] sm:$0x3] %vm3170_vm5, %v9066_v18  ;;  %3192 = vst.msk [vmem:[#allocation2 + $0xb8] sm:$0x3] %vm3170_vm5, %v9066_v18 }
 0x25b   : > { %7951 = vmatmul.mubr.msk.f32.gmra.mrb[28].mxu0 %vm447_vm2, %v10031_v59  ;;  %3190 = vst.msk [vmem:[#allocation2 + $0xa8] sm:$0xff] %vm3167_vm4, %v9066_v18  ;;  %3191 = vst.msk [vmem:[#allocation2 + $0xb0] sm:$0xff] %vm3167_vm4, %v9066_v18  ;;  %v10300_v59 = vld [vmem:[#allocation2 + $0x8] sm:$0xff] }
 0x25c   : > { %7953 = vmatprep.mubr.msk.f32.mxu0 %vm447_vm2, %v2793_v29  ;;  %3193 = vst.msk [vmem:[#allocation2 + $0xc0] sm:$0xff] %vm3167_vm4, %v9066_v18  ;;  %3194 = vst.msk [vmem:[#allocation2 + $0xc8] sm:$0xff] %vm3167_vm4, %v9066_v18  ;;  %v3392_v2 = vrot.slane %v10300_v59, 1 }
 0x25d   : > { %3195 = vst.msk [vmem:[#allocation2 + $0xd0] sm:$0x3] %vm3170_vm5, %v9066_v18  ;;  %3198 = vst.msk [vmem:[#allocation2 + $0xe8] sm:$0x3] %vm3170_vm5, %v9066_v18 }
 0x25e   : > { %3196 = vst.msk [vmem:[#allocation2 + $0xd8] sm:$0xff] %vm3167_vm4, %v9066_v18  ;;  %3197 = vst.msk [vmem:[#allocation2 + $0xe0] sm:$0xff] %vm3167_vm4, %v9066_v18  ;;  %v3393_v41 = vsel %vm364_vm1, %v3391_v49, %v3392_v2  ;;  %v3395_v6 = vsel %vm364_vm1, %v3392_v2, %v3394_v24 }
 0x25f   : > { %7954 = vmatmul.mubr.msk.f32.gmra.mrb[30].mxu0 %vm447_vm2, %v2795_v52  ;;  %3199 = vst.msk [vmem:[#allocation2 + $0xf0] sm:$0xff] %vm3167_vm4, %v9066_v18  ;;  %3200 = vst.msk [vmem:[#allocation2 + $0xf8] sm:$0xff] %vm3167_vm4, %v9066_v18  ;;  %7958 = vmatprep.mubr.msk.f32.mxu1 %vm3167_vm4, %v3393_v41 }
 0x260   : > { %3201 = vst.msk [vmem:[#allocation2 + $0x100] sm:$0x3] %vm3170_vm5, %v9066_v18  ;;  %3204 = vst.msk [vmem:[#allocation2 + $0x118] sm:$0x3] %vm3170_vm5, %v9066_v18  ;;  %7959 = vmatmul.mubr.msk.f32.vlgmr.msra.gmra.mrb[0].mxu1 %vm3167_vm4, %v3395_v6 }
 0x261   : > { %3202 = vst.msk [vmem:[#allocation2 + $0x108] sm:$0xff] %vm3167_vm4, %v9066_v18  ;;  %3203 = vst.msk [vmem:[#allocation2 + $0x110] sm:$0xff] %vm3167_vm4, %v9066_v18  ;;  %8007 = vmatpush3.msra.mxu1 %v3342_v10 }
 0x262   : > { %3205 = vst.msk [vmem:[#allocation2 + $0x120] sm:$0xff] %vm3167_vm4, %v9066_v18  ;;  %3206 = vst.msk [vmem:[#allocation2 + $0x128] sm:$0xff] %vm3167_vm4, %v9066_v18  ;;  %8056 = vmatprep.subr.mxu1 %v10320_v19 }
 0x263   : > { %3207 = vst.msk [vmem:[#allocation2 + $0x130] sm:$0x3] %vm3170_vm5, %v9066_v18  ;;  %3210 = vst.msk [vmem:[#allocation2 + $0x148] sm:$0x3] %vm3170_vm5, %v9066_v18 }
 0x264   : > { %3208 = vst.msk [vmem:[#allocation2 + $0x138] sm:$0xff] %vm3167_vm4, %v9066_v18  ;;  %3209 = vst.msk [vmem:[#allocation2 + $0x140] sm:$0xff] %vm3167_vm4, %v9066_v18 }
 0x265   : > { %3211 = vst.msk [vmem:[#allocation2 + $0x150] sm:$0xff] %vm3167_vm4, %v9066_v18  ;;  %3212 = vst.msk [vmem:[#allocation2 + $0x158] sm:$0xff] %vm3167_vm4, %v9066_v18 }
 0x266   : > { %3213 = vst.msk [vmem:[#allocation2 + $0x160] sm:$0x3] %vm3170_vm5, %v9066_v18  ;;  %3216 = vst.msk [vmem:[#allocation2 + $0x178] sm:$0x3] %vm3170_vm5, %v9066_v18 }
 0x267   : > { %3214 = vst.msk [vmem:[#allocation2 + $0x168] sm:$0xff] %vm3167_vm4, %v9066_v18  ;;  %3215 = vst.msk [vmem:[#allocation2 + $0x170] sm:$0xff] %vm3167_vm4, %v9066_v18 }
 0x268   : > { %3217 = vst.msk [vmem:[#allocation2 + $0x180] sm:$0xff] %vm3167_vm4, %v9066_v18  ;;  %3218 = vst.msk [vmem:[#allocation2 + $0x188] sm:$0xff] %vm3167_vm4, %v9066_v18 }
 0x269   : > { %3219 = vst.msk [vmem:[#allocation2 + $0x190] sm:$0x3] %vm3170_vm5, %v9066_v18  ;;  %3222 = vst.msk [vmem:[#allocation2 + $0x1a8] sm:$0x3] %vm3170_vm5, %v9066_v18 }
 0x26a   : > { %3220 = vst.msk [vmem:[#allocation2 + $0x198] sm:$0xff] %vm3167_vm4, %v9066_v18  ;;  %3221 = vst.msk [vmem:[#allocation2 + $0x1a0] sm:$0xff] %vm3167_vm4, %v9066_v18 }
 0x2f6   : > { %v7910_v20 = vpop.f32.mrb[0].mxu0 }
 0x2f7   : > { %v3070_v37 = vadd.f32 %v7910_v20, %v10326_v51  ;;  %v2871_v4 = vpop.f32.mrb[1].mxu0 }
 0x2f8   : > { %v3069_v12 = vadd.f32 %v10326_v51, %v2871_v4 }
 0x2f9   : > { %v3224_v1 = vmax.f32 %v3070_v37, 0.0 }
 0x2fa   : > { %v3223_v35 = vmax.f32 %v3069_v12, 0.0  ;;  %3101 = vxpose.xlu0.b32.start [1/16] (narrow) %v3069_v12, 8  ;;  %v7913_v25 = vpop.f32.mrb[2].mxu0 }
 0x2fb   : > { %3257 = vst.msk [vmem:[#allocation2 + $0x21] sm:$0xff] %vm3167_vm4, %v3224_v1  ;;  %v3072_v13 = vadd.f32 %v7913_v25, %v10326_v51  ;;  %v2881_v14 = vpop.f32.mrb[3].mxu0 }
 0x2fc   : > { %3256 = vst.msk [vmem:[#allocation2 + $0x19] sm:$0xff] %vm3167_vm4, %v3223_v35  ;;  %v3071_v22 = vadd.f32 %v10326_v51, %v2881_v14 }
 0x2fd   : > { %v3226_v23 = vmax.f32 %v3072_v13, 0.0 }
 0x2fe   : > { %v3225_v31 = vmax.f32 %v3071_v22, 0.0  ;;  %3102 = vxpose.xlu0.b32.cont [2/16] (narrow) %v3070_v37, 8  ;;  %v7916_v32 = vpop.f32.mrb[4].mxu0 }
 0x2ff   : > { %3259 = vst.msk [vmem:[#allocation2 + $0x39] sm:$0xff] %vm3167_vm4, %v3226_v23  ;;  %v3074_v27 = vadd.f32 %v7916_v32, %v10326_v51  ;;  %v2891_v33 = vpop.f32.mrb[5].mxu0 }
 0x300   : > { %3258 = vst.msk [vmem:[#allocation2 + $0x31] sm:$0xff] %vm3167_vm4, %v3225_v31  ;;  %v3073_v39 = vadd.f32 %v10326_v51, %v2891_v33 }
 0x301   : > { %v3228_v40 = vmax.f32 %v3074_v27, 0.0 }
 0x302   : > { %v3227_v43 = vmax.f32 %v3073_v39, 0.0  ;;  %3103 = vxpose.xlu0.b32.cont [3/16] (narrow) %v3071_v22, 8  ;;  %v7919_v47 = vpop.f32.mrb[6].mxu0  ;;  %v10338_v48 = vld [vmem:[#allocation2 + $0x28] sm:$0x3] }
 0x303   : > { %3261 = vst.msk [vmem:[#allocation2 + $0x51] sm:$0xff] %vm3167_vm4, %v3228_v40  ;;  %v10342_v55 = vadd.f32 %v7919_v47, %v10326_v51  ;;  %v2901_v56 = vpop.f32.mrb[7].mxu0  ;;  %v10344_v63 = vld [vmem:[#allocation2 + $0x18] sm:$0xff]  ;;  %v10346_v0 = vld [vmem:[#allocation2 + $0x20] sm:$0xff]  ;;  %v3399_v15 = vrot.slane %v10338_v48, 1 }
 0x304   : > { %3260 = vst.msk [vmem:[#allocation2 + $0x49] sm:$0xff] %vm3167_vm4, %v3227_v43  ;;  %v3075_v16 = vadd.f32 %v10326_v51, %v2901_v56  ;;  %v3396_v34 = vrot.slane %v10344_v63, 1  ;;  %v3397_v36 = vrot.slane %v10346_v0, 1 }
 0x305   : > { %v3230_v44 = vmax.f32 %v10342_v55, 0.0 }
 0x306   : > { %v3229_v53 = vmax.f32 %v3075_v16, 0.0  ;;  %3104 = vxpose.xlu0.b32.cont [4/16] (narrow) %v3072_v13, 8  ;;  %v7922_v58 = vpop.f32.mrb[8].mxu0  ;;  %v10355_v60 = vsel %vm364_vm1, %v3396_v34, %v3397_v36  ;;  %v10358_v5 = vsel %vm364_vm1, %v3397_v36, %v3399_v15  ;;  %v10360_v26 = vld [vmem:[#allocation2 + $0x40] sm:$0x3] }
 0x307   : > { %11840 = vst [vmem:[#allocation9_spill] sm:$0xff] %v10358_v5  ;;  %3263 = vst.msk [vmem:[#allocation2 + $0x69] sm:$0xff] %vm3167_vm4, %v3230_v44  ;;  %v10364_v28 = vadd.f32 %v7922_v58, %v10326_v51  ;;  %v2911_v45 = vpop.f32.mrb[9].mxu0  ;;  %7961 = vmatprep.mubr.msk.f32.mxu1 %vm3167_vm4, %v10355_v60  ;;  %v10368_v50 = vld [vmem:[#allocation2 + $0x30] sm:$0xff]  ;;  %v10370_v21 = vld [vmem:[#allocation2 + $0x38] sm:$0xff]  ;;  %v3404_v61 = vrot.slane %v10360_v26, 1 }
 0x308   : > { %3262 = vst.msk [vmem:[#allocation2 + $0x61] sm:$0xff] %vm3167_vm4, %v3229_v53  ;;  %v10375_v7 = vadd.f32 %v10326_v51, %v2911_v45  ;;  %7962 = vmatmul.mubr.msk.f32.gmra.mrb[2].mxu1 %vm3167_vm4, %v10358_v5  ;;  %v3401_v42 = vrot.slane %v10368_v50, 1  ;;  %v3402_v57 = vrot.slane %v10370_v21, 1 }
 0x309   : > { %v3232_v3 = vmax.f32 %v10364_v28, 0.0 }
 0x30a   : > { %v3231_v30 = vmax.f32 %v10375_v7, 0.0  ;;  %3105 = vxpose.xlu0.b32.cont [5/16] (narrow) %v3073_v39, 8  ;;  %v7925_v38 = vpop.f32.mrb[10].mxu0  ;;  %v10384_v46 = vsel %vm364_vm1, %v3401_v42, %v3402_v57  ;;  %v10387_v54 = vsel %vm364_vm1, %v3402_v57, %v3404_v61  ;;  %v10389_v62 = vld [vmem:[#allocation2 + $0x58] sm:$0x3] }
 0x30b   : > { %11841 = vst [vmem:[#allocation20_spill] sm:$0xff] %v10384_v46  ;;  %11842 = vst [vmem:[#allocation31_spill] sm:$0xff] %v10387_v54  ;;  %v10393_v11 = vadd.f32 %v7925_v38, %v10326_v51  ;;  %v2921_v29 = vpop.f32.mrb[11].mxu0  ;;  %7964 = vmatprep.mubr.msk.f32.mxu1 %vm3167_vm4, %v10384_v46  ;;  %v10397_v52 = vld [vmem:[#allocation2 + $0x48] sm:$0xff]  ;;  %v10399_v18 = vld [vmem:[#allocation2 + $0x50] sm:$0xff]  ;;  %v3409_v49 = vrot.slane %v10389_v62, 1 }
 0x30c   : > { %3265 = vst.msk [vmem:[#allocation2 + $0x81] sm:$0xff] %vm3167_vm4, %v3232_v3  ;;  %3264 = vst.msk [vmem:[#allocation2 + $0x79] sm:$0xff] %vm3167_vm4, %v3231_v30  ;;  %v10404_v2 = vadd.f32 %v10326_v51, %v2921_v29  ;;  %7965 = vmatmul.mubr.msk.f32.gmra.mrb[4].mxu1 %vm3167_vm4, %v10387_v54  ;;  %v3406_v9 = vrot.slane %v10397_v52, 1  ;;  %v3407_v24 = vrot.slane %v10399_v18, 1 }
 0x30d   : > { %v3234_v41 = vmax.f32 %v10393_v11, 0.0 }
 0x30e   : > { %v3233_v6 = vmax.f32 %v10404_v2, 0.0  ;;  %3106 = vxpose.xlu0.b32.cont [6/16] (narrow) %v3074_v27, 8  ;;  %v7928_v10 = vpop.f32.mrb[12].mxu0  ;;  %v10413_v20 = vsel %vm364_vm1, %v3406_v9, %v3407_v24  ;;  %v10416_v37 = vsel %vm364_vm1, %v3407_v24, %v3409_v49  ;;  %v10418_v4 = vld [vmem:[#allocation2 + $0x70] sm:$0x3] }
 0x30f   : > { %11843 = vst [vmem:[#allocation32_spill] sm:$0xff] %v10413_v20  ;;  %11844 = vst [vmem:[#allocation33_spill] sm:$0xff] %v10416_v37  ;;  %v10422_v12 = vadd.f32 %v7928_v10, %v10326_v51  ;;  %v2931_v1 = vpop.f32.mrb[13].mxu0  ;;  %7967 = vmatprep.mubr.msk.f32.mxu1 %vm3167_vm4, %v10413_v20  ;;  %v10426_v35 = vld [vmem:[#allocation2 + $0x60] sm:$0xff]  ;;  %v10428_v25 = vld [vmem:[#allocation2 + $0x68] sm:$0xff]  ;;  %v3414_v13 = vrot.slane %v10418_v4, 1 }
 0x310   : > { %3267 = vst.msk [vmem:[#allocation2 + $0x99] sm:$0xff] %vm3167_vm4, %v3234_v41  ;;  %3266 = vst.msk [vmem:[#allocation2 + $0x91] sm:$0xff] %vm3167_vm4, %v3233_v6  ;;  %v10433_v14 = vadd.f32 %v10326_v51, %v2931_v1  ;;  %7968 = vmatmul.mubr.msk.f32.gmra.mrb[6].mxu1 %vm3167_vm4, %v10416_v37  ;;  %v3411_v22 = vrot.slane %v10426_v35, 1  ;;  %v3412_v23 = vrot.slane %v10428_v25, 1 }
 0x311   : > { %v3236_v31 = vmax.f32 %v10422_v12, 0.0 }
 0x312   : > { %v3235_v32 = vmax.f32 %v10433_v14, 0.0  ;;  %3107 = vxpose.xlu0.b32.cont [7/16] (narrow) %v3075_v16, 8  ;;  %v7931_v27 = vpop.f32.mrb[14].mxu0  ;;  %v10442_v33 = vsel %vm364_vm1, %v3411_v22, %v3412_v23  ;;  %v10445_v39 = vsel %vm364_vm1, %v3412_v23, %v3414_v13 }
 0x313   : > { %11845 = vst [vmem:[#allocation34_spill] sm:$0xff] %v10442_v33  ;;  %11846 = vst [vmem:[#allocation41_spill] sm:$0xff] %v10445_v39  ;;  %v10447_v40 = vld [vmem:[#allocation2 + $0x88] sm:$0x3]  ;;  %v10451_v43 = vadd.f32 %v7931_v27, %v10326_v51  ;;  %v2941_v47 = vpop.f32.mrb[15].mxu0  ;;  %7970 = vmatprep.mubr.msk.f32.mxu1 %vm3167_vm4, %v10442_v33  ;;  %v10455_v56 = vld [vmem:[#allocation2 + $0x78] sm:$0xff] }
 0x314   : > { %3269 = vst.msk [vmem:[#allocation2 + $0xb1] sm:$0xff] %vm3167_vm4, %v3236_v31  ;;  %v10457_v15 = vld [vmem:[#allocation2 + $0x80] sm:$0xff]  ;;  %v3419_v16 = vrot.slane %v10447_v40, 1  ;;  %3268 = vst.msk [vmem:[#allocation2 + $0xa9] sm:$0xff] %vm3167_vm4, %v3235_v32  ;;  %v10462_v34 = vadd.f32 %v10326_v51, %v2941_v47  ;;  %7971 = vmatmul.mubr.msk.f32.gmra.mrb[8].mxu1 %vm3167_vm4, %v10445_v39  ;;  %v3416_v36 = vrot.slane %v10455_v56, 1 }
 0x315   : > { %v3417_v44 = vrot.slane %v10457_v15, 1  ;;  %v3238_v53 = vmax.f32 %v10451_v43, 0.0 }
 0x316   : > { %v3237_v58 = vmax.f32 %v10462_v34, 0.0  ;;  %3108 = vxpose.xlu0.b32.cont [8/16] (narrow) %v10342_v55, 8  ;;  %v7934_v45 = vpop.f32.mrb[16].mxu0 }
 0x317   : > { %v10472_v61 = vsel %vm364_vm1, %v3416_v36, %v3417_v44  ;;  %v10475_v42 = vsel %vm364_vm1, %v3417_v44, %v3419_v16  ;;  %v10477_v57 = vld [vmem:[#allocation2 + $0xa0] sm:$0x3]  ;;  %3271 = vst.msk [vmem:[#allocation2 + $0xc9] sm:$0xff] %vm3167_vm4, %v3238_v53  ;;  %v3086_v3 = vadd.f32 %v7934_v45, %v10326_v51  ;;  %v2951_v30 = vpop.f32.mrb[17].mxu0  ;;  %v10483_v38 = vld [vmem:[#allocation2 + $0x90] sm:$0xff]  ;;  %v10485_v55 = vld [vmem:[#allocation2 + $0x98] sm:$0xff] }
 0x318   : > { %11847 = vst [vmem:[#allocation46_spill] sm:$0xff] %v10472_v61  ;;  %11848 = vst [vmem:[#allocation10_spill] sm:$0xff] %v10475_v42  ;;  %7973 = vmatprep.mubr.msk.f32.mxu1 %vm3167_vm4, %v10472_v61  ;;  %v3424_v29 = vrot.slane %v10477_v57, 1  ;;  %v3085_v49 = vadd.f32 %v10326_v51, %v2951_v30  ;;  %v3421_v9 = vrot.slane %v10483_v38, 1  ;;  %v3422_v24 = vrot.slane %v10485_v55, 1 }
 0x319   : > { %3270 = vst.msk [vmem:[#allocation2 + $0xc1] sm:$0xff] %vm3167_vm4, %v3237_v58  ;;  %7974 = vmatmul.mubr.msk.f32.gmra.mrb[10].mxu1 %vm3167_vm4, %v10475_v42  ;;  %v3240_v41 = vmax.f32 %v3086_v3, 0.0 }
 0x31a   : > { %v3239_v6 = vmax.f32 %v3085_v49, 0.0  ;;  %3109 = vxpose.xlu0.b32.cont [9/16] (narrow) %v10375_v7, 8  ;;  %3133 = vxpose.xlu1.b32.start [1/16] (narrow) %v3085_v49, 8  ;;  %v7937_v10 = vpop.f32.mrb[18].mxu0  ;;  %v10496_v1 = vsel %vm364_vm1, %v3421_v9, %v3422_v24  ;;  %v10499_v13 = vsel %vm364_vm1, %v3422_v24, %v3424_v29 }
 0x31b   : > { %11849 = vst [vmem:[#allocation11_spill] sm:$0xff] %v10496_v1  ;;  %11850 = vst [vmem:[#allocation12_spill] sm:$0xff] %v10499_v13  ;;  %v10501_v22 = vld [vmem:[#allocation2 + $0xb8] sm:$0x3]  ;;  %v3088_v23 = vadd.f32 %v7937_v10, %v10326_v51  ;;  %v2961_v31 = vpop.f32.mrb[19].mxu0  ;;  %7976 = vmatprep.mubr.msk.f32.mxu1 %vm3167_vm4, %v10496_v1  ;;  %v10507_v32 = vld [vmem:[#allocation2 + $0xa8] sm:$0xff] }
 0x31c   : > { %3273 = vst.msk [vmem:[#allocation2 + $0xe1] sm:$0xff] %vm3167_vm4, %v3240_v41  ;;  %v10509_v7 = vld [vmem:[#allocation2 + $0xb0] sm:$0xff]  ;;  %v3429_v27 = vrot.slane %v10501_v22, 1  ;;  %3272 = vst.msk [vmem:[#allocation2 + $0xd9] sm:$0xff] %vm3167_vm4, %v3239_v6  ;;  %v3087_v47 = vadd.f32 %v10326_v51, %v2961_v31  ;;  %v3426_v16 = vrot.slane %v10507_v32, 1 }
 0x31d   : > { %7977 = vmatmul.mubr.msk.f32.gmra.mrb[12].mxu1 %vm3167_vm4, %v10499_v13  ;;  %v3427_v36 = vrot.slane %v10509_v7, 1  ;;  %v3242_v44 = vmax.f32 %v3088_v23, 0.0 }
 0x31e   : > { %v3241_v53 = vmax.f32 %v3087_v47, 0.0  ;;  %3110 = vxpose.xlu0.b32.cont [10/16] (narrow) %v10364_v28, 8  ;;  %3134 = vxpose.xlu1.b32.cont [2/16] (narrow) %v3086_v3, 8  ;;  %v7940_v58 = vpop.f32.mrb[20].mxu0  ;;  %v10525_v29 = vld [vmem:[#allocation2 + $0xd0] sm:$0x3] }
 0x31f   : > { %v10520_v45 = vsel %vm364_vm1, %v3426_v16, %v3427_v36  ;;  %v10523_v30 = vsel %vm364_vm1, %v3427_v36, %v3429_v27  ;;  %3275 = vst.msk [vmem:[#allocation2 + $0xf9] sm:$0xff] %vm3167_vm4, %v3242_v44  ;;  %v10529_v49 = vadd.f32 %v7940_v58, %v10326_v51  ;;  %v2971_v9 = vpop.f32.mrb[21].mxu0  ;;  %v3434_v24 = vrot.slane %v10525_v29, 1 }
 0x320   : > { %11851 = vst [vmem:[#allocation13_spill] sm:$0xff] %v10520_v45  ;;  %11852 = vst [vmem:[#allocation14_spill] sm:$0xff] %v10523_v30  ;;  %7979 = vmatprep.mubr.msk.f32.mxu1 %vm3167_vm4, %v10520_v45  ;;  %v10533_v28 = vld [vmem:[#allocation2 + $0xc0] sm:$0xff]  ;;  %v10535_v3 = vld [vmem:[#allocation2 + $0xc8] sm:$0xff]  ;;  %v3089_v41 = vadd.f32 %v10326_v51, %v2971_v9 }
 0x321   : > { %3274 = vst.msk [vmem:[#allocation2 + $0xf1] sm:$0xff] %vm3167_vm4, %v3241_v53  ;;  %7980 = vmatmul.mubr.msk.f32.gmra.mrb[14].mxu1 %vm3167_vm4, %v10523_v30  ;;  %v3431_v6 = vrot.slane %v10533_v28, 1  ;;  %v3432_v10 = vrot.slane %v10535_v3, 1  ;;  %v3244_v31 = vmax.f32 %v10529_v49, 0.0 }
 0x322   : > { %v3243_v27 = vmax.f32 %v3089_v41, 0.0  ;;  %3111 = vxpose.xlu0.b32.cont [11/16] (narrow) %v10404_v2, 8  ;;  %3135 = vxpose.xlu1.b32.cont [3/16] (narrow) %v3087_v47, 8  ;;  %v7943_v16 = vpop.f32.mrb[22].mxu0 }
 0x323   : > { %v10547_v36 = vsel %vm364_vm1, %v3431_v6, %v3432_v10  ;;  %v10550_v44 = vsel %vm364_vm1, %v3432_v10, %v3434_v24  ;;  %v10552_v53 = vld [vmem:[#allocation2 + $0xe8] sm:$0x3]  ;;  %3277 = vst.msk [vmem:[#allocation2 + $0x111] sm:$0xff] %vm3167_vm4, %v3244_v31  ;;  %v10556_v58 = vadd.f32 %v7943_v16, %v10326_v51  ;;  %v2981_v9 = vpop.f32.mrb[23].mxu0  ;;  %v10560_v2 = vld [vmem:[#allocation2 + $0xd8] sm:$0xff]  ;;  %v10562_v47 = vld [vmem:[#allocation2 + $0xe0] sm:$0xff] }
 0x324   : > { %11853 = vst [vmem:[#allocation15_spill] sm:$0xff] %v10547_v36  ;;  %11854 = vst [vmem:[#allocation16_spill] sm:$0xff] %v10550_v44  ;;  %7982 = vmatprep.mubr.msk.f32.mxu1 %vm3167_vm4, %v10547_v36  ;;  %v3439_v6 = vrot.slane %v10552_v53, 1  ;;  %v10567_v24 = vadd.f32 %v10326_v51, %v2981_v9  ;;  %v3436_v10 = vrot.slane %v10560_v2, 1  ;;  %v3437_v31 = vrot.slane %v10562_v47, 1 }
 0x325   : > { %3276 = vst.msk [vmem:[#allocation2 + $0x109] sm:$0xff] %vm3167_vm4, %v3243_v27  ;;  %7983 = vmatmul.mubr.msk.f32.gmra.mrb[16].mxu1 %vm3167_vm4, %v10550_v44  ;;  %v3246_v16 = vmax.f32 %v10556_v58, 0.0 }
 0x326   : > { %v3245_v36 = vmax.f32 %v10567_v24, 0.0  ;;  %3112 = vxpose.xlu0.b32.cont [12/16] (narrow) %v10393_v11, 8  ;;  %3136 = vxpose.xlu1.b32.cont [4/16] (narrow) %v3088_v23, 8  ;;  %v7946_v30 = vpop.f32.mrb[24].mxu0  ;;  %v10577_v27 = vsel %vm364_vm1, %v3436_v10, %v3437_v31  ;;  %v10580_v9 = vsel %vm364_vm1, %v3437_v31, %v3439_v6  ;;  %v10582_v45 = vld [vmem:[#allocation2 + $0x100] sm:$0x3] }
 0x327   : > { %11855 = vst [vmem:[#allocation17_spill] sm:$0xff] %v10577_v27  ;;  %11856 = vst [vmem:[#allocation18_spill] sm:$0xff] %v10580_v9  ;;  %v10586_v44 = vadd.f32 %v7946_v30, %v10326_v51  ;;  %v2991_v13 = vpop.f32.mrb[25].mxu0  ;;  %7985 = vmatprep.mubr.msk.f32.mxu1 %vm3167_vm4, %v10577_v27  ;;  %v3444_v10 = vrot.slane %v10582_v45, 1 }
 0x328   : > { %3279 = vst.msk [vmem:[#allocation2 + $0x129] sm:$0xff] %vm3167_vm4, %v3246_v16  ;;  %v10590_v11 = vld [vmem:[#allocation2 + $0xf0] sm:$0xff]  ;;  %v10592_v23 = vld [vmem:[#allocation2 + $0xf8] sm:$0xff]  ;;  %3278 = vst.msk [vmem:[#allocation2 + $0x121] sm:$0xff] %vm3167_vm4, %v3245_v36  ;;  %v10597_v6 = vadd.f32 %v10326_v51, %v2991_v13 }
 0x329   : > { %7986 = vmatmul.mubr.msk.f32.gmra.mrb[18].mxu1 %vm3167_vm4, %v10580_v9  ;;  %v3441_v30 = vrot.slane %v10590_v11, 1  ;;  %v3442_v31 = vrot.slane %v10592_v23, 1  ;;  %v3248_v16 = vmax.f32 %v10586_v44, 0.0 }
 0x32a   : > { %v3247_v27 = vmax.f32 %v10597_v6, 0.0  ;;  %3113 = vxpose.xlu0.b32.cont [13/16] (narrow) %v10433_v14, 8  ;;  %3137 = vxpose.xlu1.b32.cont [5/16] (narrow) %v3089_v41, 8  ;;  %v7949_v1 = vpop.f32.mrb[26].mxu0  ;;  %v10612_v42 = vld [vmem:[#allocation2 + $0x118] sm:$0x3] }
 0x32b   : > { %v10607_v36 = vsel %vm364_vm1, %v3441_v30, %v3442_v31  ;;  %v10610_v13 = vsel %vm364_vm1, %v3442_v31, %v3444_v10  ;;  %3281 = vst.msk [vmem:[#allocation2 + $0x141] sm:$0xff] %vm3167_vm4, %v3248_v16  ;;  %v10616_v9 = vadd.f32 %v7949_v1, %v10326_v51  ;;  %v3001_v61 = vpop.f32.mrb[27].mxu0  ;;  %v3449_v30 = vrot.slane %v10612_v42, 1 }
 0x32c   : > { %11857 = vst [vmem:[#allocation19_spill] sm:$0xff] %v10607_v36  ;;  %11858 = vst [vmem:[#allocation21_spill] sm:$0xff] %v10610_v13  ;;  %7988 = vmatprep.mubr.msk.f32.mxu1 %vm3167_vm4, %v10607_v36  ;;  %v10620_v14 = vld [vmem:[#allocation2 + $0x108] sm:$0xff]  ;;  %v10622_v41 = vld [vmem:[#allocation2 + $0x110] sm:$0xff]  ;;  %v10627_v10 = vadd.f32 %v10326_v51, %v3001_v61 }
 0x32d   : > { %3280 = vst.msk [vmem:[#allocation2 + $0x139] sm:$0xff] %vm3167_vm4, %v3247_v27  ;;  %7989 = vmatmul.mubr.msk.f32.gmra.mrb[20].mxu1 %vm3167_vm4, %v10610_v13  ;;  %v3446_v1 = vrot.slane %v10620_v14, 1  ;;  %v3447_v31 = vrot.slane %v10622_v41, 1  ;;  %v3250_v16 = vmax.f32 %v10616_v9, 0.0 }
 0x32e   : > { %v3249_v36 = vmax.f32 %v10627_v10, 0.0  ;;  %3114 = vxpose.xlu0.b32.cont [14/16] (narrow) %v10422_v12, 8  ;;  %3138 = vxpose.xlu1.b32.cont [6/16] (narrow) %v10529_v49, 8  ;;  %v7952_v39 = vpop.f32.mrb[28].mxu0 }
 0x32f   : > { %v10638_v27 = vsel %vm364_vm1, %v3446_v1, %v3447_v31  ;;  %v10641_v61 = vsel %vm364_vm1, %v3447_v31, %v3449_v30  ;;  %v10643_v13 = vld [vmem:[#allocation2 + $0x130] sm:$0x3]  ;;  %3283 = vst.msk [vmem:[#allocation2 + $0x159] sm:$0xff] %vm3167_vm4, %v3250_v16  ;;  %v10647_v33 = vadd.f32 %v7952_v39, %v10326_v51  ;;  %v3011_v37 = vpop.f32.mrb[29].mxu0  ;;  %v10651_v12 = vld [vmem:[#allocation2 + $0x120] sm:$0xff]  ;;  %v10653_v49 = vld [vmem:[#allocation2 + $0x128] sm:$0xff] }
 0x330   : > { %11859 = vst [vmem:[#allocation22_spill] sm:$0xff] %v10638_v27  ;;  %11860 = vst [vmem:[#allocation23_spill] sm:$0xff] %v10641_v61  ;;  %7991 = vmatprep.mubr.msk.f32.mxu1 %vm3167_vm4, %v10638_v27  ;;  %v3454_v1 = vrot.slane %v10643_v13, 1  ;;  %v10658_v30 = vadd.f32 %v10326_v51, %v3011_v37  ;;  %v3451_v39 = vrot.slane %v10651_v12, 1  ;;  %v3452_v31 = vrot.slane %v10653_v49, 1 }
 0x331   : > { %3282 = vst.msk [vmem:[#allocation2 + $0x151] sm:$0xff] %vm3167_vm4, %v3249_v36  ;;  %7992 = vmatmul.mubr.msk.f32.gmra.mrb[22].mxu1 %vm3167_vm4, %v10641_v61  ;;  %v3252_v16 = vmax.f32 %v10647_v33, 0.0 }
 0x332   : > { %v3251_v27 = vmax.f32 %v10658_v30, 0.0  ;;  %3115 = vxpose.xlu0.b32.cont [15/16] (narrow) %v10462_v34, 8  ;;  %3139 = vxpose.xlu1.b32.cont [7/16] (narrow) %v10567_v24, 8  ;;  %v7955_v20 = vpop.f32.mrb[30].mxu0  ;;  %v10669_v36 = vsel %vm364_vm1, %v3451_v39, %v3452_v31  ;;  %v10672_v37 = vsel %vm364_vm1, %v3452_v31, %v3454_v1  ;;  %v10674_v61 = vld [vmem:[#allocation2 + $0x148] sm:$0x3] }
 0x333   : > { %11861 = vst [vmem:[#allocation24_spill] sm:$0xff] %v10669_v36  ;;  %11862 = vst [vmem:[#allocation25_spill] sm:$0xff] %v10672_v37  ;;  %v3100_v54 = vadd.f32 %v7955_v20, %v10326_v51  ;;  %v3021_v46 = vpop.f32.mrb[31].mxu0  ;;  %7994 = vmatprep.mubr.msk.f32.mxu1 %vm3167_vm4, %v10669_v36  ;;  %v3459_v39 = vrot.slane %v10674_v61, 1 }
 0x334   : > { %3285 = vst.msk [vmem:[#allocation2 + $0x171] sm:$0xff] %vm3167_vm4, %v3252_v16  ;;  %v10680_v34 = vld [vmem:[#allocation2 + $0x138] sm:$0xff]  ;;  %v10682_v24 = vld [vmem:[#allocation2 + $0x140] sm:$0xff]  ;;  %3284 = vst.msk [vmem:[#allocation2 + $0x169] sm:$0xff] %vm3167_vm4, %v3251_v27  ;;  %v3099_v1 = vadd.f32 %v10326_v51, %v3021_v46 }
 0x335   : > { %7995 = vmatmul.mubr.msk.f32.gmra.mrb[24].mxu1 %vm3167_vm4, %v10672_v37  ;;  %v3456_v31 = vrot.slane %v10680_v34, 1  ;;  %v3457_v20 = vrot.slane %v10682_v24, 1  ;;  %v3254_v16 = vmax.f32 %v3100_v54, 0.0 }
 0x336   : > { %v3253_v5 = vmax.f32 %v3099_v1, 0.0  ;;  %3116 = vxpose.xlu0.b32.end [16/16] (narrow) %v10451_v43, 8  ;;  %3140 = vxpose.xlu1.b32.cont [8/16] (narrow) %v10556_v58, 8  ;;  %v10699_v51 = vld [vmem:[#allocation2 + $0x160] sm:$0x3] }
 0x337   : > { %v10694_v36 = vsel %vm364_vm1, %v3456_v31, %v3457_v20  ;;  %v10697_v27 = vsel %vm364_vm1, %v3457_v20, %v3459_v39  ;;  %3287 = vst.msk [vmem:[#allocation2 + $0x189] sm:$0xff] %vm3167_vm4, %v3254_v16  ;;  %v3464_v43 = vrot.slane %v10699_v51, 1 }
 0x338   : > { %11863 = vst [vmem:[#allocation26_spill] sm:$0xff] %v10694_v36  ;;  %11864 = vst [vmem:[#allocation27_spill] sm:$0xff] %v10697_v27  ;;  %7997 = vmatprep.mubr.msk.f32.mxu1 %vm3167_vm4, %v10694_v36  ;;  %v10704_v46 = vld [vmem:[#allocation2 + $0x150] sm:$0xff]  ;;  %v10706_v37 = vld [vmem:[#allocation2 + $0x158] sm:$0xff] }
 0x339   : > { %3286 = vst.msk [vmem:[#allocation2 + $0x181] sm:$0xff] %vm3167_vm4, %v3253_v5  ;;  %7998 = vmatmul.mubr.msk.f32.gmra.mrb[26].mxu1 %vm3167_vm4, %v10697_v27  ;;  %v3461_v58 = vrot.slane %v10704_v46, 1  ;;  %v3462_v39 = vrot.slane %v10706_v37, 1 }
 0x33a   : > { %3141 = vxpose.xlu1.b32.cont [9/16] (narrow) %v10597_v6, 8 }
 0x33b   : > { %v10716_v31 = vsel %vm364_vm1, %v3461_v58, %v3462_v39  ;;  %v10719_v20 = vsel %vm364_vm1, %v3462_v39, %v3464_v43  ;;  %v10721_v16 = vld [vmem:[#allocation2 + $0x178] sm:$0x3]  ;;  %v10725_v5 = vld [vmem:[#allocation2 + $0x168] sm:$0xff]  ;;  %v10727_v27 = vld [vmem:[#allocation2 + $0x170] sm:$0xff] }
 0x33c   : > { %11865 = vst [vmem:[#allocation28_spill] sm:$0xff] %v10716_v31  ;;  %8000 = vmatprep.mubr.msk.f32.mxu1 %vm3167_vm4, %v10716_v31  ;;  %v3469_v36 = vrot.slane %v10721_v16, 1  ;;  %v3466_v6 = vrot.slane %v10725_v5, 1  ;;  %v3467_v58 = vrot.slane %v10727_v27, 1 }
 0x33d   : > { %8001 = vmatmul.mubr.msk.f32.gmra.mrb[28].mxu1 %vm3167_vm4, %v10719_v20 }
 0x33e   : > { %3142 = vxpose.xlu1.b32.cont [10/16] (narrow) %v10586_v44, 8  ;;  %v10736_v43 = vsel %vm364_vm1, %v3466_v6, %v3467_v58  ;;  %v10739_v39 = vsel %vm364_vm1, %v3467_v58, %v3469_v36  ;;  %v6703_v44 = vld [vmem:[%s11583_s3 + $0x18] sm:$0xff]  ;;  %v4062_v6 = vrot.slane %v10370_v21, 2  ;;  %v4064_v58 = vrot.slane %v10360_v26, 2 }
 0x33f   : > { %11866 = vst [vmem:[#allocation29_spill] sm:$0xff] %v10736_v43  ;;  %8003 = vmatprep.mubr.msk.f32.mxu1 %vm3167_vm4, %v10736_v43 }
 0x341   : > { %8004 = vmatmul.mubr.msk.f32.gmra.mrb[30].mxu1 %vm3167_vm4, %v10739_v39 }
 0x342   : > { %8008 = vmatprep.mubr.msk.f32.mxu1 %vm3167_vm4, %v10298_v17  ;;  %3143 = vxpose.xlu1.b32.cont [11/16] (narrow) %v10627_v10, 8  ;;  %v4056_v10 = vrot.slane %v10344_v63, 2 }
 0x345   : > { %8009 = vmatmul.mubr.msk.f32.vlgmr.msra.gmra.mrb[0].mxu1 %vm3167_vm4, %v10300_v59 }
 0x346   : > { %8057 = vmatpush3.msra.mxu1 %v10320_v19  ;;  %8011 = vmatprep.mubr.msk.f32.mxu1 %vm3167_vm4, %v10344_v63  ;;  %v4051_v19 = vrot.slane %v10298_v17, 2 }
 0x347   : > { %3144 = vxpose.xlu1.b32.cont [12/16] (narrow) %v10616_v9, 8  ;;  %8106 = vmatprep.subr.mxu1 %v6703_v44 }
 0x349   : > { %8012 = vmatmul.mubr.msk.f32.gmra.mrb[2].mxu1 %vm3167_vm4, %v10346_v0 }
 0x34a   : > { %8014 = vmatprep.mubr.msk.f32.mxu1 %vm3167_vm4, %v10368_v50 }
 0x34b   : > { %3145 = vxpose.xlu1.b32.cont [13/16] (narrow) %v10658_v30, 8  ;;  %v4057_v30 = vrot.slane %v10346_v0, 2 }
 0x34d   : > { %8015 = vmatmul.mubr.msk.f32.gmra.mrb[4].mxu1 %vm3167_vm4, %v10370_v21  ;;  %v10833_v36 = vsel %vm1033_vm3, %v4056_v10, %v4057_v30  ;;  %v4071_v10 = vrot.slane %v10426_v35, 2 }
 0x34e   : > { %8017 = vmatprep.mubr.msk.f32.mxu1 %vm3167_vm4, %v10397_v52 }
 0x34f   : > { %3146 = vxpose.xlu1.b32.cont [14/16] (narrow) %v10647_v33, 8  ;;  %v4054_v33 = vrot.slane %v10304_v8, 2  ;;  %v10829_v8 = vld [vmem:[%s11583_s3 + $0x20] sm:$0xff] }
 0x351   : > { %8018 = vmatmul.mubr.msk.f32.gmra.mrb[6].mxu1 %vm3167_vm4, %v10399_v18 }
 0x352   : > { %8020 = vmatprep.mubr.msk.f32.mxu1 %vm3167_vm4, %v10426_v35 }
 0x353   : > { %3147 = vxpose.xlu1.b32.cont [15/16] (narrow) %v3099_v1, 8  ;;  %v4061_v1 = vrot.slane %v10368_v50, 2 }
 0x355   : > { %8021 = vmatmul.mubr.msk.f32.gmra.mrb[8].mxu1 %vm3167_vm4, %v10428_v25 }
 0x356   : > { %8023 = vmatprep.mubr.msk.f32.mxu1 %vm3167_vm4, %v10455_v56 }
 0x357   : > { %3148 = vxpose.xlu1.b32.end [16/16] (narrow) %v3100_v54, 8  ;;  %v4052_v54 = vrot.slane %v10300_v59, 2  ;;  %v4059_v59 = vrot.slane %v10338_v48, 2 }
 0x359   : > { %8024 = vmatmul.mubr.msk.f32.gmra.mrb[10].mxu1 %vm3167_vm4, %v10457_v15  ;;  %v4053_v9 = vsel %vm1033_vm3, %v4051_v19, %v4052_v54  ;;  %v4055_v17 = vsel %vm1033_vm3, %v4052_v54, %v4054_v33  ;;  %v10841_v48 = vsel %vm1033_vm3, %v4057_v30, %v4059_v59  ;;  %v10847_v19 = vsel %vm1033_vm3, %v4061_v1, %v4062_v6 }
 0x35a   : > { %8026 = vmatprep.mubr.msk.f32.mxu1 %vm3167_vm4, %v10483_v38  ;;  %v4066_v54 = vrot.slane %v10397_v52, 2  ;;  %v10854_v33 = vsel %vm1033_vm3, %v4062_v6, %v4064_v58  ;;  %v4072_v30 = vrot.slane %v10428_v25, 2  ;;  %v4074_v59 = vrot.slane %v10418_v4, 2 }
 0x35b   : > { %v4076_v1 = vrot.slane %v10455_v56, 2  ;;  %v4077_v6 = vrot.slane %v10457_v15, 2 }
 0x35c   : > { %v10880_v58 = vsel %vm1033_vm3, %v4072_v30, %v4074_v59  ;;  %v4086_v59 = vrot.slane %v10507_v32, 2 }
 0x35d   : > { %8027 = vmatmul.mubr.msk.f32.gmra.mrb[12].mxu1 %vm3167_vm4, %v10485_v55  ;;  %v10886_v4 = vsel %vm1033_vm3, %v4076_v1, %v4077_v6  ;;  %v4087_v1 = vrot.slane %v10509_v7, 2 }
 0x35e   : > { %8029 = vmatprep.mubr.msk.f32.mxu1 %vm3167_vm4, %v10507_v32  ;;  %11867 = vst [vmem:[#allocation30_spill] sm:$0xff] %v10886_v4 }
 0x361   : > { %8030 = vmatmul.mubr.msk.f32.gmra.mrb[14].mxu1 %vm3167_vm4, %v10509_v7 }
 0x362   : > { %8032 = vmatprep.mubr.msk.f32.mxu1 %vm3167_vm4, %v10533_v28 }
 0x365   : > { %8033 = vmatmul.mubr.msk.f32.gmra.mrb[16].mxu1 %vm3167_vm4, %v10535_v3 }
 0x366   : > { %8035 = vmatprep.mubr.msk.f32.mxu1 %vm3167_vm4, %v10560_v2 }
 0x369   : > { %8036 = vmatmul.mubr.msk.f32.gmra.mrb[18].mxu1 %vm3167_vm4, %v10562_v47 }
 0x36a   : > { %8038 = vmatprep.mubr.msk.f32.mxu1 %vm3167_vm4, %v10590_v11 }
 0x36d   : > { %8039 = vmatmul.mubr.msk.f32.gmra.mrb[20].mxu1 %vm3167_vm4, %v10592_v23 }
 0x36e   : > { %8041 = vmatprep.mubr.msk.f32.mxu1 %vm3167_vm4, %v10620_v14 }
 0x371   : > { %8042 = vmatmul.mubr.msk.f32.gmra.mrb[22].mxu1 %vm3167_vm4, %v10622_v41 }
 0x372   : > { %8044 = vmatprep.mubr.msk.f32.mxu1 %vm3167_vm4, %v10651_v12 }
 0x375   : > { %8045 = vmatmul.mubr.msk.f32.gmra.mrb[24].mxu1 %vm3167_vm4, %v10653_v49 }
 0x376   : > { %8047 = vmatprep.mubr.msk.f32.mxu1 %vm3167_vm4, %v10680_v34 }
 0x379   : > { %8048 = vmatmul.mubr.msk.f32.gmra.mrb[26].mxu1 %vm3167_vm4, %v10682_v24 }
 0x37a   : > { %8050 = vmatprep.mubr.msk.f32.mxu1 %vm3167_vm4, %v10704_v46 }
 0x37d   : > { %8051 = vmatmul.mubr.msk.f32.gmra.mrb[28].mxu1 %vm3167_vm4, %v10706_v37 }
 0x37e   : > { %8053 = vmatprep.mubr.msk.f32.mxu1 %vm3167_vm4, %v10725_v5 }
 0x381   : > { %8054 = vmatmul.mubr.msk.f32.gmra.mrb[30].mxu1 %vm3167_vm4, %v10727_v27 }
 0x382   : > { %8058 = vmatprep.mubr.msk.f32.mxu1 %vm3167_vm4, %v4053_v9  ;;  %v4069_v9 = vrot.slane %v10389_v62, 2  ;;  %v10873_v62 = vsel %vm1033_vm3, %v4071_v10, %v4072_v30  ;;  %v4084_v30 = vrot.slane %v10477_v57, 2  ;;  %v10912_v57 = vsel %vm1033_vm3, %v4086_v59, %v4087_v1 }
 0x383   : > { %11869 = vst [vmem:[#allocation36_spill] sm:$0xff] %v10912_v57  ;;  %v4097_v59 = vrot.slane %v10562_v47, 2 }
 0x385   : > { %8059 = vmatmul.mubr.msk.f32.vlgmr.msra.gmra.mrb[0].mxu1 %vm3167_vm4, %v4055_v17 }
 0x386   : > { %8107 = vmatpush3.msra.mxu1 %v6703_v44  ;;  %8061 = vmatprep.mubr.msk.f32.mxu1 %vm3167_vm4, %v10833_v36  ;;  %v4067_v44 = vrot.slane %v10399_v18, 2 }
 0x387   : > { %8156 = vmatprep.subr.mxu1 %v10829_v8 }
 0x388   : > { %v10860_v26 = vsel %vm1033_vm3, %v4066_v54, %v4067_v44  ;;  %v10867_v17 = vsel %vm1033_vm3, %v4067_v44, %v4069_v9  ;;  %v4079_v54 = vrot.slane %v10447_v40, 2  ;;  %v4081_v44 = vrot.slane %v10483_v38, 2 }
 0x389   : > { %8062 = vmatmul.mubr.msk.f32.gmra.mrb[2].mxu1 %vm3167_vm4, %v10841_v48  ;;  %v4082_v9 = vrot.slane %v10485_v55, 2 }
 0x38a   : > { %8064 = vmatprep.mubr.msk.f32.mxu1 %vm3167_vm4, %v10847_v19  ;;  %v10893_v10 = vsel %vm1033_vm3, %v4077_v6, %v4079_v54  ;;  %v4089_v6 = vrot.slane %v10501_v22, 2  ;;  %v4091_v54 = vrot.slane %v10533_v28, 2 }
 0x38b   : > { %v10899_v40 = vsel %vm1033_vm3, %v4081_v44, %v4082_v9  ;;  %v4092_v44 = vrot.slane %v10535_v3, 2 }
 0x38c   : > { %11868 = vst [vmem:[#allocation35_spill] sm:$0xff] %v10899_v40 }
 0x38d   : > { %8065 = vmatmul.mubr.msk.f32.gmra.mrb[4].mxu1 %vm3167_vm4, %v10854_v33  ;;  %v10925_v22 = vsel %vm1033_vm3, %v4091_v54, %v4092_v44  ;;  %v4102_v54 = vrot.slane %v10592_v23, 2 }
 0x38e   : > { %8067 = vmatprep.mubr.msk.f32.mxu1 %vm3167_vm4, %v10860_v26  ;;  %11870 = vst [vmem:[#allocation37_spill] sm:$0xff] %v10925_v22 }
 0x391   : > { %8068 = vmatmul.mubr.msk.f32.gmra.mrb[6].mxu1 %vm3167_vm4, %v10867_v17 }
 0x392   : > { %8070 = vmatprep.mubr.msk.f32.mxu1 %vm3167_vm4, %v10873_v62 }
 0x395   : > { %8071 = vmatmul.mubr.msk.f32.gmra.mrb[8].mxu1 %vm3167_vm4, %v10880_v58 }
 0x396   : > { %8073 = vmatprep.mubr.msk.f32.mxu1 %vm3167_vm4, %v10886_v4  ;;  %v10906_v4 = vsel %vm1033_vm3, %v4082_v9, %v4084_v30  ;;  %v4094_v9 = vrot.slane %v10525_v29, 2  ;;  %v4096_v30 = vrot.slane %v10560_v2, 2 }
 0x398   : > { %v10938_v29 = vsel %vm1033_vm3, %v4096_v30, %v4097_v59  ;;  %v4107_v30 = vrot.slane %v10622_v41, 2 }
 0x399   : > { %8074 = vmatmul.mubr.msk.f32.gmra.mrb[10].mxu1 %vm3167_vm4, %v10893_v10  ;;  %11871 = vst [vmem:[#allocation38_spill] sm:$0xff] %v10938_v29 }
 0x39a   : > { %8076 = vmatprep.mubr.msk.f32.mxu1 %vm3167_vm4, %v10899_v40  ;;  %v10919_v40 = vsel %vm1033_vm3, %v4087_v1, %v4089_v6  ;;  %v4099_v1 = vrot.slane %v10552_v53, 2  ;;  %v4101_v6 = vrot.slane %v10590_v11, 2 }
 0x39c   : > { %v10951_v53 = vsel %vm1033_vm3, %v4101_v6, %v4102_v54  ;;  %v4112_v6 = vrot.slane %v10653_v49, 2 }
 0x39d   : > { %8077 = vmatmul.mubr.msk.f32.gmra.mrb[12].mxu1 %vm3167_vm4, %v10906_v4  ;;  %11872 = vst [vmem:[#allocation39_spill] sm:$0xff] %v10951_v53 }
 0x39e   : > { %8079 = vmatprep.mubr.msk.f32.mxu1 %vm3167_vm4, %v10912_v57  ;;  %v10932_v57 = vsel %vm1033_vm3, %v4092_v44, %v4094_v9  ;;  %v4104_v44 = vrot.slane %v10582_v45, 2  ;;  %v4106_v9 = vrot.slane %v10620_v14, 2 }
 0x3a0   : > { %v10964_v45 = vsel %vm1033_vm3, %v4106_v9, %v4107_v30  ;;  %v4117_v9 = vrot.slane %v10682_v24, 2 }
 0x3a1   : > { %8080 = vmatmul.mubr.msk.f32.gmra.mrb[14].mxu1 %vm3167_vm4, %v10919_v40  ;;  %11874 = vst [vmem:[#allocation42_spill] sm:$0xff] %v10964_v45 }
 0x3a2   : > { %8082 = vmatprep.mubr.msk.f32.mxu1 %vm3167_vm4, %v10925_v22  ;;  %v10945_v22 = vsel %vm1033_vm3, %v4097_v59, %v4099_v1  ;;  %v4109_v59 = vrot.slane %v10612_v42, 2  ;;  %v4111_v1 = vrot.slane %v10651_v12, 2 }
 0x3a4   : > { %v10977_v42 = vsel %vm1033_vm3, %v4111_v1, %v4112_v6  ;;  %v4122_v1 = vrot.slane %v10706_v37, 2 }
 0x3a5   : > { %8083 = vmatmul.mubr.msk.f32.gmra.mrb[16].mxu1 %vm3167_vm4, %v10932_v57  ;;  %11875 = vst [vmem:[#allocation43_spill] sm:$0xff] %v10977_v42 }
 0x3a6   : > { %8085 = vmatprep.mubr.msk.f32.mxu1 %vm3167_vm4, %v10938_v29  ;;  %v10958_v29 = vsel %vm1033_vm3, %v4102_v54, %v4104_v44  ;;  %v4114_v54 = vrot.slane %v10643_v13, 2  ;;  %v4116_v44 = vrot.slane %v10680_v34, 2 }
 0x3a7   : > { %11873 = vst [vmem:[#allocation40_spill] sm:$0xff] %v10958_v29 }
 0x3a8   : > { %v10990_v13 = vsel %vm1033_vm3, %v4116_v44, %v4117_v9  ;;  %v4127_v44 = vrot.slane %v10727_v27, 2 }
 0x3a9   : > { %8086 = vmatmul.mubr.msk.f32.gmra.mrb[18].mxu1 %vm3167_vm4, %v10945_v22  ;;  %11877 = vst [vmem:[#allocation45_spill] sm:$0xff] %v10990_v13 }
 0x3aa   : > { %8088 = vmatprep.mubr.msk.f32.mxu1 %vm3167_vm4, %v10951_v53  ;;  %v10971_v53 = vsel %vm1033_vm3, %v4107_v30, %v4109_v59  ;;  %v4119_v30 = vrot.slane %v10674_v61, 2  ;;  %v4121_v59 = vrot.slane %v10704_v46, 2 }
 0x3ac   : > { %v11003_v61 = vsel %vm1033_vm3, %v4121_v59, %v4122_v1  ;;  %v11885_v59 = vld [vmem:[#allocation33_spill] sm:$0xff] }
 0x3ad   : > { %8089 = vmatmul.mubr.msk.f32.gmra.mrb[20].mxu1 %vm3167_vm4, %v10958_v29  ;;  %11878 = vst [vmem:[#allocation47_spill] sm:$0xff] %v11003_v61 }
 0x3ae   : > { %8091 = vmatprep.mubr.msk.f32.mxu1 %vm3167_vm4, %v10964_v45  ;;  %v10984_v45 = vsel %vm1033_vm3, %v4112_v6, %v4114_v54  ;;  %v4124_v6 = vrot.slane %v10699_v51, 2  ;;  %v4126_v54 = vrot.slane %v10725_v5, 2 }
 0x3af   : > { %11876 = vst [vmem:[#allocation44_spill] sm:$0xff] %v10984_v45 }
 0x3b0   : > { %v11016_v51 = vsel %vm1033_vm3, %v4126_v54, %v4127_v44  ;;  %v11889_v54 = vld [vmem:[#allocation10_spill] sm:$0xff] }
 0x3b1   : > { %8092 = vmatmul.mubr.msk.f32.gmra.mrb[22].mxu1 %vm3167_vm4, %v10971_v53 }
 0x3b2   : > { %8094 = vmatprep.mubr.msk.f32.mxu1 %vm3167_vm4, %v10977_v42  ;;  %v10997_v42 = vsel %vm1033_vm3, %v4117_v9, %v4119_v30  ;;  %v4129_v9 = vrot.slane %v10721_v16, 2  ;;  %v6769_v16 = vld [vmem:[%s11583_s3 + $0x28] sm:$0xff] }
 0x3b4   : > { %v11021_v30 = vsel %vm1033_vm3, %v4127_v44, %v4129_v9  ;;  %v11890_v44 = vld [vmem:[#allocation11_spill] sm:$0xff]  ;;  %v11891_v9 = vld [vmem:[#allocation12_spill] sm:$0xff] }
 0x3b5   : > { %8095 = vmatmul.mubr.msk.f32.gmra.mrb[24].mxu1 %vm3167_vm4, %v10984_v45  ;;  %11880 = vst [vmem:[#allocation49_spill] sm:$0xff] %v11021_v30 }
 0x3b6   : > { %8097 = vmatprep.mubr.msk.f32.mxu1 %vm3167_vm4, %v10990_v13  ;;  %v11010_v13 = vsel %vm1033_vm3, %v4122_v1, %v4124_v6  ;;  %v11887_v1 = vld [vmem:[#allocation41_spill] sm:$0xff]  ;;  %v11888_v6 = vld [vmem:[#allocation46_spill] sm:$0xff] }
 0x3b7   : > { %11879 = vst [vmem:[#allocation48_spill] sm:$0xff] %v11010_v13 }
 0x3b9   : > { %8098 = vmatmul.mubr.msk.f32.gmra.mrb[26].mxu1 %vm3167_vm4, %v10997_v42 }
 0x3ba   : > { %8100 = vmatprep.mubr.msk.f32.mxu1 %vm3167_vm4, %v11003_v61 }
 0x3bd   : > { %8101 = vmatmul.mubr.msk.f32.gmra.mrb[28].mxu1 %vm3167_vm4, %v11010_v13 }
 0x3be   : > { %8103 = vmatprep.mubr.msk.f32.mxu1 %vm3167_vm4, %v11016_v51 }
 0x3c1   : > { %8104 = vmatmul.mubr.msk.f32.gmra.mrb[30].mxu1 %vm3167_vm4, %v11021_v30 }
 0x3c2   : > { %8108 = vmatprep.mubr.msk.f32.mxu1 %vm3167_vm4, %v10344_v63  ;;  %v11089_v63 = vld [vmem:[#allocation2 + $0x180] sm:$0xff] }
 0x3c5   : > { %8109 = vmatmul.mubr.msk.f32.vlgmr.msra.gmra.mrb[0].mxu1 %vm3167_vm4, %v10346_v0  ;;  %v11093_v0 = vld [vmem:[#allocation2 + $0x188] sm:$0xff] }
 0x3c6   : > { %8157 = vmatpush3.msra.mxu1 %v10829_v8  ;;  %8111 = vmatprep.mubr.msk.f32.mxu1 %vm3167_vm4, %v10368_v50  ;;  %v6802_v50 = vld [vmem:[%s11583_s3 + $0x30] sm:$0xff]  ;;  %v11884_v8 = vld [vmem:[#allocation32_spill] sm:$0xff] }
 0x3c7   : > { %8206 = vmatprep.subr.mxu1 %v6769_v16 }
 0x3c9   : > { %8112 = vmatmul.mubr.msk.f32.gmra.mrb[2].mxu1 %vm3167_vm4, %v10370_v21  ;;  %v11881_v21 = vld [vmem:[#allocation9_spill] sm:$0xff] }
 0x3ca   : > { %8114 = vmatprep.mubr.msk.f32.mxu1 %vm3167_vm4, %v10397_v52  ;;  %v11882_v52 = vld [vmem:[#allocation20_spill] sm:$0xff] }
 0x3cd   : > { %8115 = vmatmul.mubr.msk.f32.gmra.mrb[4].mxu1 %vm3167_vm4, %v10399_v18  ;;  %v11883_v18 = vld [vmem:[#allocation31_spill] sm:$0xff] }
 0x3ce   : > { %8117 = vmatprep.mubr.msk.f32.mxu1 %vm3167_vm4, %v10426_v35 }
 0x3d1   : > { %8118 = vmatmul.mubr.msk.f32.gmra.mrb[6].mxu1 %vm3167_vm4, %v10428_v25 }
 0x3d2   : > { %8120 = vmatprep.mubr.msk.f32.mxu1 %vm3167_vm4, %v10455_v56 }
 0x3d5   : > { %8121 = vmatmul.mubr.msk.f32.gmra.mrb[8].mxu1 %vm3167_vm4, %v10457_v15 }
 0x3d6   : > { %8123 = vmatprep.mubr.msk.f32.mxu1 %vm3167_vm4, %v10483_v38 }
 0x3d9   : > { %8124 = vmatmul.mubr.msk.f32.gmra.mrb[10].mxu1 %vm3167_vm4, %v10485_v55 }
 0x3da   : > { %8126 = vmatprep.mubr.msk.f32.mxu1 %vm3167_vm4, %v10507_v32 }
 0x3dd   : > { %8127 = vmatmul.mubr.msk.f32.gmra.mrb[12].mxu1 %vm3167_vm4, %v10509_v7 }
 0x3de   : > { %8129 = vmatprep.mubr.msk.f32.mxu1 %vm3167_vm4, %v10533_v28 }
 0x3e1   : > { %8130 = vmatmul.mubr.msk.f32.gmra.mrb[14].mxu1 %vm3167_vm4, %v10535_v3 }
 0x3e2   : > { %8132 = vmatprep.mubr.msk.f32.mxu1 %vm3167_vm4, %v10560_v2 }
 0x3e5   : > { %8133 = vmatmul.mubr.msk.f32.gmra.mrb[16].mxu1 %vm3167_vm4, %v10562_v47 }
 0x3e6   : > { %8135 = vmatprep.mubr.msk.f32.mxu1 %vm3167_vm4, %v10590_v11 }
 0x3e9   : > { %8136 = vmatmul.mubr.msk.f32.gmra.mrb[18].mxu1 %vm3167_vm4, %v10592_v23 }
 0x3ea   : > { %8138 = vmatprep.mubr.msk.f32.mxu1 %vm3167_vm4, %v10620_v14 }
 0x3ed   : > { %8139 = vmatmul.mubr.msk.f32.gmra.mrb[20].mxu1 %vm3167_vm4, %v10622_v41 }
 0x3ee   : > { %8141 = vmatprep.mubr.msk.f32.mxu1 %vm3167_vm4, %v10651_v12 }
 0x3f1   : > { %8142 = vmatmul.mubr.msk.f32.gmra.mrb[22].mxu1 %vm3167_vm4, %v10653_v49 }
 0x3f2   : > { %8144 = vmatprep.mubr.msk.f32.mxu1 %vm3167_vm4, %v10680_v34 }
 0x3f5   : > { %8145 = vmatmul.mubr.msk.f32.gmra.mrb[24].mxu1 %vm3167_vm4, %v10682_v24 }
 0x3f6   : > { %8147 = vmatprep.mubr.msk.f32.mxu1 %vm3167_vm4, %v10704_v46 }
 0x3f9   : > { %8148 = vmatmul.mubr.msk.f32.gmra.mrb[26].mxu1 %vm3167_vm4, %v10706_v37 }
 0x3fa   : > { %8150 = vmatprep.mubr.msk.f32.mxu1 %vm3167_vm4, %v10725_v5 }
 0x3fd   : > { %8151 = vmatmul.mubr.msk.f32.gmra.mrb[28].mxu1 %vm3167_vm4, %v10727_v27 }
 0x3fe   : > { %8153 = vmatprep.mubr.msk.f32.mxu1 %vm3167_vm4, %v11089_v63 }
 0x401   : > { %8154 = vmatmul.mubr.msk.f32.gmra.mrb[30].mxu1 %vm3167_vm4, %v11093_v0 }
 0x402   : > { %8158 = vmatprep.mubr.msk.f32.mxu1 %vm3167_vm4, %v10355_v60  ;;  %v11886_v60 = vld [vmem:[#allocation34_spill] sm:$0xff] }
 0x405   : > { %8159 = vmatmul.mubr.msk.f32.vlgmr.msra.gmra.mrb[0].mxu1 %vm3167_vm4, %v11881_v21  ;;  %v11893_v21 = vld [vmem:[#allocation14_spill] sm:$0xff] }
 0x406   : > { %8207 = vmatpush3.msra.mxu1 %v6769_v16  ;;  %8161 = vmatprep.mubr.msk.f32.mxu1 %vm3167_vm4, %v11882_v52  ;;  %v11892_v16 = vld [vmem:[#allocation13_spill] sm:$0xff] }
 0x407   : > { %8256 = vmatprep.subr.mxu1 %v6802_v50 }
 0x409   : > { %8162 = vmatmul.mubr.msk.f32.gmra.mrb[2].mxu1 %vm3167_vm4, %v11883_v18 }
 0x40a   : > { %8164 = vmatprep.mubr.msk.f32.mxu1 %vm3167_vm4, %v11884_v8 }
 0x40d   : > { %8165 = vmatmul.mubr.msk.f32.gmra.mrb[4].mxu1 %vm3167_vm4, %v11885_v59 }
 0x40e   : > { %8167 = vmatprep.mubr.msk.f32.mxu1 %vm3167_vm4, %v11886_v60  ;;  %v11894_v60 = vld [vmem:[#allocation15_spill] sm:$0xff] }
 0x411   : > { %8168 = vmatmul.mubr.msk.f32.gmra.mrb[6].mxu1 %vm3167_vm4, %v11887_v1  ;;  %v11895_v1 = vld [vmem:[#allocation16_spill] sm:$0xff] }
 0x412   : > { %8170 = vmatprep.mubr.msk.f32.mxu1 %vm3167_vm4, %v11888_v6  ;;  %v11896_v6 = vld [vmem:[#allocation17_spill] sm:$0xff] }
 0x415   : > { %8171 = vmatmul.mubr.msk.f32.gmra.mrb[8].mxu1 %vm3167_vm4, %v11889_v54  ;;  %v11897_v54 = vld [vmem:[#allocation18_spill] sm:$0xff] }
 0x416   : > { %8173 = vmatprep.mubr.msk.f32.mxu1 %vm3167_vm4, %v11890_v44  ;;  %v11898_v44 = vld [vmem:[#allocation19_spill] sm:$0xff] }
 0x419   : > { %8174 = vmatmul.mubr.msk.f32.gmra.mrb[10].mxu1 %vm3167_vm4, %v11891_v9  ;;  %v11899_v9 = vld [vmem:[#allocation21_spill] sm:$0xff] }
 0x41a   : > { %8176 = vmatprep.mubr.msk.f32.mxu1 %vm3167_vm4, %v11892_v16  ;;  %v11900_v16 = vld [vmem:[#allocation22_spill] sm:$0xff] }
 0x41d   : > { %8177 = vmatmul.mubr.msk.f32.gmra.mrb[12].mxu1 %vm3167_vm4, %v11893_v21  ;;  %v11901_v21 = vld [vmem:[#allocation23_spill] sm:$0xff] }
 0x41e   : > { %8179 = vmatprep.mubr.msk.f32.mxu1 %vm3167_vm4, %v11894_v60  ;;  %v11902_v60 = vld [vmem:[#allocation24_spill] sm:$0xff] }
 0x421   : > { %8180 = vmatmul.mubr.msk.f32.gmra.mrb[14].mxu1 %vm3167_vm4, %v11895_v1  ;;  %v11903_v1 = vld [vmem:[#allocation25_spill] sm:$0xff] }
 0x422   : > { %8182 = vmatprep.mubr.msk.f32.mxu1 %vm3167_vm4, %v11896_v6  ;;  %v11904_v6 = vld [vmem:[#allocation26_spill] sm:$0xff] }
 0x425   : > { %8183 = vmatmul.mubr.msk.f32.gmra.mrb[16].mxu1 %vm3167_vm4, %v11897_v54  ;;  %v11905_v54 = vld [vmem:[#allocation27_spill] sm:$0xff] }
 0x426   : > { %8185 = vmatprep.mubr.msk.f32.mxu1 %vm3167_vm4, %v11898_v44 }
 0x429   : > { %8186 = vmatmul.mubr.msk.f32.gmra.mrb[18].mxu1 %vm3167_vm4, %v11899_v9  ;;  %v4721_v9 = vrot.slane %v11093_v0, 1 }
 0x42a   : > { %8188 = vmatprep.mubr.msk.f32.mxu1 %vm3167_vm4, %v11900_v16  ;;  %v4720_v16 = vrot.slane %v11089_v63, 1 }
 0x42d   : > { %8189 = vmatmul.mubr.msk.f32.gmra.mrb[20].mxu1 %vm3167_vm4, %v11901_v21 }
 0x42e   : > { %8191 = vmatprep.mubr.msk.f32.mxu1 %vm3167_vm4, %v11902_v60  ;;  %v3338_v60 = vld [vmem:[#allocation2 + $0x190] sm:$0x3] }
 0x431   : > { %8192 = vmatmul.mubr.msk.f32.gmra.mrb[22].mxu1 %vm3167_vm4, %v11903_v1  ;;  %v4723_v1 = vrot.slane %v3338_v60, 1 }
 0x432   : > { %8194 = vmatprep.mubr.msk.f32.mxu1 %vm3167_vm4, %v11904_v6 }
 0x435   : > { %8195 = vmatmul.mubr.msk.f32.gmra.mrb[24].mxu1 %vm3167_vm4, %v11905_v54  ;;  %v11163_v54 = vsel %vm364_vm1, %v4720_v16, %v4721_v9  ;;  %v11911_v16 = vld [vmem:[#allocation39_spill] sm:$0xff] }
 0x436   : > { %8197 = vmatprep.mubr.msk.f32.mxu1 %vm3167_vm4, %v10716_v31  ;;  %v11168_v31 = vsel %vm364_vm1, %v4721_v9, %v4723_v1  ;;  %v11909_v1 = vld [vmem:[#allocation37_spill] sm:$0xff]  ;;  %v11910_v9 = vld [vmem:[#allocation38_spill] sm:$0xff] }
 0x439   : > { %8198 = vmatmul.mubr.msk.f32.gmra.mrb[26].mxu1 %vm3167_vm4, %v10719_v20 }
 0x43a   : > { %8200 = vmatprep.mubr.msk.f32.mxu1 %vm3167_vm4, %v10736_v43  ;;  %v6835_v43 = vld [vmem:[%s11583_s3 + $0x38] sm:$0xff] }
 0x43d   : > { %8201 = vmatmul.mubr.msk.f32.gmra.mrb[28].mxu1 %vm3167_vm4, %v10739_v39 }
 0x43e   : > { %8203 = vmatprep.mubr.msk.f32.mxu1 %vm3167_vm4, %v11163_v54 }
 0x441   : > { %8204 = vmatmul.mubr.msk.f32.gmra.mrb[30].mxu1 %vm3167_vm4, %v11168_v31 }
 0x442   : > { %8208 = vmatprep.mubr.msk.f32.mxu1 %vm3167_vm4, %v10833_v36  ;;  %v11906_v36 = vld [vmem:[#allocation30_spill] sm:$0xff] }
 0x445   : > { %8209 = vmatmul.mubr.msk.f32.vlgmr.msra.gmra.mrb[0].mxu1 %vm3167_vm4, %v10841_v48  ;;  %v11907_v48 = vld [vmem:[#allocation35_spill] sm:$0xff] }
 0x446   : > { %8257 = vmatpush3.msra.mxu1 %v6802_v50  ;;  %8211 = vmatprep.mubr.msk.f32.mxu1 %vm3167_vm4, %v10847_v19  ;;  %v11908_v50 = vld [vmem:[#allocation36_spill] sm:$0xff] }
 0x447   : > { %8306 = vmatprep.subr.mxu1 %v6835_v43 }
 0x449   : > { %8212 = vmatmul.mubr.msk.f32.gmra.mrb[2].mxu1 %vm3167_vm4, %v10854_v33 }
 0x44a   : > { %8214 = vmatprep.mubr.msk.f32.mxu1 %vm3167_vm4, %v10860_v26 }
 0x44d   : > { %8215 = vmatmul.mubr.msk.f32.gmra.mrb[4].mxu1 %vm3167_vm4, %v10867_v17 }
 0x44e   : > { %8217 = vmatprep.mubr.msk.f32.mxu1 %vm3167_vm4, %v10873_v62 }
 0x451   : > { %8218 = vmatmul.mubr.msk.f32.gmra.mrb[6].mxu1 %vm3167_vm4, %v10880_v58 }
 0x452   : > { %8220 = vmatprep.mubr.msk.f32.mxu1 %vm3167_vm4, %v11906_v36 }
 0x455   : > { %8221 = vmatmul.mubr.msk.f32.gmra.mrb[8].mxu1 %vm3167_vm4, %v10893_v10 }
 0x456   : > { %8223 = vmatprep.mubr.msk.f32.mxu1 %vm3167_vm4, %v11907_v48 }
 0x459   : > { %8224 = vmatmul.mubr.msk.f32.gmra.mrb[10].mxu1 %vm3167_vm4, %v10906_v4 }
 0x45a   : > { %8226 = vmatprep.mubr.msk.f32.mxu1 %vm3167_vm4, %v11908_v50  ;;  %v11912_v50 = vld [vmem:[#allocation42_spill] sm:$0xff] }
 0x45d   : > { %8227 = vmatmul.mubr.msk.f32.gmra.mrb[12].mxu1 %vm3167_vm4, %v10919_v40 }
 0x45e   : > { %8229 = vmatprep.mubr.msk.f32.mxu1 %vm3167_vm4, %v11909_v1  ;;  %v11913_v1 = vld [vmem:[#allocation43_spill] sm:$0xff] }
 0x461   : > { %8230 = vmatmul.mubr.msk.f32.gmra.mrb[14].mxu1 %vm3167_vm4, %v10932_v57 }
 0x462   : > { %8232 = vmatprep.mubr.msk.f32.mxu1 %vm3167_vm4, %v11910_v9  ;;  %v11914_v9 = vld [vmem:[#allocation45_spill] sm:$0xff] }
 0x465   : > { %8233 = vmatmul.mubr.msk.f32.gmra.mrb[16].mxu1 %vm3167_vm4, %v10945_v22 }
 0x466   : > { %8235 = vmatprep.mubr.msk.f32.mxu1 %vm3167_vm4, %v11911_v16 }
 0x469   : > { %8236 = vmatmul.mubr.msk.f32.gmra.mrb[18].mxu1 %vm3167_vm4, %v10958_v29  ;;  %v4989_v29 = vrot.slane %v11093_v0, 2 }
 0x46a   : > { %8238 = vmatprep.mubr.msk.f32.mxu1 %vm3167_vm4, %v11912_v50  ;;  %v4988_v50 = vrot.slane %v11089_v63, 2 }
 0x46d   : > { %8239 = vmatmul.mubr.msk.f32.gmra.mrb[20].mxu1 %vm3167_vm4, %v10971_v53 }
 0x46e   : > { %8241 = vmatprep.mubr.msk.f32.mxu1 %vm3167_vm4, %v11913_v1 }
 0x471   : > { %8242 = vmatmul.mubr.msk.f32.gmra.mrb[22].mxu1 %vm3167_vm4, %v10984_v45  ;;  %v4991_v45 = vrot.slane %v3338_v60, 2  ;;  %v6868_v60 = vld [vmem:[%s11583_s3 + $0x40] sm:$0xff] }
 0x472   : > { %8244 = vmatprep.mubr.msk.f32.mxu1 %vm3167_vm4, %v11914_v9  ;;  %v11238_v9 = vsel %vm1033_vm3, %v4988_v50, %v4989_v29  ;;  %v8968_v50 = vld [vmem:[#allocation2 + $0x48] sm:$0xff] }
 0x475   : > { %8245 = vmatmul.mubr.msk.f32.gmra.mrb[24].mxu1 %vm3167_vm4, %v10997_v42 }
 0x476   : > { %8247 = vmatprep.mubr.msk.f32.mxu1 %vm3167_vm4, %v11003_v61  ;;  %v11243_v61 = vsel %vm1033_vm3, %v4989_v29, %v4991_v45  ;;  %v8969_v29 = vld [vmem:[#allocation2 + $0x50] sm:$0xff] }
 0x479   : > { %8248 = vmatmul.mubr.msk.f32.gmra.mrb[26].mxu1 %vm3167_vm4, %v11010_v13  ;;  %v8966_v13 = vld [vmem:[#allocation2 + $0x30] sm:$0xff] }
 0x47a   : > { %8250 = vmatprep.mubr.msk.f32.mxu1 %vm3167_vm4, %v11016_v51 }
 0x47d   : > { %8251 = vmatmul.mubr.msk.f32.gmra.mrb[28].mxu1 %vm3167_vm4, %v11021_v30  ;;  %v8967_v30 = vld [vmem:[#allocation2 + $0x38] sm:$0xff] }
 0x47e   : > { %8253 = vmatprep.mubr.msk.f32.mxu1 %vm3167_vm4, %v11238_v9 }
 0x481   : > { %8254 = vmatmul.mubr.msk.f32.gmra.mrb[30].mxu1 %vm3167_vm4, %v11243_v61 }
 0x482   : > { %8258 = vmatprep.mubr.msk.f32.mxu1 %vm3167_vm4, %v8966_v13  ;;  %v3117_v13 = vpop.trf.xlu0 }
 0x483   : > { %3165 = vst [vmem:[%s11450_s9] sm:$0xff] %v3117_v13 }
 0x485   : > { %8259 = vmatmul.mubr.msk.f32.vlgmr.msra.gmra.mrb[0].mxu1 %vm3167_vm4, %v8967_v30 }
 0x486   : > { %8307 = vmatpush3.msra.mxu1 %v6835_v43  ;;  %8261 = vmatprep.mubr.msk.f32.mxu1 %vm3167_vm4, %v8968_v50 }
 0x487   : > { %8356 = vmatprep.subr.mxu1 %v6868_v60 }
 0x489   : > { %8262 = vmatmul.mubr.msk.f32.gmra.mrb[2].mxu1 %vm3167_vm4, %v8969_v29 }
 0x48a   : > { %8264 = vmatprep.mubr.msk.f32.mxu1 %vm3167_vm4, %v10426_v35  ;;  %v11304_v35 = vld [vmem:[#allocation2 + $0x198] sm:$0xff] }
 0x48d   : > { %8265 = vmatmul.mubr.msk.f32.gmra.mrb[4].mxu1 %vm3167_vm4, %v10428_v25  ;;  %v11310_v25 = vld [vmem:[#allocation2 + $0x1a0] sm:$0xff] }
 0x48e   : > { %8267 = vmatprep.mubr.msk.f32.mxu1 %vm3167_vm4, %v10455_v56  ;;  %v11915_v56 = vld [vmem:[#allocation34_spill] sm:$0xff] }
 0x491   : > { %8268 = vmatmul.mubr.msk.f32.gmra.mrb[6].mxu1 %vm3167_vm4, %v10457_v15  ;;  %v11916_v15 = vld [vmem:[#allocation41_spill] sm:$0xff] }
 0x492   : > { %8270 = vmatprep.mubr.msk.f32.mxu1 %vm3167_vm4, %v10483_v38  ;;  %v11917_v38 = vld [vmem:[#allocation46_spill] sm:$0xff] }
 0x495   : > { %8271 = vmatmul.mubr.msk.f32.gmra.mrb[8].mxu1 %vm3167_vm4, %v10485_v55  ;;  %v11918_v55 = vld [vmem:[#allocation10_spill] sm:$0xff] }
 0x496   : > { %8273 = vmatprep.mubr.msk.f32.mxu1 %vm3167_vm4, %v10507_v32  ;;  %v11919_v32 = vld [vmem:[#allocation11_spill] sm:$0xff] }
 0x499   : > { %8274 = vmatmul.mubr.msk.f32.gmra.mrb[10].mxu1 %vm3167_vm4, %v10509_v7  ;;  %v11920_v7 = vld [vmem:[#allocation12_spill] sm:$0xff] }
 0x49a   : > { %8276 = vmatprep.mubr.msk.f32.mxu1 %vm3167_vm4, %v10533_v28  ;;  %v11921_v28 = vld [vmem:[#allocation13_spill] sm:$0xff] }
 0x49d   : > { %8277 = vmatmul.mubr.msk.f32.gmra.mrb[12].mxu1 %vm3167_vm4, %v10535_v3  ;;  %v11922_v3 = vld [vmem:[#allocation14_spill] sm:$0xff] }
 0x49e   : > { %8279 = vmatprep.mubr.msk.f32.mxu1 %vm3167_vm4, %v10560_v2  ;;  %v11923_v2 = vld [vmem:[#allocation15_spill] sm:$0xff] }
 0x4a1   : > { %8280 = vmatmul.mubr.msk.f32.gmra.mrb[14].mxu1 %vm3167_vm4, %v10562_v47  ;;  %v11924_v47 = vld [vmem:[#allocation16_spill] sm:$0xff] }
 0x4a2   : > { %8282 = vmatprep.mubr.msk.f32.mxu1 %vm3167_vm4, %v10590_v11  ;;  %v11925_v11 = vld [vmem:[#allocation17_spill] sm:$0xff] }
 0x4a5   : > { %8283 = vmatmul.mubr.msk.f32.gmra.mrb[16].mxu1 %vm3167_vm4, %v10592_v23  ;;  %v11926_v23 = vld [vmem:[#allocation18_spill] sm:$0xff] }
 0x4a6   : > { %8285 = vmatprep.mubr.msk.f32.mxu1 %vm3167_vm4, %v10620_v14  ;;  %v11927_v14 = vld [vmem:[#allocation21_spill] sm:$0xff] }
 0x4a9   : > { %8286 = vmatmul.mubr.msk.f32.gmra.mrb[18].mxu1 %vm3167_vm4, %v10622_v41  ;;  %v11928_v41 = vld [vmem:[#allocation22_spill] sm:$0xff] }
 0x4aa   : > { %8288 = vmatprep.mubr.msk.f32.mxu1 %vm3167_vm4, %v10651_v12  ;;  %v11929_v12 = vld [vmem:[#allocation24_spill] sm:$0xff] }
 0x4ad   : > { %8289 = vmatmul.mubr.msk.f32.gmra.mrb[20].mxu1 %vm3167_vm4, %v10653_v49  ;;  %v11930_v49 = vld [vmem:[#allocation25_spill] sm:$0xff] }
 0x4ae   : > { %8291 = vmatprep.mubr.msk.f32.mxu1 %vm3167_vm4, %v10680_v34  ;;  %v11932_v34 = vld [vmem:[#allocation28_spill] sm:$0xff] }
 0x4b1   : > { %8292 = vmatmul.mubr.msk.f32.gmra.mrb[22].mxu1 %vm3167_vm4, %v10682_v24  ;;  %v11933_v24 = vld [vmem:[#allocation29_spill] sm:$0xff] }
 0x4b2   : > { %8294 = vmatprep.mubr.msk.f32.mxu1 %vm3167_vm4, %v10704_v46  ;;  %v5523_v46 = vrot.slane %v11310_v25, 1 }
 0x4b5   : > { %8295 = vmatmul.mubr.msk.f32.gmra.mrb[24].mxu1 %vm3167_vm4, %v10706_v37  ;;  %v11931_v37 = vld [vmem:[#allocation27_spill] sm:$0xff] }
 0x4b6   : > { %8297 = vmatprep.mubr.msk.f32.mxu1 %vm3167_vm4, %v10725_v5  ;;  %v3341_v5 = vld [vmem:[#allocation2 + $0x1a8] sm:$0x3] }
 0x4b7   : > { %v5525_v43 = vrot.slane %v3341_v5, 1 }
 0x4b9   : > { %8298 = vmatmul.mubr.msk.f32.gmra.mrb[26].mxu1 %vm3167_vm4, %v10727_v27  ;;  %v5522_v27 = vrot.slane %v11304_v35, 1 }
 0x4ba   : > { %8300 = vmatprep.mubr.msk.f32.mxu1 %vm3167_vm4, %v11089_v63 }
 0x4bb   : > { %v5524_v45 = vsel %vm364_vm1, %v5522_v27, %v5523_v46 }
 0x4bd   : > { %8301 = vmatmul.mubr.msk.f32.gmra.mrb[28].mxu1 %vm3167_vm4, %v11093_v0 }
 0x4be   : > { %8303 = vmatprep.mubr.msk.f32.mxu1 %vm3167_vm4, %v11304_v35 }
 0x4c1   : > { %8304 = vmatmul.mubr.msk.f32.gmra.mrb[30].mxu1 %vm3167_vm4, %v11310_v25 }
 0x4c2   : > { %8308 = vmatprep.mubr.msk.f32.mxu1 %vm3167_vm4, %v11882_v52 }
 0x4c5   : > { %8309 = vmatmul.mubr.msk.f32.vlgmr.msra.gmra.mrb[0].mxu1 %vm3167_vm4, %v11883_v18 }
 0x4c6   : > { %8357 = vmatpush3.msra.mxu1 %v6868_v60  ;;  %8311 = vmatprep.mubr.msk.f32.mxu1 %vm3167_vm4, %v11884_v8 }
 0x4c9   : > { %8312 = vmatmul.mubr.msk.f32.gmra.mrb[2].mxu1 %vm3167_vm4, %v11885_v59 }
 0x4ca   : > { %8314 = vmatprep.mubr.msk.f32.mxu1 %vm3167_vm4, %v11915_v56 }
 0x4cd   : > { %8315 = vmatmul.mubr.msk.f32.gmra.mrb[4].mxu1 %vm3167_vm4, %v11916_v15 }
 0x4ce   : > { %8317 = vmatprep.mubr.msk.f32.mxu1 %vm3167_vm4, %v11917_v38 }
 0x4d1   : > { %8318 = vmatmul.mubr.msk.f32.gmra.mrb[6].mxu1 %vm3167_vm4, %v11918_v55 }
 0x4d2   : > { %8320 = vmatprep.mubr.msk.f32.mxu1 %vm3167_vm4, %v11919_v32 }
 0x4d5   : > { %8321 = vmatmul.mubr.msk.f32.gmra.mrb[8].mxu1 %vm3167_vm4, %v11920_v7 }
 0x4d6   : > { %8323 = vmatprep.mubr.msk.f32.mxu1 %vm3167_vm4, %v11921_v28 }
 0x4d9   : > { %8324 = vmatmul.mubr.msk.f32.gmra.mrb[10].mxu1 %vm3167_vm4, %v11922_v3 }
 0x4da   : > { %8326 = vmatprep.mubr.msk.f32.mxu1 %vm3167_vm4, %v11923_v2 }
 0x4dd   : > { %8327 = vmatmul.mubr.msk.f32.gmra.mrb[12].mxu1 %vm3167_vm4, %v11924_v47 }
 0x4de   : > { %8329 = vmatprep.mubr.msk.f32.mxu1 %vm3167_vm4, %v11925_v11 }
 0x4e1   : > { %8330 = vmatmul.mubr.msk.f32.gmra.mrb[14].mxu1 %vm3167_vm4, %v11926_v23 }
 0x4e2   : > { %8332 = vmatprep.mubr.msk.f32.mxu1 %vm3167_vm4, %v11898_v44 }
 0x4e5   : > { %8333 = vmatmul.mubr.msk.f32.gmra.mrb[16].mxu1 %vm3167_vm4, %v11927_v14 }
 0x4e6   : > { %8335 = vmatprep.mubr.msk.f32.mxu1 %vm3167_vm4, %v11928_v41 }
 0x4e9   : > { %8336 = vmatmul.mubr.msk.f32.gmra.mrb[18].mxu1 %vm3167_vm4, %v11901_v21 }
 0x4ea   : > { %8338 = vmatprep.mubr.msk.f32.mxu1 %vm3167_vm4, %v11929_v12 }
 0x4ed   : > { %8339 = vmatmul.mubr.msk.f32.gmra.mrb[20].mxu1 %vm3167_vm4, %v11930_v49 }
 0x4ee   : > { %8341 = vmatprep.mubr.msk.f32.mxu1 %vm3167_vm4, %v11904_v6 }
 0x4f1   : > { %8342 = vmatmul.mubr.msk.f32.gmra.mrb[22].mxu1 %vm3167_vm4, %v11931_v37 }
 0x4f2   : > { %8344 = vmatprep.mubr.msk.f32.mxu1 %vm3167_vm4, %v11932_v34 }
 0x4f5   : > { %8345 = vmatmul.mubr.msk.f32.gmra.mrb[24].mxu1 %vm3167_vm4, %v10719_v20  ;;  %v5526_v20 = vsel %vm364_vm1, %v5523_v46, %v5525_v43 }
 0x4f6   : > { %8347 = vmatprep.mubr.msk.f32.mxu1 %vm3167_vm4, %v11933_v24 }
 0x4f9   : > { %8348 = vmatmul.mubr.msk.f32.gmra.mrb[26].mxu1 %vm3167_vm4, %v10739_v39  ;;  %v11935_v39 = vld [vmem:[#allocation37_spill] sm:$0xff] }
 0x4fa   : > { %8350 = vmatprep.mubr.msk.f32.mxu1 %vm3167_vm4, %v11163_v54 }
 0x4fd   : > { %8351 = vmatmul.mubr.msk.f32.gmra.mrb[28].mxu1 %vm3167_vm4, %v11168_v31  ;;  %v11934_v31 = vld [vmem:[#allocation36_spill] sm:$0xff] }
 0x4fe   : > { %8353 = vmatprep.mubr.msk.f32.mxu1 %vm3167_vm4, %v5524_v45 }
 0x501   : > { %8354 = vmatmul.mubr.msk.f32.gmra.mrb[30].mxu1 %vm3167_vm4, %v5526_v20 }
 0x502   : > { %8358 = vmatprep.mubr.msk.f32.mxu1 %vm3167_vm4, %v10847_v19  ;;  %v11936_v19 = vld [vmem:[#allocation38_spill] sm:$0xff] }
 0x505   : > { %8359 = vmatmul.mubr.msk.f32.vlgmr.msra.gmra.mrb[0].mxu1 %vm3167_vm4, %v10854_v33  ;;  %v11937_v33 = vld [vmem:[#allocation40_spill] sm:$0xff] }
 0x506   : > { %8361 = vmatprep.mubr.msk.f32.mxu1 %vm3167_vm4, %v10860_v26  ;;  %v11938_v26 = vld [vmem:[#allocation42_spill] sm:$0xff] }
 0x509   : > { %8362 = vmatmul.mubr.msk.f32.gmra.mrb[2].mxu1 %vm3167_vm4, %v10867_v17  ;;  %v11939_v17 = vld [vmem:[#allocation44_spill] sm:$0xff] }
 0x50a   : > { %8364 = vmatprep.mubr.msk.f32.mxu1 %vm3167_vm4, %v10873_v62  ;;  %v11940_v62 = vld [vmem:[#allocation45_spill] sm:$0xff] }
 0x50d   : > { %8365 = vmatmul.mubr.msk.f32.gmra.mrb[4].mxu1 %vm3167_vm4, %v10880_v58  ;;  %v11941_v58 = vld [vmem:[#allocation47_spill] sm:$0xff] }
 0x50e   : > { %8367 = vmatprep.mubr.msk.f32.mxu1 %vm3167_vm4, %v11906_v36 }
 0x511   : > { %8368 = vmatmul.mubr.msk.f32.gmra.mrb[6].mxu1 %vm3167_vm4, %v10893_v10  ;;  %v5790_v10 = vrot.slane %v11304_v35, 2 }
 0x512   : > { %8370 = vmatprep.mubr.msk.f32.mxu1 %vm3167_vm4, %v11907_v48 }
 0x515   : > { %8371 = vmatmul.mubr.msk.f32.gmra.mrb[8].mxu1 %vm3167_vm4, %v10906_v4  ;;  %v11942_v4 = vld [vmem:[#allocation48_spill] sm:$0xff] }
 0x516   : > { %8373 = vmatprep.mubr.msk.f32.mxu1 %vm3167_vm4, %v11934_v31 }
 0x519   : > { %8374 = vmatmul.mubr.msk.f32.gmra.mrb[10].mxu1 %vm3167_vm4, %v10919_v40  ;;  %v5791_v40 = vrot.slane %v11310_v25, 2 }
 0x51a   : > { %8376 = vmatprep.mubr.msk.f32.mxu1 %vm3167_vm4, %v11935_v39 }
 0x51d   : > { %8377 = vmatmul.mubr.msk.f32.gmra.mrb[12].mxu1 %vm3167_vm4, %v10932_v57  ;;  %v11943_v57 = vld [vmem:[#allocation49_spill] sm:$0xff] }
 0x51e   : > { %8379 = vmatprep.mubr.msk.f32.mxu1 %vm3167_vm4, %v11936_v19 }
 0x521   : > { %8380 = vmatmul.mubr.msk.f32.gmra.mrb[14].mxu1 %vm3167_vm4, %v10945_v22  ;;  %v5793_v22 = vrot.slane %v3341_v5, 2 }
 0x522   : > { %8382 = vmatprep.mubr.msk.f32.mxu1 %vm3167_vm4, %v11911_v16 }
 0x525   : > { %8383 = vmatmul.mubr.msk.f32.gmra.mrb[16].mxu1 %vm3167_vm4, %v11937_v33 }
 0x526   : > { %8385 = vmatprep.mubr.msk.f32.mxu1 %vm3167_vm4, %v11938_v26 }
 0x529   : > { %8386 = vmatmul.mubr.msk.f32.gmra.mrb[18].mxu1 %vm3167_vm4, %v10971_v53  ;;  %v5792_v53 = vsel %vm1033_vm3, %v5790_v10, %v5791_v40 }
 0x52a   : > { %8388 = vmatprep.mubr.msk.f32.mxu1 %vm3167_vm4, %v11913_v1 }
 0x52d   : > { %8389 = vmatmul.mubr.msk.f32.gmra.mrb[20].mxu1 %vm3167_vm4, %v11939_v17 }
 0x52e   : > { %8391 = vmatprep.mubr.msk.f32.mxu1 %vm3167_vm4, %v11940_v62 }
 0x531   : > { %8392 = vmatmul.mubr.msk.f32.gmra.mrb[22].mxu1 %vm3167_vm4, %v10997_v42  ;;  %v5794_v42 = vsel %vm1033_vm3, %v5791_v40, %v5793_v22 }
 0x532   : > { %8394 = vmatprep.mubr.msk.f32.mxu1 %vm3167_vm4, %v11941_v58 }
 0x535   : > { %8395 = vmatmul.mubr.msk.f32.gmra.mrb[24].mxu1 %vm3167_vm4, %v11942_v4 }
 0x536   : > { %8397 = vmatprep.mubr.msk.f32.mxu1 %vm3167_vm4, %v11016_v51  ;;  %v3149_v51 = vpop.trf.xlu1 }
 0x537   : > { %3166 = vst [vmem:[%s11450_s9 + $0x8] sm:$0xff] %v3149_v51 }
 0x539   : > { %8398 = vmatmul.mubr.msk.f32.gmra.mrb[26].mxu1 %vm3167_vm4, %v11943_v57 }
 0x53a   : > { %8400 = vmatprep.mubr.msk.f32.mxu1 %vm3167_vm4, %v11238_v9 }
 0x53d   : > { %8401 = vmatmul.mubr.msk.f32.gmra.mrb[28].mxu1 %vm3167_vm4, %v11243_v61  ;;  %v11457_v61 = vld [vmem:[%s11584_s4] ss:$0 sm:$0xff] }
 0x53e   : > { %8403 = vmatprep.mubr.msk.f32.mxu1 %vm3167_vm4, %v5792_v53 }
 0x541   : > { %8404 = vmatmul.mubr.msk.f32.gmra.mrb[30].mxu1 %vm3167_vm4, %v5794_v42 }
 0x5d8   : > { %v8360_v30 = vpop.f32.mrb[0].mxu1 }
 0x5d9   : > { %v5867_v63 = vpop.f32.mrb[1].mxu1  ;;  %v6066_v8 = vadd.f32 %v8360_v30, %v11457_v61 }
 0x5da   : > { %v6065_v0 = vadd.f32 %v11457_v61, %v5867_v63 }
 0x5dc   : > { %6097 = vxpose.xlu0.b32.start [1/16] (narrow) %v6065_v0, 16  ;;  %v8363_v52 = vpop.f32.mrb[2].mxu1 }
 0x5dd   : > { %v5877_v18 = vpop.f32.mrb[3].mxu1  ;;  %v6068_v36 = vadd.f32 %v8363_v52, %v11457_v61 }
 0x5de   : > { %v6067_v54 = vadd.f32 %v11457_v61, %v5877_v18 }
 0x5e0   : > { %6098 = vxpose.xlu0.b32.cont [2/16] (narrow) %v6066_v8, 16  ;;  %v8366_v59 = vpop.f32.mrb[4].mxu1 }
 0x5e1   : > { %v5887_v6 = vpop.f32.mrb[5].mxu1  ;;  %v6070_v50 = vadd.f32 %v8366_v59, %v11457_v61 }
 0x5e2   : > { %v6069_v9 = vadd.f32 %v11457_v61, %v5887_v6 }
 0x5e4   : > { %6099 = vxpose.xlu0.b32.cont [3/16] (narrow) %v6067_v54, 16  ;;  %v8369_v44 = vpop.f32.mrb[6].mxu1 }
 0x5e5   : > { %v5897_v21 = vpop.f32.mrb[7].mxu1  ;;  %v6072_v38 = vadd.f32 %v8369_v44, %v11457_v61 }
 0x5e6   : > { %v6071_v25 = vadd.f32 %v11457_v61, %v5897_v21 }
 0x5e8   : > { %6100 = vxpose.xlu0.b32.cont [4/16] (narrow) %v6068_v36, 16  ;;  %v8372_v48 = vpop.f32.mrb[8].mxu1 }
 0x5e9   : > { %v5907_v1 = vpop.f32.mrb[9].mxu1  ;;  %v6074_v47 = vadd.f32 %v8372_v48, %v11457_v61 }
 0x5ea   : > { %v6073_v7 = vadd.f32 %v11457_v61, %v5907_v1 }
 0x5ec   : > { %6101 = vxpose.xlu0.b32.cont [5/16] (narrow) %v6069_v9, 16  ;;  %v11464_v16 = vpop.f32.mrb[10].mxu1 }
 0x5ed   : > { %v5917_v60 = vpop.f32.mrb[11].mxu1 }
 0x5ee   : > { %v6075_v41 = vadd.f32 %v11457_v61, %v5917_v60 }
 0x5f0   : > { %6102 = vxpose.xlu0.b32.cont [6/16] (narrow) %v6070_v50, 16  ;;  %v11467_v29 = vpop.f32.mrb[12].mxu1 }
 0x5f1   : > { %v11469_v35 = vpop.f32.mrb[13].mxu1 }
 0x5f4   : > { %6103 = vxpose.xlu0.b32.cont [7/16] (narrow) %v6071_v25, 16  ;;  %v11472_v56 = vpop.f32.mrb[14].mxu1 }
 0x5f5   : > { %v11474_v15 = vpop.f32.mrb[15].mxu1 }
 0x5f8   : > { %6104 = vxpose.xlu0.b32.cont [8/16] (narrow) %v6072_v38, 16  ;;  %v8384_v55 = vpop.f32.mrb[16].mxu1 }
 0x5f9   : > { %v5947_v32 = vpop.f32.mrb[17].mxu1  ;;  %v6082_v11 = vadd.f32 %v8384_v55, %v11457_v61 }
 0x5fa   : > { %v6081_v28 = vadd.f32 %v11457_v61, %v5947_v32 }
 0x5fc   : > { %6105 = vxpose.xlu0.b32.cont [9/16] (narrow) %v6073_v7, 16  ;;  %6129 = vxpose.xlu1.b32.start [1/16] (narrow) %v6081_v28, 16  ;;  %v8387_v3 = vpop.f32.mrb[18].mxu1 }
 0x5fd   : > { %v5957_v2 = vpop.f32.mrb[19].mxu1 }
 0x5fe   : > { %v6083_v12 = vadd.f32 %v11457_v61, %v5957_v2 }
 0x600   : > { %6106 = vxpose.xlu0.b32.cont [10/16] (narrow) %v6074_v47, 16  ;;  %6130 = vxpose.xlu1.b32.cont [2/16] (narrow) %v6082_v11, 16  ;;  %v8390_v23 = vpop.f32.mrb[20].mxu1 }
 0x601   : > { %v5967_v14 = vpop.f32.mrb[21].mxu1 }
 0x602   : > { %8983 = shalt.err (!%p8980_p3)
}
 0x603   : > { %s8984_s29 = scalar_lea.hbm %s6183_s16, 256  ;;  %s8988_s11 = scalar_lea.hbm %s11585_s5, 512 }
 0x604   : > { %p8985_p4 = scmp.ne.s32.totalorder %s6183_s16, %s8984_s29  ;;  %p8989_p9 = scmp.lt.u32.totalorder %s6183_s16, %s11585_s5 }
 0x605   : > { %p8990_p10 = scmp.lt.u32.totalorder %s8988_s11, %s8984_s29  ;;  %p8992_p12 = scmp.lt.u32.totalorder %s8984_s29, %s6183_s16 }
 0x606   : > { %p8986_p7 = pnand %p8985_p4, %p9144_p5 }
 0x607   : > { %p8991_p11 = por %p8990_p10, %p8989_p9 }
 0x608   : > { %p8987_p8 = pneg %p8986_p7 }
 0x609   : > { %p8993_p0 = por %p8992_p12, %p8991_p11 }
 0x60b   : > { %p8994_p13 = pnand %p8993_p0, %p8987_p8 }
 0x60d   : > { %8997 = shalt.err (!%p8994_p13)
}
 0x60e   : > { %8919 = dma.vmem_to_hbm [thread:$0]  (%p9144_p5), %s11482_s12, 256, %s6183_s16, %s6166_s17   ;;  %6107 = vxpose.xlu0.b32.cont [11/16] (narrow) %v6075_v41, 16  ;;  %6131 = vxpose.xlu1.b32.cont [3/16] (narrow) %v6083_v12, 16  ;;  %v8393_v49 = vpop.f32.mrb[22].mxu1  ;;  %v6076_v34 = vadd.f32 %v11464_v16, %v11457_v61  ;;  %v6084_v24 = vadd.f32 %v8387_v3, %v11457_v61  ;;  %v6077_v43 = vadd.f32 %v11457_v61, %v11469_v35 }
 0x60f   : > { %v5977_v37 = vpop.f32.mrb[23].mxu1  ;;  %v6085_v45 = vadd.f32 %v11457_v61, %v5967_v14  ;;  %v6078_v33 = vadd.f32 %v11467_v29, %v11457_v61  ;;  %v6086_v26 = vadd.f32 %v8390_v23, %v11457_v61  ;;  %v6079_v10 = vadd.f32 %v11457_v61, %v11474_v15  ;;  %s6297_s12 = sshll.u32 %s11447_s28, 5  ;;  %s6911_s17 = sshll.u32 %s9127_s25, 9 }
 0x610   : > { %v8396_v27 = vpop.f32.mrb[24].mxu1  ;;  %v6087_v40 = vadd.f32 %v11457_v61, %v5977_v37  ;;  %v6080_v13 = vadd.f32 %v11472_v56, %v11457_v61  ;;  %v6088_v51 = vadd.f32 %v8393_v49, %v11457_v61  ;;  %s255_s15 = scalar_lea.vmem [#allocation5], %s6297_s12  ;;  %s11537_s20 = scalar_lea.hbm %s11586_s6, %s6911_s17 }
 0x611   : > { %v6090_v46 = vadd.f32 %v8396_v27, %v11457_v61  ;;  %v5987_v5 = vpop.f32.mrb[25].mxu1  ;;  %s6198_s16 = sshll.u32 %s255_s15, 4  ;;  %s6171_s26 = scalar_lea.sflag [#allocation6], %s11447_s28  ;;  %s11532_s16 = int_to_ptr.vmem [resolvable:$true] %s6198_s16 }
 0x612   : > { %6108 = vxpose.xlu0.b32.cont [12/16] (narrow) %v6076_v34, 16  ;;  %6132 = vxpose.xlu1.b32.cont [4/16] (narrow) %v6084_v24, 16  ;;  %v6089_v20 = vadd.f32 %v11457_v61, %v5987_v5  ;;  %v8399_v31 = vpop.f32.mrb[26].mxu1  ;;  %s8998_s29 = scalar_lea.vmem %s11532_s16, 512  ;;  %s9068_s25 = smov [#allocation5]  }
 0x613   : > { %v6092_v39 = vadd.f32 %v8399_v31, %v11457_v61  ;;  %v5997_v19 = vpop.f32.mrb[27].mxu1  ;;  %p8999_p1 = scmp.ne.s32.totalorder %s11532_s16, %s8998_s29  ;;  %s9002_s9 = sshll.u32 %s9068_s25, 4  ;;  %s9003_s9 = int_to_ptr.vmem [resolvable:$false] %s9002_s9 }
 0x614   : > { %v6091_v17 = vadd.f32 %v11457_v61, %v5997_v19  ;;  %v8402_v62 = vpop.f32.mrb[28].mxu1  ;;  %s9004_s10 = scalar_lea.vmem %s9003_s9, 1024  ;;  %p9005_p4 = scmp.lt.s32.totalorder %s11532_s16, %s9003_s9 }
 0x615   : > { %v6094_v58 = vadd.f32 %v8402_v62, %v11457_v61  ;;  %v6007_v4 = vpop.f32.mrb[29].mxu1  ;;  %p9000_p2 = pnand %p8999_p1, %p9144_p5  ;;  %p9006_p7 = scmp.lt.s32.totalorder %s9004_s10, %s8998_s29 }
 0x616   : > { %6109 = vxpose.xlu0.b32.cont [13/16] (narrow) %v6077_v43, 16  ;;  %6133 = vxpose.xlu1.b32.cont [5/16] (narrow) %v6085_v45, 16  ;;  %v6093_v57 = vadd.f32 %v11457_v61, %v6007_v4  ;;  %v8405_v22 = vpop.f32.mrb[30].mxu1 }
 0x617   : > { %v6096_v53 = vadd.f32 %v8405_v22, %v11457_v61  ;;  %v6017_v42 = vpop.f32.mrb[31].mxu1  ;;  %p9001_p3 = pneg %p9000_p2  ;;  %p9007_p8 = por %p9006_p7, %p9005_p4 }
 0x618   : > { %v6095_v30 = vadd.f32 %v11457_v61, %v6017_v42 }
 0x619   : > { %p9008_p9 = pnand %p9007_p8, %p9001_p3 }
 0x61a   : > { %6110 = vxpose.xlu0.b32.cont [14/16] (narrow) %v6078_v33, 16  ;;  %6134 = vxpose.xlu1.b32.cont [6/16] (narrow) %v6086_v26, 16 }
 0x61e   : > { %6111 = vxpose.xlu0.b32.cont [15/16] (narrow) %v6079_v10, 16  ;;  %6135 = vxpose.xlu1.b32.cont [7/16] (narrow) %v6087_v40, 16 }
 0x622   : > { %6112 = vxpose.xlu0.b32.end [16/16] (narrow) %v6080_v13, 16  ;;  %6136 = vxpose.xlu1.b32.cont [8/16] (narrow) %v6088_v51, 16 }
 0x626   : > { %6137 = vxpose.xlu1.b32.cont [9/16] (narrow) %v6089_v20, 16 }
 0x62a   : > { %6138 = vxpose.xlu1.b32.cont [10/16] (narrow) %v6090_v46, 16 }
 0x62e   : > { %6139 = vxpose.xlu1.b32.cont [11/16] (narrow) %v6091_v17, 16 }
 0x632   : > { %6140 = vxpose.xlu1.b32.cont [12/16] (narrow) %v6092_v39, 16 }
 0x636   : > { %6141 = vxpose.xlu1.b32.cont [13/16] (narrow) %v6093_v57, 16 }
 0x63a   : > { %6142 = vxpose.xlu1.b32.cont [14/16] (narrow) %v6094_v58, 16 }
 0x63e   : > { %6143 = vxpose.xlu1.b32.cont [15/16] (narrow) %v6095_v30, 16 }
 0x642   : > { %6144 = vxpose.xlu1.b32.end [16/16] (narrow) %v6096_v53, 16 }
 0x666   : > { %v6113_v63 = vpop.trf.xlu0 }
 0x667   : > { %6161 = vst [vmem:[%s255_s15] sm:$0xff] %v6113_v63 }
 0x66a   : > { %v6114_v0 = vpop.trf.xlu0 }
 0x66b   : > { %6163 = vst [vmem:[%s255_s15 + $0x10] sm:$0xff] %v6114_v0 }
 0x686   : > { %v6145_v61 = vpop.trf.xlu1 }
 0x687   : > { %6162 = vst [vmem:[%s255_s15 + $0x8] sm:$0xff] %v6145_v61 }
 0x68a   : > { %v6146_v52 = vpop.trf.xlu1 }
 0x68b   : > { %6164 = vst [vmem:[%s255_s15 + $0x18] sm:$0xff] %v6146_v52 }
 0x68c   : > { %9011 = shalt.err (!%p9008_p9)
}
 0x68d   : > { %s9012_s11 = scalar_lea.hbm %s11537_s20, 512  ;;  %s9016_s12 = scalar_lea.hbm %s11586_s6, 1024 }
 0x68e   : > { %p9013_p10 = scmp.ne.s32.totalorder %s11537_s20, %s9012_s11  ;;  %p9017_p0 = scmp.lt.u32.totalorder %s11537_s20, %s11586_s6 }
 0x68f   : > { %p9018_p13 = scmp.lt.u32.totalorder %s9016_s12, %s9012_s11  ;;  %p9020_p2 = scmp.lt.u32.totalorder %s9012_s11, %s11537_s20 }
 0x690   : > { %p9014_p11 = pnand %p9013_p10, %p9144_p5 }
 0x691   : > { %p9019_p1 = por %p9018_p13, %p9017_p0 }
 0x692   : > { %p9015_p12 = pneg %p9014_p11 }
 0x693   : > { %p9021_p3 = por %p9020_p2, %p9019_p1 }
 0x695   : > { %p9022_p4 = pnand %p9021_p3, %p9015_p12 }
 0x697   : > { %9025 = shalt.err (!%p9022_p4)
}
 0x698   : > { %s9069_s18 = smov 256   ;;  %s9070_s19 = smov 16  }
 0x699   : > { %8920 = dma.vmem_to_hbm [thread:$0]  (%p9144_p5), %s11532_s16, 512, %s11537_s20, %s6171_s26, %s9069_s18, %s9069_s18, %s9070_s19  }
 0x69a PF: > { %p8930_p7 = scmp.ge.s32.totalorder %s9064_s24, 2  ;;  %s6213_s29 = sand.u32 1, %s9052_s21  }
 0x69b   : > { %s6214_s25 = scalar_lea.sflag [#allocation4], %s6213_s29 }
 0x69c   : > { %p8924_p8 = pnand %p8930_p7, %p9148_p6 }
 0x69e   : > { %9043 = dma.done.wait (!%p8924_p8), %s6214_s25, 256  }
 0x69f   : > { %9045 = vsyncadd (!%p8924_p8), %s6214_s25, 4294967040  ;;  %s6223_s9 = scalar_lea.sflag [#allocation6], %s6213_s29 }
 0x6a0   : > { %9047 = dma.done.wait (!%p8924_p8), %s6223_s9, 512  }
 0x6a1   : > { %9049 = vsyncadd (!%p8924_p8), %s6223_s9, 4294966784  ;;  %p20_p5 = scmp.ge.s32.totalorder %s9131_s27, 4   ;;  %s11944_s21 = smov %s9056_s22 }
 0x6a2   : > { %s11945_s22 = smov %s9060_s23  ;;  %s11946_s23 = smov %s9142_s30 }
 0x6a3   : > { %s11947_s24 = smov %s9131_s27  ;;  %22 = sbr.rel (!%p20_p5) target bundleno = 5 (0x5), region = 109 }
 0x6aa   :  { %6228 = vsyncpa [#allocation4], 1 }
 0x6ab   :  { %6230 = vsyncpa [#allocation4 + $0x1], 1 }
 0x6ac   :  { %6231 = vsyncpa [#allocation6], 1 }
 0x6ad   :  { %6233 = vsyncpa [#allocation6 + $0x1], 1 }

</bundles_post_ra>
